<compile_context>
chip_gen: v5e
topology: v5e:2x2
jax: 0.10.0
libtpu: 0.0.40
codegen_flags: <defaults>
</compile_context>

<pallas_src>
import jax
import jax.numpy as jnp
from jax.experimental import pallas as pl
from jax.experimental.pallas import tpu as pltpu


def _round_up(v, m):
    return (v + m - 1) // m * m


# ------------------------------ fused kernel -------------------------------

def _fused_net_kernel(
    x_ref, ea_ref, sgat_ref, sdstT_ref,
    new_ref, neb_ref, eew_ref, eeb_ref,
    wself_ref, wneigh_ref, bnode_ref,
    wedge_ref, bedge_ref,
    predw_ref, predb_ref,
    out_ref,
):
    hi = jax.lax.Precision.HIGHEST

    def mm(a, b):
        return jnp.dot(a, b, preferred_element_type=jnp.float32, precision=hi)

    # Input embeddings (layer 0 of the original Net).
    h0 = mm(x_ref[...], new_ref[...]) + neb_ref[...]      # [N, H]
    e0 = mm(ea_ref[...], eew_ref[...]) + eeb_ref[...]     # [E, H]

    n_layers = wself_ref.shape[0]
    e_rows = ea_ref.shape[0]

    # Hoisted constant loads (incidence matrices reused by every layer).
    sgat = sgat_ref[...]       # [2E, N]  = [S_src ; S_dst]
    sdstT = sdstT_ref[...]     # [N, E]   = S_dst^T  (scatter-add as a dot)

    def layer(l, carry):
        h, e = carry                                       # OLD h, e

        # Fused endpoint gather: one MXU dot gives both src and dst rows.
        h_ends = mm(sgat, h)                               # [2E, H]
        h_src = h_ends[:e_rows]                            # [E, H]
        h_dst = h_ends[e_rows:]                            # [E, H]

        # --- node update (GatedGCN-style), consumes OLD h, e ---
        gate = jax.nn.sigmoid(e)                           # [E, H]
        msg = gate * mm(h_src, wneigh_ref[l])              # [E, H]
        agg = mm(sdstT, msg)                               # [N, H] scatter-add
        h_new = jnp.maximum(
            mm(h, wself_ref[l]) + agg + bnode_ref[l], 0.0)

        # --- edge update, fused K=3H matmul, consumes OLD h, e ---
        lhs = jnp.concatenate([e, h_src, h_dst], axis=1)   # [E, 3H]
        e_new = jnp.maximum(mm(lhs, wedge_ref[l]) + bedge_ref[l], 0.0)

        return h_new, e_new

    h, e = jax.lax.fori_loop(0, n_layers, layer, (h0, e0), unroll=True)

    # Prediction head, written once to a lane-dense (padded) output slab.
    out_ref[...] = mm(h, predw_ref[...]) + predb_ref[...]


# ------------------------------ params / glue ------------------------------

def init_params(key, node_feat, edge_feat, hidden, num_layers, out_dim):
    ks = jax.random.split(key, 8)
    s = 0.1

    def rnd(k, shape):
        return s * jax.random.normal(k, shape, jnp.float32)

    return {
        "node_emb_w": rnd(ks[0], (node_feat, hidden)),
        "node_emb_b": jnp.zeros((1, hidden), jnp.float32),
        "edge_emb_w": rnd(ks[1], (edge_feat, hidden)),
        "edge_emb_b": jnp.zeros((1, hidden), jnp.float32),
        "pred_w": rnd(ks[2], (hidden, out_dim)),
        "pred_b": jnp.zeros((1, out_dim), jnp.float32),
        # stacked per-layer weights: [L, H, H] / [L, 1, H]
        "w_self": rnd(ks[3], (num_layers, hidden, hidden)),
        "w_neigh": rnd(ks[4], (num_layers, hidden, hidden)),
        "b_node": jnp.zeros((num_layers, 1, hidden), jnp.float32),
        "w_e": rnd(ks[5], (num_layers, hidden, hidden)),
        "w_s": rnd(ks[6], (num_layers, hidden, hidden)),
        "w_d": rnd(ks[7], (num_layers, hidden, hidden)),
        "b_edge": jnp.zeros((num_layers, 1, hidden), jnp.float32),
    }


def net_forward(params, x, edge_index, edge_attr, num_nodes):
    N, node_feat = x.shape
    E, edge_feat = edge_attr.shape
    L, H, _ = params["w_self"].shape
    out_dim = params["pred_w"].shape[1]
    assert L >= 1

    # ---- plain-JAX layout plumbing (padding + dense incidence matrices) ----
    # NOTE: padded rows only carry bias-only garbage; safe because no op
    # normalizes over N/E and the output is sliced. Mask them if adding
    # mean-aggregation / layernorm / softmax later.
    n_pad = _round_up(max(num_nodes, 8), 8)
    e_pad = _round_up(max(E, 8), 8)
    out_pad = _round_up(max(out_dim, 128), 128)   # lane-dense pred output

    xp = jnp.zeros((n_pad, node_feat), jnp.float32).at[:N].set(x)
    eap = jnp.zeros((e_pad, edge_feat), jnp.float32).at[:E].set(edge_attr)

    s_src = jnp.zeros((e_pad, n_pad), jnp.float32).at[:E].set(
        jax.nn.one_hot(edge_index[0], n_pad, dtype=jnp.float32))
    s_dst = jnp.zeros((e_pad, n_pad), jnp.float32).at[:E].set(
        jax.nn.one_hot(edge_index[1], n_pad, dtype=jnp.float32))
    s_gather = jnp.concatenate([s_src, s_dst], axis=0)   # [2E, N] fused gather
    s_dst_t = s_dst.T                                     # scatter-add as a dot

    # Pack the three edge-update weights host-side -> one K=3H contraction.
    w_edge = jnp.concatenate(
        [params["w_e"], params["w_s"], params["w_d"]], axis=1)   # [L, 3H, H]

    pred_w = jnp.zeros((H, out_pad), jnp.float32).at[:, :out_dim].set(params["pred_w"])
    pred_b = jnp.zeros((1, out_pad), jnp.float32).at[:, :out_dim].set(params["pred_b"])

    inputs = (
        xp, eap, s_gather, s_dst_t,
        params["node_emb_w"], params["node_emb_b"],
        params["edge_emb_w"], params["edge_emb_b"],
        params["w_self"], params["w_neigh"], params["b_node"],
        w_edge, params["b_edge"],
        pred_w, pred_b,
    )

    # No grid: everything (weights + activations) fits comfortably in VMEM at
    # these sizes; whole arrays are placed in VMEM once, single invocation.
    out = pl.pallas_call(
        _fused_net_kernel,
        out_shape=jax.ShapeDtypeStruct((n_pad, out_pad), jnp.float32),
        in_specs=[pl.BlockSpec(memory_space=pltpu.MemorySpace.VMEM)
                  for _ in inputs],
        out_specs=pl.BlockSpec(memory_space=pltpu.MemorySpace.VMEM),
    )(*inputs)
    return out[:num_nodes, :out_dim]


# ------------------------------ pure-JAX reference --------------------------

def net_forward_ref(params, x, edge_index, edge_attr, num_nodes):
    hi = jax.lax.Precision.HIGHEST

    def mm(a, b):
        return jnp.dot(a, b, precision=hi)

    s_src = jax.nn.one_hot(edge_index[0], num_nodes, dtype=jnp.float32)
    s_dst = jax.nn.one_hot(edge_index[1], num_nodes, dtype=jnp.float32)
    h = mm(x, params["node_emb_w"]) + params["node_emb_b"]
    e = mm(edge_attr, params["edge_emb_w"]) + params["edge_emb_b"]
    for l in range(params["w_self"].shape[0]):
        h_src = mm(s_src, h)
        h_dst = mm(s_dst, h)
        gate = jax.nn.sigmoid(e)
        msg = gate * mm(h_src, params["w_neigh"][l])
        agg = mm(s_dst.T, msg)
        h_new = jnp.maximum(mm(h, params["w_self"][l]) + agg + params["b_node"][l], 0.0)
        e_new = jnp.maximum(mm(e, params["w_e"][l]) + mm(h_src, params["w_s"][l])
                            + mm(h_dst, params["w_d"][l]) + params["b_edge"][l], 0.0)
        h, e = h_new, e_new
    return mm(h, params["pred_w"]) + params["pred_b"]


# ----------------------------------- main -----------------------------------

if __name__ == "__main__":
    N = 8          # nodes
    E = 16         # edges
    NODE_FEAT = 4
    EDGE_FEAT = 4
    HIDDEN = 128   # lane-dense hidden dim (multiple of 128)
    NUM_LAYERS = 2
    OUT_DIM = 1

    key = jax.random.PRNGKey(0)
    k_x, k_ea, k_ei, k_p = jax.random.split(key, 4)

    x = jax.random.normal(k_x, (N, NODE_FEAT), jnp.float32)
    edge_attr = jax.random.normal(k_ea, (E, EDGE_FEAT), jnp.float32)
    edge_index = jax.random.randint(k_ei, (2, E), 0, N, dtype=jnp.int32)

    params = init_params(k_p, NODE_FEAT, EDGE_FEAT, HIDDEN, NUM_LAYERS, OUT_DIM)

    out = net_forward(params, x, edge_index, edge_attr, N)
    jax.block_until_ready(out)
    assert out.shape == (N, OUT_DIM) and out.dtype == jnp.float32

    ref = net_forward_ref(params, x, edge_index, edge_attr, N)
    err = float(jnp.max(jnp.abs(out - ref)))
    assert jnp.allclose(out, ref, rtol=1e-4, atol=1e-4), f"max abs err {err}"

    print("KERNEL_OK")
</pallas_src>

<mosaic_0001>
module attributes {stable_mosaic.version = 11 : i64} {
  func.func @_fused_net_kernel(%arg0: memref<8x4xf32, #tpu.memory_space<vmem>>, %arg1: memref<16x4xf32, #tpu.memory_space<vmem>>, %arg2: memref<32x8xf32, #tpu.memory_space<vmem>>, %arg3: memref<8x16xf32, #tpu.memory_space<vmem>>, %arg4: memref<4x128xf32, #tpu.memory_space<vmem>>, %arg5: memref<1x128xf32, #tpu.memory_space<vmem>>, %arg6: memref<4x128xf32, #tpu.memory_space<vmem>>, %arg7: memref<1x128xf32, #tpu.memory_space<vmem>>, %arg8: memref<2x128x128xf32, #tpu.memory_space<vmem>>, %arg9: memref<2x128x128xf32, #tpu.memory_space<vmem>>, %arg10: memref<2x1x128xf32, #tpu.memory_space<vmem>>, %arg11: memref<2x384x128xf32, #tpu.memory_space<vmem>>, %arg12: memref<2x1x128xf32, #tpu.memory_space<vmem>>, %arg13: memref<128x128xf32, #tpu.memory_space<vmem>>, %arg14: memref<1x128xf32, #tpu.memory_space<vmem>>, %arg15: memref<8x128xf32, #tpu.memory_space<vmem>>) attributes {dimension_semantics = [], scalar_prefetch = 0 : i64, scratch_operands = 0 : i64, tpu.core_type = #tpu.core_type<tc>} {
    %c0 = arith.constant 0 : index
    %c0_0 = arith.constant 0 : index
    %0 = vector.load %arg0[%c0, %c0_0] : memref<8x4xf32, #tpu.memory_space<vmem>>, vector<8x4xf32>
    %c0_1 = arith.constant 0 : index
    %c0_2 = arith.constant 0 : index
    %1 = vector.load %arg4[%c0_1, %c0_2] : memref<4x128xf32, #tpu.memory_space<vmem>>, vector<4x128xf32>
    %cst = arith.constant dense<0.000000e+00> : vector<8x128xf32>
    %2 = tpu.matmul %0, %1, %cst {dimension_numbers = #tpu.dot_dimension_numbers<[1], [0], [0], [1], [0, 0, 1, 1], [], []>, precision = #tpu.contract_precision<fp32>} : vector<8x4xf32>, vector<4x128xf32>, vector<8x128xf32> -> vector<8x128xf32>
    %c0_3 = arith.constant 0 : index
    %c0_4 = arith.constant 0 : index
    %3 = vector.load %arg5[%c0_3, %c0_4] : memref<1x128xf32, #tpu.memory_space<vmem>>, vector<1x128xf32>
    %4 = vector.broadcast %3 : vector<1x128xf32> to vector<8x128xf32>
    %5 = arith.addf %2, %4 : vector<8x128xf32>
    %c0_5 = arith.constant 0 : index
    %c0_6 = arith.constant 0 : index
    %6 = vector.load %arg1[%c0_5, %c0_6] : memref<16x4xf32, #tpu.memory_space<vmem>>, vector<16x4xf32>
    %c0_7 = arith.constant 0 : index
    %c0_8 = arith.constant 0 : index
    %7 = vector.load %arg6[%c0_7, %c0_8] : memref<4x128xf32, #tpu.memory_space<vmem>>, vector<4x128xf32>
    %cst_9 = arith.constant dense<0.000000e+00> : vector<16x128xf32>
    %8 = tpu.matmul %6, %7, %cst_9 {dimension_numbers = #tpu.dot_dimension_numbers<[1], [0], [0], [1], [0, 0, 1, 1], [], []>, precision = #tpu.contract_precision<fp32>} : vector<16x4xf32>, vector<4x128xf32>, vector<16x128xf32> -> vector<16x128xf32>
    %c0_10 = arith.constant 0 : index
    %c0_11 = arith.constant 0 : index
    %9 = vector.load %arg7[%c0_10, %c0_11] : memref<1x128xf32, #tpu.memory_space<vmem>>, vector<1x128xf32>
    %10 = vector.broadcast %9 : vector<1x128xf32> to vector<16x128xf32>
    %11 = arith.addf %8, %10 : vector<16x128xf32>
    %c0_12 = arith.constant 0 : index
    %c0_13 = arith.constant 0 : index
    %12 = vector.load %arg2[%c0_12, %c0_13] : memref<32x8xf32, #tpu.memory_space<vmem>>, vector<32x8xf32>
    %c0_14 = arith.constant 0 : index
    %c0_15 = arith.constant 0 : index
    %13 = vector.load %arg3[%c0_14, %c0_15] : memref<8x16xf32, #tpu.memory_space<vmem>>, vector<8x16xf32>
    %c0_i32 = arith.constant 0 : i32
    %cst_16 = arith.constant dense<0.000000e+00> : vector<32x128xf32>
    %14 = tpu.matmul %12, %5, %cst_16 {dimension_numbers = #tpu.dot_dimension_numbers<[1], [0], [0], [1], [0, 0, 1, 1], [], []>, precision = #tpu.contract_precision<fp32>} : vector<32x8xf32>, vector<8x128xf32>, vector<32x128xf32> -> vector<32x128xf32>
    %15 = vector.extract_strided_slice %14 {offsets = [0, 0], sizes = [16, 128], strides = [1, 1]} : vector<32x128xf32> to vector<16x128xf32>
    %16 = vector.extract_strided_slice %14 {offsets = [16, 0], sizes = [16, 128], strides = [1, 1]} : vector<32x128xf32> to vector<16x128xf32>
    %17 = arith.negf %11 : vector<16x128xf32>
    %18 = math.exp %17 : vector<16x128xf32>
    %cst_17 = arith.constant 1.000000e+00 : f32
    %19 = vector.broadcast %cst_17 : f32 to vector<16x128xf32>
    %20 = arith.addf %19, %18 : vector<16x128xf32>
    %21 = arith.divf %19, %20 : vector<16x128xf32>
    %22 = arith.index_cast %c0_i32 : i32 to index
    %c0_18 = arith.constant 0 : index
    %c0_19 = arith.constant 0 : index
    %23 = vector.load %arg9[%22, %c0_18, %c0_19] : memref<2x128x128xf32, #tpu.memory_space<vmem>>, vector<1x128x128xf32>
    %24 = vector.shape_cast %23 : vector<1x128x128xf32> to vector<128x128xf32>
    %cst_20 = arith.constant dense<0.000000e+00> : vector<16x128xf32>
    %25 = tpu.matmul %15, %24, %cst_20 {dimension_numbers = #tpu.dot_dimension_numbers<[1], [0], [0], [1], [0, 0, 1, 1], [], []>, precision = #tpu.contract_precision<fp32>} : vector<16x128xf32>, vector<128x128xf32>, vector<16x128xf32> -> vector<16x128xf32>
    %26 = arith.mulf %21, %25 : vector<16x128xf32>
    %cst_21 = arith.constant dense<0.000000e+00> : vector<8x128xf32>
    %27 = tpu.matmul %13, %26, %cst_21 {dimension_numbers = #tpu.dot_dimension_numbers<[1], [0], [0], [1], [0, 0, 1, 1], [], []>, precision = #tpu.contract_precision<fp32>} : vector<8x16xf32>, vector<16x128xf32>, vector<8x128xf32> -> vector<8x128xf32>
    %28 = arith.index_cast %c0_i32 : i32 to index
    %c0_22 = arith.constant 0 : index
    %c0_23 = arith.constant 0 : index
    %29 = vector.load %arg8[%28, %c0_22, %c0_23] : memref<2x128x128xf32, #tpu.memory_space<vmem>>, vector<1x128x128xf32>
    %30 = vector.shape_cast %29 : vector<1x128x128xf32> to vector<128x128xf32>
    %cst_24 = arith.constant dense<0.000000e+00> : vector<8x128xf32>
    %31 = tpu.matmul %5, %30, %cst_24 {dimension_numbers = #tpu.dot_dimension_numbers<[1], [0], [0], [1], [0, 0, 1, 1], [], []>, precision = #tpu.contract_precision<fp32>} : vector<8x128xf32>, vector<128x128xf32>, vector<8x128xf32> -> vector<8x128xf32>
    %32 = arith.addf %31, %27 : vector<8x128xf32>
    %33 = arith.index_cast %c0_i32 : i32 to index
    %c0_25 = arith.constant 0 : index
    %c0_26 = arith.constant 0 : index
    %34 = vector.load %arg10[%33, %c0_25, %c0_26] : memref<2x1x128xf32, #tpu.memory_space<vmem>>, vector<1x1x128xf32>
    %35 = vector.shape_cast %34 : vector<1x1x128xf32> to vector<1x128xf32>
    %36 = vector.broadcast %35 : vector<1x128xf32> to vector<8x128xf32>
    %37 = arith.addf %32, %36 : vector<8x128xf32>
    %cst_27 = arith.constant 0.000000e+00 : f32
    %38 = vector.broadcast %cst_27 : f32 to vector<8x128xf32>
    %39 = arith.maximumf %37, %38 : vector<8x128xf32>
    %40 = tpu.concatenate %11, %15, %16 in 1 : vector<16x128xf32>, vector<16x128xf32>, vector<16x128xf32> -> vector<16x384xf32>
    %41 = arith.index_cast %c0_i32 : i32 to index
    %c0_28 = arith.constant 0 : index
    %c0_29 = arith.constant 0 : index
    %42 = vector.load %arg11[%41, %c0_28, %c0_29] : memref<2x384x128xf32, #tpu.memory_space<vmem>>, vector<1x384x128xf32>
    %43 = vector.shape_cast %42 : vector<1x384x128xf32> to vector<384x128xf32>
    %cst_30 = arith.constant dense<0.000000e+00> : vector<16x128xf32>
    %44 = tpu.matmul %40, %43, %cst_30 {dimension_numbers = #tpu.dot_dimension_numbers<[1], [0], [0], [1], [0, 0, 1, 1], [], []>, precision = #tpu.contract_precision<fp32>} : vector<16x384xf32>, vector<384x128xf32>, vector<16x128xf32> -> vector<16x128xf32>
    %45 = arith.index_cast %c0_i32 : i32 to index
    %c0_31 = arith.constant 0 : index
    %c0_32 = arith.constant 0 : index
    %46 = vector.load %arg12[%45, %c0_31, %c0_32] : memref<2x1x128xf32, #tpu.memory_space<vmem>>, vector<1x1x128xf32>
    %47 = vector.shape_cast %46 : vector<1x1x128xf32> to vector<1x128xf32>
    %48 = vector.broadcast %47 : vector<1x128xf32> to vector<16x128xf32>
    %49 = arith.addf %44, %48 : vector<16x128xf32>
    %cst_33 = arith.constant 0.000000e+00 : f32
    %50 = vector.broadcast %cst_33 : f32 to vector<16x128xf32>
    %51 = arith.maximumf %49, %50 : vector<16x128xf32>
    %c1_i32 = arith.constant 1 : i32
    %cst_34 = arith.constant dense<0.000000e+00> : vector<32x128xf32>
    %52 = tpu.matmul %12, %39, %cst_34 {dimension_numbers = #tpu.dot_dimension_numbers<[1], [0], [0], [1], [0, 0, 1, 1], [], []>, precision = #tpu.contract_precision<fp32>} : vector<32x8xf32>, vector<8x128xf32>, vector<32x128xf32> -> vector<32x128xf32>
    %53 = vector.extract_strided_slice %52 {offsets = [0, 0], sizes = [16, 128], strides = [1, 1]} : vector<32x128xf32> to vector<16x128xf32>
    %54 = vector.extract_strided_slice %52 {offsets = [16, 0], sizes = [16, 128], strides = [1, 1]} : vector<32x128xf32> to vector<16x128xf32>
    %55 = arith.negf %51 : vector<16x128xf32>
    %56 = math.exp %55 : vector<16x128xf32>
    %cst_35 = arith.constant 1.000000e+00 : f32
    %57 = vector.broadcast %cst_35 : f32 to vector<16x128xf32>
    %58 = arith.addf %57, %56 : vector<16x128xf32>
    %59 = arith.divf %57, %58 : vector<16x128xf32>
    %60 = arith.index_cast %c1_i32 : i32 to index
    %c0_36 = arith.constant 0 : index
    %c0_37 = arith.constant 0 : index
    %61 = vector.load %arg9[%60, %c0_36, %c0_37] : memref<2x128x128xf32, #tpu.memory_space<vmem>>, vector<1x128x128xf32>
    %62 = vector.shape_cast %61 : vector<1x128x128xf32> to vector<128x128xf32>
    %cst_38 = arith.constant dense<0.000000e+00> : vector<16x128xf32>
    %63 = tpu.matmul %53, %62, %cst_38 {dimension_numbers = #tpu.dot_dimension_numbers<[1], [0], [0], [1], [0, 0, 1, 1], [], []>, precision = #tpu.contract_precision<fp32>} : vector<16x128xf32>, vector<128x128xf32>, vector<16x128xf32> -> vector<16x128xf32>
    %64 = arith.mulf %59, %63 : vector<16x128xf32>
    %cst_39 = arith.constant dense<0.000000e+00> : vector<8x128xf32>
    %65 = tpu.matmul %13, %64, %cst_39 {dimension_numbers = #tpu.dot_dimension_numbers<[1], [0], [0], [1], [0, 0, 1, 1], [], []>, precision = #tpu.contract_precision<fp32>} : vector<8x16xf32>, vector<16x128xf32>, vector<8x128xf32> -> vector<8x128xf32>
    %66 = arith.index_cast %c1_i32 : i32 to index
    %c0_40 = arith.constant 0 : index
    %c0_41 = arith.constant 0 : index
    %67 = vector.load %arg8[%66, %c0_40, %c0_41] : memref<2x128x128xf32, #tpu.memory_space<vmem>>, vector<1x128x128xf32>
    %68 = vector.shape_cast %67 : vector<1x128x128xf32> to vector<128x128xf32>
    %cst_42 = arith.constant dense<0.000000e+00> : vector<8x128xf32>
    %69 = tpu.matmul %39, %68, %cst_42 {dimension_numbers = #tpu.dot_dimension_numbers<[1], [0], [0], [1], [0, 0, 1, 1], [], []>, precision = #tpu.contract_precision<fp32>} : vector<8x128xf32>, vector<128x128xf32>, vector<8x128xf32> -> vector<8x128xf32>
    %70 = arith.addf %69, %65 : vector<8x128xf32>
    %71 = arith.index_cast %c1_i32 : i32 to index
    %c0_43 = arith.constant 0 : index
    %c0_44 = arith.constant 0 : index
    %72 = vector.load %arg10[%71, %c0_43, %c0_44] : memref<2x1x128xf32, #tpu.memory_space<vmem>>, vector<1x1x128xf32>
    %73 = vector.shape_cast %72 : vector<1x1x128xf32> to vector<1x128xf32>
    %74 = vector.broadcast %73 : vector<1x128xf32> to vector<8x128xf32>
    %75 = arith.addf %70, %74 : vector<8x128xf32>
    %cst_45 = arith.constant 0.000000e+00 : f32
    %76 = vector.broadcast %cst_45 : f32 to vector<8x128xf32>
    %77 = arith.maximumf %75, %76 : vector<8x128xf32>
    %78 = tpu.concatenate %51, %53, %54 in 1 : vector<16x128xf32>, vector<16x128xf32>, vector<16x128xf32> -> vector<16x384xf32>
    %79 = arith.index_cast %c1_i32 : i32 to index
    %c0_46 = arith.constant 0 : index
    %c0_47 = arith.constant 0 : index
    %80 = vector.load %arg11[%79, %c0_46, %c0_47] : memref<2x384x128xf32, #tpu.memory_space<vmem>>, vector<1x384x128xf32>
    %81 = vector.shape_cast %80 : vector<1x384x128xf32> to vector<384x128xf32>
    %cst_48 = arith.constant dense<0.000000e+00> : vector<16x128xf32>
    %82 = tpu.matmul %78, %81, %cst_48 {dimension_numbers = #tpu.dot_dimension_numbers<[1], [0], [0], [1], [0, 0, 1, 1], [], []>, precision = #tpu.contract_precision<fp32>} : vector<16x384xf32>, vector<384x128xf32>, vector<16x128xf32> -> vector<16x128xf32>
    %83 = arith.index_cast %c1_i32 : i32 to index
    %c0_49 = arith.constant 0 : index
    %c0_50 = arith.constant 0 : index
    %84 = vector.load %arg12[%83, %c0_49, %c0_50] : memref<2x1x128xf32, #tpu.memory_space<vmem>>, vector<1x1x128xf32>
    %85 = vector.shape_cast %84 : vector<1x1x128xf32> to vector<1x128xf32>
    %86 = vector.broadcast %85 : vector<1x128xf32> to vector<16x128xf32>
    %87 = arith.addf %82, %86 : vector<16x128xf32>
    %cst_51 = arith.constant 0.000000e+00 : f32
    %88 = vector.broadcast %cst_51 : f32 to vector<16x128xf32>
    %89 = arith.maximumf %87, %88 : vector<16x128xf32>
    %c2_i32 = arith.constant 2 : i32
    %c0_52 = arith.constant 0 : index
    %c0_53 = arith.constant 0 : index
    %90 = vector.load %arg13[%c0_52, %c0_53] : memref<128x128xf32, #tpu.memory_space<vmem>>, vector<128x128xf32>
    %cst_54 = arith.constant dense<0.000000e+00> : vector<8x128xf32>
    %91 = tpu.matmul %77, %90, %cst_54 {dimension_numbers = #tpu.dot_dimension_numbers<[1], [0], [0], [1], [0, 0, 1, 1], [], []>, precision = #tpu.contract_precision<fp32>} : vector<8x128xf32>, vector<128x128xf32>, vector<8x128xf32> -> vector<8x128xf32>
    %c0_55 = arith.constant 0 : index
    %c0_56 = arith.constant 0 : index
    %92 = vector.load %arg14[%c0_55, %c0_56] : memref<1x128xf32, #tpu.memory_space<vmem>>, vector<1x128xf32>
    %93 = vector.broadcast %92 : vector<1x128xf32> to vector<8x128xf32>
    %94 = arith.addf %91, %93 : vector<8x128xf32>
    %c0_57 = arith.constant 0 : index
    %c0_58 = arith.constant 0 : index
    %95 = vector.load %arg15[%c0_57, %c0_58] : memref<8x128xf32, #tpu.memory_space<vmem>>, vector<8x128xf32>
    tpu.vector_store %arg15[%c0_57, %c0_58], %94 {strides = array<i32>} : memref<8x128xf32, #tpu.memory_space<vmem>>, vector<8x128xf32>,
    return
  }
}

</mosaic_0001>

<bundles_post_ra>
// kernel: tpu_custom_call.1
= control target key start
LH: loop header
LB: loop body
LE: loop exit
PB: predicated region body
PF: predicated region fallthrough
CT: control target
= control target key end

     0   :  { %20 = vsyncpa [#allocation3], 0  ;;  %s7025_s0 = inlined_call_operand.vmem [shape: f32[8,4], index: 0, kind: input, shape index: {}]   ;;  %s7026_s1 = inlined_call_operand.vmem [shape: f32[16,4], index: 1, kind: input, shape index: {}]   ;;  %s7027_s2 = inlined_call_operand.vmem [shape: f32[32,8], index: 2, kind: input, shape index: {}]   ;;  %s7028_s3 = inlined_call_operand.vmem [shape: f32[8,16], index: 3, kind: input, shape index: {}]   ;;  %s7029_s4 = inlined_call_operand.vmem [shape: f32[4,128], index: 4, kind: input, shape index: {}]   ;;  %s7030_s5 = inlined_call_operand.vmem [shape: f32[1,128], index: 5, kind: input, shape index: {}]   ;;  %s7031_s6 = inlined_call_operand.vmem [shape: f32[4,128], index: 6, kind: input, shape index: {}]   ;;  %s7032_s7 = inlined_call_operand.vmem [shape: f32[1,128], index: 7, kind: input, shape index: {}]   ;;  %s7033_s8 = inlined_call_operand.hbm [shape: f32[2,128,128], index: 8, kind: input, shape index: {}]   ;;  %s7034_s9 = inlined_call_operand.hbm [shape: f32[2,128,128], index: 9, kind: input, shape index: {}]   ;;  %s7035_s10 = inlined_call_operand.vmem [shape: f32[2,1,128], index: 10, kind: input, shape index: {}]   ;;  %s7036_s11 = inlined_call_operand.hbm [shape: f32[2,384,128], index: 11, kind: input, shape index: {}]   ;;  %s7037_s12 = inlined_call_operand.vmem [shape: f32[2,1,128], index: 12, kind: input, shape index: {}]   ;;  %s7038_s13 = inlined_call_operand.hbm [shape: f32[128,128], index: 13, kind: input, shape index: {}]   ;;  %s7039_s14 = inlined_call_operand.vmem [shape: f32[1,128], index: 14, kind: input, shape index: {}]   ;;  %s7040_s15 = inlined_call_operand.hbm [shape: f32[8,128], index: 15, kind: output, shape index: {}]  }
   0x1   :  { %21 = vsyncpa [#allocation6], 0 }
   0x2   :  { %22 = vsyncpa [#allocation9], 0 }
   0x3   :  { %23 = vsyncpa [#allocation4], 0  ;;  %s57_s20 = sshll.u32 %s7034_s9, 4  ;;  %s4571_s21 = smov [#allocation5]   ;;  %s58_s20 = int_to_ptr.hbm [resolvable:$true] %s57_s20 }
   0x4   :  { %s59_s22 = sshll.u32 %s4571_s21, 4  ;;  %s44_s25 = sshll.u32 %s7033_s8, 4  ;;  %s60_s22 = int_to_ptr.vmem [resolvable:$true] %s59_s22  ;;  %s45_s25 = int_to_ptr.hbm [resolvable:$true] %s44_s25 }
   0x5   :  { %s4572_s26 = smov 128   ;;  %s4573_s27 = smov 8  }
   0x6   :  { %65 = dma.hbm_to_vmem [thread:$0]  %s58_s20, 4096, %s60_s22, [#allocation6], %s4572_s26, %s4572_s26, %s4573_s27  }
   0x7   :  { %s4574_s28 = smov [#allocation2]   ;;  %s72_s17 = sshll.u32 %s7036_s11, 4  ;;  %s73_s17 = int_to_ptr.hbm [resolvable:$true] %s72_s17 }
   0x8   :  { %s46_s29 = sshll.u32 %s4574_s28, 4  ;;  %s87_s19 = sshll.u32 %s7038_s13, 4  ;;  %s47_s29 = int_to_ptr.vmem [resolvable:$true] %s46_s29  ;;  %s88_s19 = int_to_ptr.hbm [resolvable:$true] %s87_s19 }
   0x9   :  { %52 = dma.hbm_to_vmem [thread:$0]  %s45_s25, 4096, %s47_s29, [#allocation3], %s4572_s26, %s4572_s26, %s4573_s27  }
   0xa   :  { %s4575_s21 = smov [#allocation7]   ;;  %s4576_s8 = smov [#allocation8]  }
   0xb   :  { %s74_s23 = sshll.u32 %s4575_s21, 4  ;;  %s89_s20 = sshll.u32 %s4576_s8, 4  ;;  %s75_s23 = int_to_ptr.vmem [resolvable:$true] %s74_s23  ;;  %s90_s20 = int_to_ptr.vmem [resolvable:$true] %s89_s20 }
   0xc   :  { %80 = dma.hbm_to_vmem [thread:$0]  %s73_s17, 12288, %s75_s23, [#allocation6], %s4572_s26, %s4572_s26, %s4573_s27  }
   0xd   :  { %95 = dma.hbm_to_vmem [thread:$0]  %s88_s19, 2048, %s90_s20, [#allocation9], %s4572_s26, %s4572_s26, %s4573_s27  }
   0xe   :  { %4563 = dma.done.wait [#allocation3], 4096  }
   0xf   :  { %4564 = vsyncadd [#allocation3], 4294963200 }
  0x10   :  { %4565 = dma.done.wait [#allocation6], 16384  }
  0x11   :  { %4566 = vsyncadd [#allocation6], 4294950912 }
  0x12   :  { %4567 = dma.done.wait [#allocation9], 2048  }
  0x13   :  { %4568 = vsyncadd [#allocation9], 4294965248  ;;  %vm124_vm0 = vcmask 1043456   ;;  %vm120_vm1 = vcmask 31744   ;;  %v115_v0 = vld [vmem:[%s7029_s4] sm:$0xf] }
  0x14   :  { %v276_v1 = vld [vmem:[%s7031_s6] sm:$0xf]  ;;  %v126_v3 = vsel %vm124_vm0, %v115_v0, 0  ;;  %v275_v7 = vld [vmem:[%s7026_s1 + $0x8] sm:$0xff]  ;;  %vm472_vm2 = vcmask 64512   ;;  %v469_v51 = vld [vmem:[%s7027_s2 + $0x10] sm:$0xff] }
  0x15   :  { %v114_v2 = vld [vmem:[%s7025_s0] sm:$0xff]  ;;  %v288_v4 = vsel %vm124_vm0, %v276_v1, 0  ;;  %v143_v8 = vand.u32 4294901760, %v126_v3  ;;  %v285_v13 = vsel %vm120_vm1, %v275_v7, 0  ;;  %v468_v39 = vld [vmem:[%s7027_s2 + $0x8] sm:$0xff]  ;;  %v480_v58 = vsel %vm472_vm2, %v469_v51, 0 }
  0x16   :  { %v122_v5 = vsel %vm120_vm1, %v114_v2, 0  ;;  %v274_v6 = vld [vmem:[%s7026_s1] sm:$0xff]  ;;  %v305_v11 = vand.u32 4294901760, %v288_v4  ;;  %v315_v17 = vand.u32 4294901760, %v285_v13  ;;  %v477_v44 = vsel %vm472_vm2, %v468_v39, 0  ;;  %v470_v0 = vld [vmem:[%s7027_s2 + $0x18] sm:$0xff] }
  0x17   :  { %v145_v9 = vand.u32 4294901760, %v122_v5  ;;  %v282_v10 = vsel %vm120_vm1, %v274_v6, 0  ;;  %v170_v14 = vsub.f32 %v126_v3, %v143_v8  ;;  %144 = vmatpush.msra.mxu0 %v143_v8  ;;  %220 = vmatpush.msra.mxu3 %v143_v8  ;;  %v467_v35 = vld [vmem:[%s7027_s2] sm:$0xff]  ;;  %v4704_v49 = vand.u32 4294901760, %v477_v44  ;;  %s4397_s27 = sshll.u32 %s7040_s15, 4  ;;  %s4398_s27 = int_to_ptr.hbm [resolvable:$true] %s4397_s27 }
  0x18   :  { %v307_v12 = vand.u32 4294901760, %v282_v10  ;;  %v340_v16 = vsub.f32 %v288_v4, %v305_v11  ;;  %v316_v23 = vsub.f32 %v285_v13, %v315_v17  ;;  %v474_v36 = vsel %vm472_vm2, %v467_v35, 0  ;;  %v4421_v38 = vld [vmem:[%s7030_s5] ss:$0 sm:$0xff] }
  0x19   :  { %v146_v15 = vsub.f32 %v122_v5, %v145_v9  ;;  %197 = vmatpush.msra.mxu2 %v170_v14  ;;  %v171_v20 = vand.u32 4294901760, %v170_v14  ;;  %v4689_v37 = vand.u32 4294901760, %v474_v36  ;;  %7149 = vst [vmem:[#allocation18_spill] sm:$0xff] %v4704_v49  ;;  %v4712_v55 = vsub.f32 %v477_v44, %v4704_v49 }
  0x1a   :  { %v308_v18 = vsub.f32 %v282_v10, %v307_v12  ;;  %v341_v21 = vand.u32 4294901760, %v340_v16  ;;  %v317_v32 = vand.u32 4294901760, %v316_v23  ;;  %v4720_v62 = vand.u32 4294901760, %v480_v58 }
  0x1b   :  { %v147_v19 = vand.u32 4294901760, %v146_v15  ;;  %200 = vmatmul.f32.vlgmr.msra.gmra.mxu2 %v146_v15  ;;  %v172_v25 = vsub.f32 %v170_v14, %v171_v20  ;;  %246 = vmatpush.msrb.mxu0 %v171_v20  ;;  %7146 = vst [vmem:[#allocation15_spill] sm:$0xff] %v4689_v37  ;;  %v4698_v41 = vsub.f32 %v474_v36, %v4689_v37  ;;  %v4718_v61 = vand.u32 4294901760, %v4712_v55 }
  0x1c   :  { %v309_v22 = vand.u32 4294901760, %v308_v18  ;;  %v342_v26 = vsub.f32 %v340_v16, %v341_v21  ;;  %306 = vmatpush.msrb.mxu2 %v305_v11  ;;  %v318_v33 = vsub.f32 %v316_v23, %v317_v32  ;;  %7150 = vst [vmem:[#allocation19_spill] sm:$0xff] %v4712_v55  ;;  %v4737_v3 = vsub.f32 %v480_v58, %v4720_v62 }
  0x1d   :  { %v148_v24 = vsub.f32 %v146_v15, %v147_v19  ;;  %224 = vmatmul.f32.vlgmr.msra.gmra.mxu3 %v147_v19  ;;  %v173_v29 = vand.u32 4294901760, %v172_v25  ;;  %7147 = vst [vmem:[#allocation16_spill] sm:$0xff] %v4698_v41  ;;  %v4702_v48 = vand.u32 4294901760, %v4698_v41  ;;  %v513_v2 = vsub.f32 %v4712_v55, %v4718_v61  ;;  %v775_v25 = vld [vmem:[#allocation5 + $0x68] sm:$0xff] }
  0x1e   :  { %v310_v27 = vsub.f32 %v308_v18, %v309_v22  ;;  %v343_v30 = vand.u32 4294901760, %v342_v26  ;;  %431 = vmatpush.msra.mxu2 %v341_v21  ;;  %v319_v34 = vand.u32 4294901760, %v318_v33  ;;  %7152 = vst [vmem:[#allocation21_spill] sm:$0xff] %v4718_v61  ;;  %v483_v5 = vsel %vm472_vm2, %v470_v0, 0  ;;  %v769_v0 = vld [vmem:[#allocation5 + $0x38] sm:$0xff] }
  0x1f   :  { %v149_v28 = vand.u32 4294901760, %v148_v24  ;;  %174 = vmatpush.msra.mxu1 %v173_v29  ;;  %7148 = vst [vmem:[#allocation17_spill] sm:$0xff] %v4702_v48  ;;  %v505_v54 = vsub.f32 %v4698_v41, %v4702_v48  ;;  %v4748_v7 = vand.u32 4294901760, %v513_v2  ;;  %vm1152_vm5 = vcmask 130048  }
  0x20   :  { %v311_v31 = vand.u32 4294901760, %v310_v27  ;;  %176 = vmatmul.f32.vlgmr.msra.gmra.mxu1 %v145_v9  ;;  %344 = vmatpush.msrb.mxu3 %v343_v30  ;;  %7153 = vst [vmem:[#allocation22_spill] sm:$0xff] %v4720_v62  ;;  %v4811_v27 = vand.u32 4294901760, %v775_v25 }
  0x21   :  { %150 = vmatmul.f32.vlgmr.msra.gmra.mxu0 %v149_v28  ;;  %268 = vmatpush.msrb.mxu1 %v143_v8  ;;  %v4715_v60 = vand.u32 4294901760, %v505_v54  ;;  %7154 = vst [vmem:[#allocation23_spill] sm:$0xff] %v4737_v3  ;;  %v4751_v8 = vand.u32 4294901760, %v4737_v3  ;;  %v774_v28 = vld [vmem:[#allocation5 + $0x60] sm:$0xff] }
  0x22   :  { %371 = vmatpush.msra.mxu0 %v340_v16  ;;  %457 = vmatpush.msra.mxu3 %v305_v11  ;;  %7155 = vst [vmem:[#allocation24_spill] sm:$0xff] %v4748_v7  ;;  %v4817_v30 = vsub.f32 %v775_v25, %v4811_v27 }
  0x23   :  { %312 = vmatmul.f32.vlgmr.msrb.gmra.mxu2 %v311_v31  ;;  %399 = vmatpush.msra.mxu1 %v305_v11  ;;  %7151 = vst [vmem:[#allocation20_spill] sm:$0xff] %v4715_v60  ;;  %v521_v11 = vsub.f32 %v4737_v3, %v4751_v8  ;;  %v4819_v31 = vand.u32 4294901760, %v774_v28 }
  0x24   :  { %7156 = vst [vmem:[#allocation25_spill] sm:$0xff] %v4751_v8 }
  0x25   :  { %346 = vmatmul.f32.vlgmr.msrb.gmra.mxu3 %v307_v12  ;;  %v4768_v13 = vand.u32 4294901760, %v521_v11  ;;  %v4829_v35 = vsub.f32 %v774_v28, %v4819_v31  ;;  %v4875_v11 = vand.u32 4294901760, %v769_v0 }
  0x27   :  { %7159 = vst [vmem:[#allocation28_spill] sm:$0xff] %v4768_v13 }
  0x28   :  { %270 = vmatmul.f32.vlgmr.msrb.gmra.mxu1 %v145_v9 }
  0x29   :  { %248 = vmatmul.f32.vlgmr.msrb.gmra.mxu0 %v145_v9  ;;  %v4753_v9 = vand.u32 4294901760, %v483_v5 }
  0x2b   :  { %320 = vmatmul.f32.gmra.mxu2 %v319_v34  ;;  %7157 = vst [vmem:[#allocation26_spill] sm:$0xff] %v4753_v9  ;;  %v7050_v34 = vand.u32 4294901760, %v4817_v30 }
  0x2d   :  { %350 = vmatmul.f32.gmra.mxu3 %v315_v17 }
  0x30   :  { %403 = vmatmul.f32.vlgmr.msra.gmra.mxu1 %v309_v22 }
  0x31   :  { %374 = vmatmul.f32.vlgmr.msra.gmra.mxu0 %v308_v18 }
  0x33   :  { %433 = vmatmul.f32.vlgmr.msra.gmra.mxu2 %v307_v12 }
  0x35   :  { %459 = vmatmul.f32.vlgmr.msra.gmra.mxu3 %v307_v12  ;;  %v4763_v12 = vsub.f32 %v483_v5, %v4753_v9 }
  0x37   :  { %7158 = vst [vmem:[#allocation27_spill] sm:$0xff] %v4763_v12  ;;  %v4771_v14 = vand.u32 4294901760, %v4763_v12 }
  0x38   :  { %409 = vmatmul.f32.gmra.mxu1 %v317_v32  ;;  %v773_v32 = vld [vmem:[#allocation5 + $0x58] sm:$0xff] }
  0x39   :  { %379 = vmatmul.f32.gmra.mxu0 %v316_v23  ;;  %7160 = vst [vmem:[#allocation29_spill] sm:$0xff] %v4771_v14  ;;  %v529_v15 = vsub.f32 %v4763_v12, %v4771_v14  ;;  %v776_v23 = vld [vmem:[#allocation5 + $0x70] sm:$0xff]  ;;  %v4831_v36 = vand.u32 4294901760, %v773_v32 }
  0x3a   :  { %v4806_v24 = vand.u32 4294901760, %v776_v23 }
  0x3b   :  { %437 = vmatmul.f32.gmra.mxu2 %v315_v17  ;;  %v4779_v16 = vand.u32 4294901760, %v529_v15 }
  0x3c   :  { %v4809_v26 = vsub.f32 %v776_v23, %v4806_v24  ;;  %v4888_v23 = vsub.f32 %v769_v0, %v4875_v11 }
  0x3d   :  { %463 = vmatmul.f32.gmra.mxu3 %v315_v17  ;;  %7161 = vst [vmem:[#allocation30_spill] sm:$0xff] %v4779_v16  ;;  %v777_v17 = vld [vmem:[#allocation5 + $0x78] sm:$0xff] }
  0x3e   :  { %v4789_v18 = vand.u32 4294901760, %v777_v17  ;;  %v7052_v29 = vand.u32 4294901760, %v4809_v26 }
  0x40   :  { %v4792_v19 = vsub.f32 %v777_v17, %v4789_v18  ;;  %v836_v33 = vsub.f32 %v4809_v26, %v7052_v29  ;;  %v768_v17 = vld [vmem:[#allocation5 + $0x30] sm:$0xff] }
  0x41   :  { %v4890_v25 = vand.u32 4294901760, %v768_v17 }
  0x42   :  { %v7053_v20 = vand.u32 4294901760, %v4792_v19  ;;  %v837_v39 = vand.u32 4294901760, %v836_v33 }
  0x44   :  { %v830_v21 = vsub.f32 %v4792_v19, %v7053_v20 }
  0x46   :  { %v831_v22 = vand.u32 4294901760, %v830_v21 }
  0x9d   :  { %v177_v43 = vpop.f32.mrf.mxu1 }
  0x9e   :  { %v151_v40 = vpop.f32.mrf.mxu0  ;;  %v201_v45 = vpop.f32.mrf.mxu2 }
  0x9f   :  { %v152_v42 = vadd.f32 %v4421_v38, %v151_v40  ;;  %v772_v38 = vld [vmem:[#allocation5 + $0x50] sm:$0xff]  ;;  %v842_v40 = vsub.f32 %v4817_v30, %v7050_v34 }
  0xa0   :  { %v225_v47 = vpop.f32.mrf.mxu3  ;;  %v4845_v44 = vand.u32 4294901760, %v772_v38 }
  0xa1   :  { %v178_v46 = vadd.f32 %v177_v43, %v152_v42  ;;  %v7049_v42 = vand.u32 4294901760, %v4829_v35  ;;  %v4841_v43 = vsub.f32 %v773_v32, %v4831_v36  ;;  %v767_v32 = vld [vmem:[#allocation5 + $0x28] sm:$0xff] }
  0xa3   :  { %v202_v50 = vadd.f32 %v201_v45, %v178_v46  ;;  %v771_v45 = vld [vmem:[#allocation5 + $0x48] sm:$0xff]  ;;  %v843_v46 = vand.u32 4294901760, %v842_v40  ;;  %v4900_v40 = vsub.f32 %v768_v17, %v4890_v25 }
  0xa4   :  { %v4852_v51 = vand.u32 4294901760, %v771_v45 }
  0xa5   :  { %v226_v52 = vadd.f32 %v225_v47, %v202_v50  ;;  %v271_v57 = vpop.f32.mrf.mxu1  ;;  %v848_v47 = vsub.f32 %v4829_v35, %v7049_v42  ;;  %v7047_v50 = vand.u32 4294901760, %v4841_v43 }
  0xa6   :  { %v249_v53 = vpop.f32.mrf.mxu0  ;;  %v4965_v34 = vpop.f32.mrf.mxu2 }
  0xa7   :  { %v250_v56 = vadd.f32 %v249_v53, %v226_v52  ;;  %v4856_v52 = vsub.f32 %v772_v38, %v4845_v44  ;;  %v770_v53 = vld [vmem:[#allocation5 + $0x40] sm:$0xff]  ;;  %v849_v54 = vand.u32 4294901760, %v848_v47 }
  0xa8   :  { %v4866_v58 = vand.u32 4294901760, %v770_v53 }
  0xa9   :  { %v272_v59 = vadd.f32 %v271_v57, %v250_v56  ;;  %v854_v56 = vsub.f32 %v4841_v43, %v7047_v50  ;;  %v4864_v57 = vsub.f32 %v771_v45, %v4852_v51  ;;  %v4903_v45 = vand.u32 4294901760, %v767_v32 }
  0xab   :  { %v4722_v63 = vand.u32 4294901760, %v272_v59  ;;  %v855_v2 = vand.u32 4294901760, %v854_v56  ;;  %v7044_v5 = vand.u32 4294901760, %v4864_v57  ;;  %v4915_v0 = vsub.f32 %v767_v32, %v4903_v45 }
  0xad   :  { %v4728_v1 = vsub.f32 %v272_v59, %v4722_v63  ;;  %501 = vmatpush.msrb.mxu0 %v4722_v63  ;;  %628 = vmatpush.msrb.mxu3 %v4722_v63  ;;  %v7045_v59 = vand.u32 4294901760, %v4856_v52  ;;  %v866_v21 = vsub.f32 %v4864_v57, %v7044_v5  ;;  %v7046_v32 = vand.u32 4294901760, %v4915_v0 }
  0xae   :  { %507 = vmatmul.f32.vlgmr.msrb.gmra.mxu0 %v4715_v60  ;;  %632 = vmatmul.f32.vlgmr.msrb.gmra.mxu3 %v4702_v48 }
  0xaf   :  { %590 = vmatpush.msrb.mxu2 %v4728_v1  ;;  %v4741_v4 = vand.u32 4294901760, %v4728_v1  ;;  %832 = vmatpush.msra.mxu3 %v831_v22  ;;  %v860_v15 = vsub.f32 %v4856_v52, %v7045_v59  ;;  %v867_v33 = vand.u32 4294901760, %v866_v21 }
  0xb0   :  { %593 = vmatmul.f32.vlgmr.msrb.gmra.mxu2 %v4698_v41 }
  0xb1   :  { %672 = vmatpush.msra.mxu0 %v4741_v4  ;;  %v553_v6 = vsub.f32 %v4728_v1, %v4741_v4  ;;  %779 = vmatpush.msra.mxu2 %v4789_v18  ;;  %v861_v28 = vand.u32 4294901760, %v860_v15  ;;  %v4918_v15 = vpop.f32.mrf.mxu0 }
  0xb2   :  { %838 = vmatpush.msra.mxu3 %v837_v39  ;;  %v7041_v39 = vand.u32 4294901760, %v4888_v23 }
  0xb3   :  { %v4755_v10 = vand.u32 4294901760, %v553_v6  ;;  %934 = vmatpush.msrb.mxu0 %v4792_v19  ;;  %781 = vmatpush.msra.mxu2 %v4806_v24  ;;  %v4873_v6 = vsub.f32 %v770_v53, %v4866_v58 }
  0xb4   :  { %844 = vmatpush.msra.mxu3 %v843_v46  ;;  %v766_v46 = vld [vmem:[#allocation5 + $0x20] sm:$0xff]  ;;  %v878_v53 = vsub.f32 %v4888_v23, %v7041_v39 }
  0xb5   :  { %555 = vmatpush.msrb.mxu1 %v4755_v10  ;;  %783 = vmatpush.msra.mxu2 %v4811_v27  ;;  %v7043_v22 = vand.u32 4294901760, %v4873_v6  ;;  %v4910_v56 = vand.u32 4294901760, %v766_v46 }
  0xb6   :  { %515 = vmatmul.f32.gmra.mxu0 %v4748_v7  ;;  %557 = vmatmul.f32.vlgmr.msrb.gmra.mxu1 %v4689_v37  ;;  %v879_v17 = vand.u32 4294901760, %v878_v53 }
  0xb7   :  { %706 = vmatpush.msra.mxu1 %v4722_v63  ;;  %638 = vmatmul.f32.gmra.mxu3 %v4718_v61  ;;  %v872_v38 = vsub.f32 %v4873_v6, %v7043_v22  ;;  %v763_v22 = vld [vmem:[#allocation5 + $0x8] sm:$0xff] }
  0xb8   :  { %598 = vmatmul.f32.gmra.mxu2 %v4712_v55  ;;  %937 = vmatpush.msrb.mxu0 %v4809_v26  ;;  %v4951_v59 = vand.u32 4294901760, %v763_v22  ;;  %v1320_v55 = vld [vmem:[#allocation2 + $0x28] sm:$0xff] }
  0xb9   :  { %992 = vmatpush.msrb.mxu1 %v4789_v18  ;;  %785 = vmatpush.msra.mxu2 %v4819_v31  ;;  %v873_v47 = vand.u32 4294901760, %v872_v38  ;;  %v4980_v29 = vpop.f32.mrf.mxu0  ;;  %v5247_v7 = vand.u32 4294901760, %v1320_v55 }
  0xba   :  { %940 = vmatpush.msrb.mxu0 %v4817_v30  ;;  %850 = vmatpush.msra.mxu3 %v849_v54  ;;  %v7042_v54 = vand.u32 4294901760, %v4900_v40 }
  0xbb   :  { %994 = vmatpush.msrb.mxu1 %v4806_v24  ;;  %787 = vmatpush.msra.mxu2 %v4831_v36  ;;  %7208 = vst [vmem:[#allocation56_spill] sm:$0xff] %v5247_v7 }
  0xbc   :  { %943 = vmatpush.msrb.mxu0 %v4829_v35  ;;  %856 = vmatpush.msra.mxu3 %v855_v2  ;;  %v765_v2 = vld [vmem:[#allocation5 + $0x18] sm:$0xff]  ;;  %v884_v21 = vsub.f32 %v4900_v40, %v7042_v54 }
  0xbd   :  { %996 = vmatpush.msrb.mxu1 %v4811_v27  ;;  %789 = vmatpush.msra.mxu2 %v4845_v44  ;;  %v4926_v38 = vand.u32 4294901760, %v765_v2 }
  0xbe   :  { %523 = vmatmul.f32.gmra.mxu0 %v4768_v13  ;;  %561 = vmatmul.f32.gmra.mxu1 %v4704_v49  ;;  %v885_v53 = vand.u32 4294901760, %v884_v21 }
  0xbf   :  { %644 = vmatmul.f32.gmra.mxu3 %v4751_v8  ;;  %998 = vmatpush.msrb.mxu1 %v4819_v31  ;;  %v4934_v54 = vsub.f32 %v765_v2, %v4926_v38 }
  0xc0   :  { %603 = vmatmul.f32.gmra.mxu2 %v4737_v3  ;;  %946 = vmatpush.msrb.mxu0 %v4841_v43 }
  0xc1   :  { %1000 = vmatpush.msrb.mxu1 %v4831_v36  ;;  %791 = vmatpush.msra.mxu2 %v4852_v51  ;;  %v7051_v2 = vand.u32 4294901760, %v4934_v54 }
  0xc2   :  { %949 = vmatpush.msrb.mxu0 %v4856_v52  ;;  %862 = vmatpush.msra.mxu3 %v861_v28  ;;  %v4924_v28 = vsub.f32 %v766_v46, %v4910_v56 }
  0xc3   :  { %1002 = vmatpush.msrb.mxu1 %v4845_v44  ;;  %793 = vmatpush.msra.mxu2 %v4866_v58 }
  0xc4   :  { %952 = vmatpush.msrb.mxu0 %v4864_v57  ;;  %868 = vmatpush.msra.mxu3 %v867_v33  ;;  %v764_v33 = vld [vmem:[#allocation5 + $0x10] sm:$0xff]  ;;  %v7048_v39 = vand.u32 4294901760, %v4924_v28 }
  0xc5   :  { %1004 = vmatpush.msrb.mxu1 %v4852_v51  ;;  %795 = vmatpush.msra.mxu2 %v4875_v11  ;;  %v4936_v46 = vand.u32 4294901760, %v764_v33 }
  0xc6   :  { %531 = vmatmul.f32.gmra.mxu0 %v4779_v16  ;;  %565 = vmatmul.f32.gmra.mxu1 %v4720_v62  ;;  %v896_v21 = vsub.f32 %v4924_v28, %v7048_v39  ;;  %v902_v39 = vsub.f32 %v4934_v54, %v7051_v2 }
  0xc7   :  { %650 = vmatmul.f32.gmra.mxu3 %v4771_v14  ;;  %1006 = vmatpush.msrb.mxu1 %v4866_v58  ;;  %v4949_v5 = vsub.f32 %v764_v33, %v4936_v46  ;;  %v4961_v33 = vsub.f32 %v763_v22, %v4951_v59 }
  0xc8   :  { %608 = vmatmul.f32.gmra.mxu2 %v4763_v12  ;;  %955 = vmatpush.msrb.mxu0 %v4873_v6  ;;  %v897_v50 = vand.u32 4294901760, %v896_v21  ;;  %v903_v21 = vand.u32 4294901760, %v902_v39 }
  0xc9   :  { %1008 = vmatpush.msrb.mxu1 %v4875_v11  ;;  %797 = vmatpush.msra.mxu2 %v4890_v25  ;;  %v7056_v42 = vand.u32 4294901760, %v4949_v5  ;;  %v913_v22 = vand.u32 4294901760, %v4961_v33 }
  0xca   :  { %958 = vmatpush.msrb.mxu0 %v4888_v23  ;;  %874 = vmatpush.msra.mxu3 %v873_v47  ;;  %v890_v47 = vsub.f32 %v4915_v0, %v7046_v32  ;;  %v762_v32 = vld [vmem:[#allocation5] sm:$0xff] }
  0xcb   :  { %1010 = vmatpush.msrb.mxu1 %v4890_v25  ;;  %799 = vmatpush.msra.mxu2 %v4903_v45  ;;  %v908_v2 = vsub.f32 %v4949_v5, %v7056_v42  ;;  %v914_v39 = vsub.f32 %v4961_v33, %v913_v22  ;;  %v4986_v42 = vpop.f32.mrf.mxu3 }
  0xcc   :  { %961 = vmatpush.msrb.mxu0 %v4900_v40  ;;  %880 = vmatpush.msra.mxu3 %v879_v17  ;;  %v891_v17 = vand.u32 4294901760, %v890_v47  ;;  %v4970_v47 = vpop.f32.mrf.mxu1 }
  0xcd   :  { %1012 = vmatpush.msrb.mxu1 %v4903_v45  ;;  %801 = vmatpush.msra.mxu2 %v4910_v56  ;;  %v909_v20 = vand.u32 4294901760, %v908_v2 }
  0xce   :  { %569 = vmatmul.f32.gmra.mxu1 %v4753_v9  ;;  %674 = vmatmul.f32.vlgmr.msra.gmra.mxu0 %v4689_v37 }
  0xcf   :  { %964 = vmatpush.msrb.mxu0 %v4915_v0  ;;  %1014 = vmatpush.msrb.mxu1 %v4910_v56 }
  0xd0   :  { %803 = vmatpush.msra.mxu2 %v4926_v38  ;;  %886 = vmatpush.msra.mxu3 %v885_v53  ;;  %v4967_v53 = vand.u32 4294901760, %v762_v32 }
  0xd1   :  { %967 = vmatpush.msrb.mxu0 %v4924_v28  ;;  %1016 = vmatpush.msrb.mxu1 %v4926_v38 }
  0xd2   :  { %805 = vmatpush.msra.mxu2 %v4936_v46  ;;  %892 = vmatpush.msra.mxu3 %v891_v17  ;;  %v918_v17 = vsub.f32 %v762_v32, %v4967_v53  ;;  %v7163_v32 = vand.u32 4294901760, %v4809_v26  ;;  %v7166_v26 = vand.u32 4294901760, %v4841_v43 }
  0xd3   :  { %970 = vmatpush.msrb.mxu0 %v4934_v54  ;;  %1018 = vmatpush.msrb.mxu1 %v4936_v46 }
  0xd4   :  { %807 = vmatpush.msra.mxu2 %v4951_v59  ;;  %898 = vmatpush.msra.mxu3 %v897_v50  ;;  %v919_v12 = vand.u32 4294901760, %v918_v17  ;;  %v915_v50 = vand.u32 4294901760, %v914_v39 }
  0xd5   :  { %973 = vmatpush.msrb.mxu0 %v4949_v5  ;;  %1020 = vmatpush.msrb.mxu1 %v4951_v59 }
  0xd6   :  { %678 = vmatmul.f32.gmra.mxu0 %v4704_v49  ;;  %708 = vmatmul.f32.vlgmr.msra.gmra.mxu1 %v4689_v37  ;;  %v920_v2 = vsub.f32 %v918_v17, %v919_v12  ;;  %v1693_v37 = vld [vmem:[#allocation7 + $0x78] sm:$0xff] }
  0xd7   :  { %809 = vmatpush.msra.mxu2 %v4967_v53  ;;  %976 = vmatpush.msrb.mxu0 %v4961_v33  ;;  %v4995_v33 = vpop.f32.mrf.mxu2  ;;  %v5252_v41 = vand.u32 4294901760, %v1693_v37 }
  0xd8   :  { %904 = vmatpush.msra.mxu3 %v903_v21  ;;  %1022 = vmatpush.msrb.mxu1 %v4967_v53  ;;  %v4997_v21 = vpop.f32.mrf.mxu1 }
  0xd9   :  { %979 = vmatpush.msrb.mxu0 %v918_v17 }
  0xda   :  { %910 = vmatpush.msra.mxu3 %v909_v20  ;;  %v5005_v20 = vpop.f32.mrf.mxu3 }
  0xdc   :  { %916 = vmatpush.msra.mxu3 %v915_v50 }
  0xde   :  { %682 = vmatmul.f32.gmra.mxu0 %v4720_v62  ;;  %712 = vmatmul.f32.gmra.mxu1 %v4704_v49 }
  0xe6   :  { %686 = vmatmul.f32.gmra.mxu0 %v4753_v9  ;;  %716 = vmatmul.f32.gmra.mxu1 %v4720_v62  ;;  %v7164_v62 = vand.u32 4294901760, %v4817_v30  ;;  %v7168_v30 = vand.u32 4294901760, %v4864_v57  ;;  %v5024_v57 = vpop.f32.mrf.mxu3 }
  0xee   :  { %720 = vmatmul.f32.gmra.mxu1 %v4753_v9  ;;  %v7162_v9 = vand.u32 4294901760, %v4792_v19  ;;  %v7165_v19 = vand.u32 4294901760, %v4829_v35  ;;  %v7169_v35 = vand.u32 4294901760, %v4873_v6 }
  0xf0   :  { %1039 = vmatpush.msrb.mxu2 %v7162_v9  ;;  %v921_v9 = vand.u32 4294901760, %v920_v2 }
  0xf2   :  { %1043 = vmatpush.msrb.mxu2 %v7163_v32  ;;  %922 = vmatpush.msra.mxu3 %v921_v9 }
  0xf4   :  { %1047 = vmatpush.msrb.mxu2 %v7164_v62  ;;  %1110 = vmatpush.msrb.mxu3 %v4789_v18  ;;  %v7167_v62 = vand.u32 4294901760, %v4856_v52  ;;  %v5016_v52 = vpop.f32.mrf.mxu2 }
  0xf6   :  { %1051 = vmatpush.msrb.mxu2 %v7165_v19  ;;  %1112 = vmatpush.msrb.mxu3 %v4806_v24  ;;  %v7170_v24 = vand.u32 4294901760, %v4888_v23 }
  0xf8   :  { %1055 = vmatpush.msrb.mxu2 %v7166_v26  ;;  %1114 = vmatpush.msrb.mxu3 %v4811_v27  ;;  %v7171_v27 = vand.u32 4294901760, %v4900_v40 }
  0xfa   :  { %1059 = vmatpush.msrb.mxu2 %v7167_v62  ;;  %1116 = vmatpush.msrb.mxu3 %v4819_v31  ;;  %v7172_v31 = vand.u32 4294901760, %v4915_v0 }
  0xfc   :  { %1063 = vmatpush.msrb.mxu2 %v7168_v30  ;;  %1118 = vmatpush.msrb.mxu3 %v4831_v36  ;;  %v7173_v36 = vand.u32 4294901760, %v4924_v28  ;;  %v5037_v40 = vpop.f32.mrf.mxu2 }
  0xfe   :  { %1067 = vmatpush.msrb.mxu2 %v7169_v35  ;;  %1120 = vmatpush.msrb.mxu3 %v4845_v44  ;;  %v7175_v44 = vand.u32 4294901760, %v4934_v54 }
 0x100   :  { %1071 = vmatpush.msrb.mxu2 %v7170_v24  ;;  %1122 = vmatpush.msrb.mxu3 %v4852_v51  ;;  %v7176_v51 = vand.u32 4294901760, %v4949_v5 }
 0x102   :  { %1075 = vmatpush.msrb.mxu2 %v7171_v27  ;;  %1124 = vmatpush.msrb.mxu3 %v4866_v58  ;;  %v464_v58 = vpop.f32.mrf.mxu3 }
 0x104   :  { %1079 = vmatpush.msrb.mxu2 %v7172_v31  ;;  %1126 = vmatpush.msrb.mxu3 %v4875_v11 }
 0x106   :  { %1083 = vmatpush.msrb.mxu2 %v7173_v36  ;;  %1128 = vmatpush.msrb.mxu3 %v4890_v25 }
 0x108   :  { %1087 = vmatpush.msrb.mxu2 %v7175_v44  ;;  %1130 = vmatpush.msrb.mxu3 %v4903_v45 }
 0x10a   :  { %1091 = vmatpush.msrb.mxu2 %v7176_v51  ;;  %1132 = vmatpush.msrb.mxu3 %v4910_v56 }
 0x10c   :  { %1095 = vmatpush.msrb.mxu2 %v913_v22  ;;  %1134 = vmatpush.msrb.mxu3 %v4926_v38 }
 0x10e   :  { %1099 = vmatpush.msrb.mxu2 %v919_v12  ;;  %1136 = vmatpush.msrb.mxu3 %v4936_v46 }
 0x110   :  { %1138 = vmatpush.msrb.mxu3 %v4951_v59 }
 0x112   :  { %1140 = vmatpush.msrb.mxu3 %v4967_v53 }
 0x12b   :  { %v508_v39 = vpop.f32.mrf.mxu0 }
 0x131   :  { %v633_v45 = vpop.f32.mrf.mxu3 }
 0x133   :  { %v516_v18 = vpop.f32.mrf.mxu0  ;;  %v558_v43 = vpop.f32.mrf.mxu1 }
 0x134   :  { %v594_v25 = vpop.f32.mrf.mxu2  ;;  %v559_v5 = vadd.f32 %v558_v43, %v508_v39 }
 0x136   :  { %v595_v56 = vadd.f32 %v594_v25, %v559_v5 }
 0x138   :  { %v634_v28 = vadd.f32 %v633_v45, %v595_v56 }
 0x13a   :  { %v639_v9 = vpop.f32.mrf.mxu3 }
 0x13b   :  { %v5029_v6 = vpop.f32.mrf.mxu0  ;;  %v562_v23 = vpop.f32.mrf.mxu1 }
 0x13c   :  { %7174 = vst [vmem:[#allocation31_spill] sm:$0xff] %v5029_v6  ;;  %v563_v22 = vadd.f32 %v562_v23, %v516_v18  ;;  %v599_v17 = vpop.f32.mrf.mxu2  ;;  %v4422_v23 = vld [vmem:[%s7032_s7] ss:$0 sm:$0xff] }
 0x13d   :  { %v314_v44 = vadd.f32 %v4422_v23, %v4965_v34  ;;  %v322_v25 = vadd.f32 %v4422_v23, %v4995_v33 }
 0x13e   :  { %v600_v2 = vadd.f32 %v599_v17, %v563_v22 }
 0x13f   :  { %v348_v51 = vadd.f32 %v4986_v42, %v314_v44  ;;  %v352_v45 = vadd.f32 %v5005_v20, %v322_v25 }
 0x140   :  { %v640_v59 = vadd.f32 %v639_v9, %v600_v2 }
 0x141   :  { %v376_v5 = vadd.f32 %v4918_v15, %v348_v51 }
 0x142   :  { %v5106_v15 = vpop.f32.mrf.mxu3 }
 0x143   :  { %v5041_v0 = vpop.f32.mrf.mxu0  ;;  %v5043_v11 = vpop.f32.mrf.mxu1  ;;  %v405_v56 = vadd.f32 %v4970_v47, %v376_v5  ;;  %7188 = vst [vmem:[#allocation43_spill] sm:$0xff] %v5106_v15  ;;  %v1315_v15 = vld [vmem:[#allocation2] sm:$0xff] }
 0x144   :  { %7177 = vst [vmem:[#allocation32_spill] sm:$0xff] %v5041_v0  ;;  %v5109_v20 = vpop.f32.mrf.mxu2 }
 0x145   :  { %7178 = vst [vmem:[#allocation33_spill] sm:$0xff] %v5043_v11 }
 0x146   :  { %7189 = vst [vmem:[#allocation44_spill] sm:$0xff] %v5109_v20  ;;  %v1687_v20 = vld [vmem:[#allocation7 + $0x48] sm:$0xff] }
 0x14b   :  { %v5049_v54 = vpop.f32.mrf.mxu1  ;;  %v675_v12 = vpop.f32.mrf.mxu0 }
 0x14c   :  { %7179 = vst [vmem:[#allocation34_spill] sm:$0xff] %v5049_v54  ;;  %v676_v50 = vadd.f32 %v675_v12, %v634_v28  ;;  %v381_v12 = vadd.f32 %v4980_v29, %v352_v45  ;;  %v435_v28 = vadd.f32 %v5016_v52, %v405_v56  ;;  %v471_v45 = vld [vmem:[%s7028_s3] sm:$0xff] }
 0x14e   :  { %v411_v22 = vadd.f32 %v4997_v21, %v381_v12  ;;  %v5100_v17 = vadd.f32 %v5024_v57, %v435_v28  ;;  %v5111_v21 = vpop.f32.mrf.mxu3 }
 0x14f   :  { %7190 = vst [vmem:[#allocation45_spill] sm:$0xff] %v5111_v21  ;;  %v1690_v21 = vld [vmem:[#allocation7 + $0x60] sm:$0xff] }
 0x150   :  { %v439_v34 = vadd.f32 %v5037_v40, %v411_v22  ;;  %v4409_v42 = vmul.f32 -1.442695, %v5100_v17  ;;  %v5115_v40 = vpop.f32.mrf.mxu2  ;;  %v5301_v54 = vand.u32 4294901760, %v1690_v21 }
 0x151   :  { %7192 = vst [vmem:[#allocation47_spill] sm:$0xff] %v5115_v40  ;;  %v1316_v40 = vld [vmem:[#allocation2 + $0x8] sm:$0xff] }
 0x152   :  { %v5104_v33 = vadd.f32 %v464_v58, %v439_v34  ;;  %4427 = vpow2.f32 %v4409_v42  ;;  %v5334_v11 = vsub.f32 %v1690_v21, %v5301_v54 }
 0x153   :  { %v709_v32 = vpop.f32.mrf.mxu1  ;;  %v679_v19 = vpop.f32.mrf.mxu0 }
 0x154   :  { %v710_v38 = vadd.f32 %v709_v32, %v676_v50  ;;  %v680_v53 = vadd.f32 %v679_v19, %v640_v59  ;;  %v4410_v47 = vmul.f32 -1.442695, %v5104_v33  ;;  %7222 = vst [vmem:[#allocation64_spill] sm:$0xff] %v5334_v11 }
 0x156   :  { %v5051_v46 = vand.u32 4294901760, %v710_v38  ;;  %4429 = vpow2.f32 %v4410_v47  ;;  %v1154_v47 = vsel %vm1152_vm5, %v471_v45, 0 }
 0x157   :  { %v5132_v16 = vand.u32 4294901760, %v1154_v47 }
 0x158   :  { %7180 = vst [vmem:[#allocation35_spill] sm:$0xff] %v5051_v46  ;;  %v5054_v39 = vsub.f32 %v710_v38, %v5051_v46  ;;  %924 = vmatmul.f32.vlgmr.msra.gmra.mxu3 %v5051_v46  ;;  %v4428_v29 = vpop.eup %4427 }
 0x159   :  { %v730_v52 = vadd.f32 1.0, %v4428_v29  ;;  %7198 = vst [vmem:[#allocation51_spill] sm:$0xff] %v5132_v16 }
 0x15a   :  { %7181 = vst [vmem:[#allocation36_spill] sm:$0xff] %v5054_v39  ;;  %982 = vmatmul.f32.vlgmr.msrb.gmra.mxu0 %v5054_v39  ;;  %v5059_v26 = vand.u32 4294901760, %v5054_v39 }
 0x15b   :  { %v713_v62 = vpop.f32.mrf.mxu1  ;;  %v5113_v57 = vpop.f32.mrf.mxu0  ;;  %4431 = vrcp.f32 %v730_v52  ;;  %vm737_vm3 = vweird.f32 %v730_v52  ;;  %v743_v12 = vand.u32 2147483648, %v730_v52  ;;  %v741_v34 = vand.u32 2147483647, %v730_v52 }
 0x15c   :  { %7182 = vst [vmem:[#allocation37_spill] sm:$0xff] %v5059_v26  ;;  %v714_v30 = vadd.f32 %v713_v62, %v680_v53  ;;  %1026 = vmatmul.f32.vlgmr.msrb.gmra.mxu1 %v5059_v26  ;;  %v813_v35 = vsub.f32 %v5054_v39, %v5059_v26  ;;  %v4430_v50 = vpop.eup %4429 }
 0x15d   :  { %7191 = vst [vmem:[#allocation46_spill] sm:$0xff] %v5113_v57  ;;  %v731_v32 = vadd.f32 1.0, %v4430_v50  ;;  %vm742_vm7 = vcmp.eq.f32.partialorder %v741_v34, 8.507059e+37 }
 0x15e   :  { %v5064_v18 = vand.u32 4294901760, %v714_v30  ;;  %v5066_v43 = vand.u32 4294901760, %v813_v35 }
 0x15f   :  { %4433 = vrcp.f32 %v731_v32  ;;  %vm752_vm8 = vweird.f32 %v731_v32 }
 0x160   :  { %7183 = vst [vmem:[#allocation38_spill] sm:$0xff] %v5064_v18  ;;  %v5069_v24 = vsub.f32 %v714_v30, %v5064_v18  ;;  %815 = vmatmul.f32.vlgmr.msra.gmra.mxu2 %v5066_v43  ;;  %928 = vmatmul.f32.gmra.mxu3 %v5064_v18 }
 0x161   :  { %7184 = vst [vmem:[#allocation39_spill] sm:$0xff] %v5066_v43  ;;  %v4432_v38 = vpop.eup %4431 }
 0x162   :  { %7185 = vst [vmem:[#allocation40_spill] sm:$0xff] %v5069_v24  ;;  %987 = vmatmul.f32.gmra.mxu0 %v5069_v24  ;;  %v5075_v27 = vand.u32 4294901760, %v5069_v24  ;;  %v733_v59 = vmul.f32 %v4432_v38, %v730_v52  ;;  %vm738_vm4 = vweird.f32 %v4432_v38 }
 0x163   :  { %v5117_v58 = vpop.f32.mrf.mxu1  ;;  %v5119_v9 = vpop.f32.mrf.mxu0  ;;  %vm5126_vm6 = vmor %vm737_vm3, %vm738_vm4 }
 0x164   :  { %7186 = vst [vmem:[#allocation41_spill] sm:$0xff] %v5075_v27  ;;  %1032 = vmatmul.f32.gmra.mxu1 %v5075_v27  ;;  %v821_v31 = vsub.f32 %v5069_v24, %v5075_v27  ;;  %v734_v30 = vsub.f32 1.0, %v733_v59  ;;  %v1688_v24 = vld [vmem:[#allocation7 + $0x50] sm:$0xff]  ;;  %v5331_v27 = vand.u32 4294901760, %v1316_v40 }
 0x165   :  { %7193 = vst [vmem:[#allocation48_spill] sm:$0xff] %v5117_v58  ;;  %v4434_v62 = vpop.eup %4433 }
 0x166   :  { %v5080_v36 = vand.u32 4294901760, %v821_v31  ;;  %7194 = vst [vmem:[#allocation49_spill] sm:$0xff] %v5119_v9  ;;  %v748_v51 = vmul.f32 %v4434_v62, %v731_v32  ;;  %v735_v25 = vmul.f32 %v4432_v38, %v734_v30  ;;  %vm753_vm9 = vweird.f32 %v4434_v62 }
 0x167   :  { %vm5134_vm10 = vmor %vm752_vm8, %vm753_vm9  ;;  %7221 = vst [vmem:[#allocation63_spill] sm:$0xff] %v5331_v27  ;;  %v5348_v21 = vsub.f32 %v1316_v40, %v5331_v27 }
 0x168   :  { %7187 = vst [vmem:[#allocation42_spill] sm:$0xff] %v5080_v36  ;;  %823 = vmatmul.f32.gmra.mxu2 %v5080_v36  ;;  %1142 = vmatmul.f32.vlgmr.msrb.gmra.mxu3 %v5051_v46  ;;  %v749_v28 = vsub.f32 1.0, %v748_v51  ;;  %v736_v22 = vadd.f32 %v4432_v38, %v735_v25 }
 0x16a   :  { %v750_v30 = vmul.f32 %v4434_v62, %v749_v28 }
 0x16b   :  { %v5121_v53 = vpop.f32.mrf.mxu1 }
 0x16c   :  { %7195 = vst [vmem:[#allocation50_spill] sm:$0xff] %v5121_v53  ;;  %v751_v45 = vadd.f32 %v4434_v62, %v750_v30  ;;  %v1318_v53 = vld [vmem:[#allocation2 + $0x18] sm:$0xff] }
 0x16d   :  { %v5288_v9 = vand.u32 4294901760, %v1318_v53 }
 0x16f   :  { %7214 = vst [vmem:[#allocation59_spill] sm:$0xff] %v5288_v9 }
 0x170   :  { %1101 = vmatmul.f32.vlgmr.msrb.gmra.mxu2 %v5051_v46  ;;  %1146 = vmatmul.f32.gmra.mxu3 %v5064_v18 }
 0x178   :  { %1105 = vmatmul.f32.gmra.mxu2 %v5064_v18  ;;  %v1317_v18 = vld [vmem:[#allocation2 + $0x10] sm:$0xff] }
 0x1d7   :  { %v983_v23 = vpop.f32.mrf.mxu0 }
 0x1d9   :  { %v1027_v56 = vpop.f32.mrf.mxu1 }
 0x1db   :  { %v925_v2 = vpop.f32.mrf.mxu3 }
 0x1df   :  { %v988_v51 = vpop.f32.mrf.mxu0 }
 0x1e3   :  { %v816_v19 = vpop.f32.mrf.mxu2  ;;  %v929_v35 = vpop.f32.mrf.mxu3 }
 0x1e4   :  { %v926_v31 = vadd.f32 %v925_v2, %v816_v19  ;;  %v744_v19 = vor.u32 1.1754944e-38, %v743_v12  ;;  %v1033_v12 = vpop.f32.mrf.mxu1 }
 0x1e6   :  { %v984_v5 = vadd.f32 %v983_v23, %v926_v31  ;;  %v740_v31 = vsel %vm5126_vm6, %v4432_v38, %v736_v22  ;;  %v5139_v38 = vsub.f32 %v1154_v47, %v5132_v16  ;;  %v755_v22 = vsel %vm5134_vm10, %v4434_v62, %v751_v45 }
 0x1e7   :  { %v745_v14 = vsel %vm742_vm7, %v744_v19, %v740_v31 }
 0x1e8   :  { %v1028_v50 = vadd.f32 %v1027_v56, %v984_v5  ;;  %v756_v56 = vand.u32 2147483647, %v731_v32  ;;  %7201 = vst [vmem:[#allocation52_spill] sm:$0xff] %v5139_v38 }
 0x1ea   :  { %vm757_vm11 = vcmp.eq.f32.partialorder %v756_v56, 8.507059e+37  ;;  %v1328_v56 = vld [vmem:[#allocation2 + $0x68] sm:$0xff] }
 0x1eb   :  { %v824_v44 = vpop.f32.mrf.mxu2  ;;  %v1143_v2 = vpop.f32.mrf.mxu3 }
 0x1ec   :  { %v930_v29 = vadd.f32 %v929_v35, %v824_v44  ;;  %v758_v35 = vand.u32 2147483648, %v731_v32  ;;  %v1330_v32 = vld [vmem:[#allocation2 + $0x78] sm:$0xff] }
 0x1ed   :  { %v5151_v62 = vand.u32 4294901760, %v1330_v32 }
 0x1ee   :  { %v989_v52 = vadd.f32 %v988_v51, %v930_v29  ;;  %v759_v34 = vor.u32 1.1754944e-38, %v758_v35 }
 0x1f0   :  { %v1034_v28 = vadd.f32 %v1033_v12, %v989_v52  ;;  %v5154_v52 = vsub.f32 %v1330_v32, %v5151_v62 }
 0x1f3   :  { %v1102_v59 = vpop.f32.mrf.mxu2 }
 0x1f4   :  { %v1103_v23 = vadd.f32 %v1102_v59, %v1028_v50  ;;  %v760_v59 = vsel %vm757_vm11, %v759_v34, %v755_v22  ;;  %v5166_v22 = vand.u32 4294901760, %v1328_v56  ;;  %v7062_v34 = vand.u32 4294901760, %v5154_v52 }
 0x1f6   :  { %v1144_v25 = vadd.f32 %v1143_v2, %v1103_v23  ;;  %v1147_v2 = vpop.f32.mrf.mxu3  ;;  %v1329_v23 = vld [vmem:[#allocation2 + $0x70] sm:$0xff]  ;;  %v5174_v32 = vsub.f32 %v1328_v56, %v5166_v22  ;;  %v1324_v56 = vld [vmem:[#allocation2 + $0x48] sm:$0xff] }
 0x1f7   :  { %v5156_v45 = vand.u32 4294901760, %v1329_v23 }
 0x1f8   :  { %v1150_v44 = vmul.f32 %v1144_v25, %v745_v14  ;;  %v5146_v14 = vand.u32 4294901760, %v5139_v38  ;;  %v7204_v3 = vand.u32 4294901760, %v5174_v32 }
 0x1f9   :  { %v5163_v12 = vsub.f32 %v1329_v23, %v5156_v45 }
 0x1fa   :  { %v5143_v50 = vand.u32 4294901760, %v1150_v44  ;;  %7202 = vst [vmem:[#allocation53_spill] sm:$0xff] %v5146_v14  ;;  %v1177_v31 = vsub.f32 %v5139_v38, %v5146_v14 }
 0x1fb   :  { %v1106_v42 = vpop.f32.mrf.mxu2 }
 0x1fc   :  { %v1107_v29 = vadd.f32 %v1106_v42, %v1034_v28  ;;  %v1204_v30 = vsub.f32 %v1150_v44, %v5143_v50  ;;  %v5158_v35 = vand.u32 4294901760, %v1177_v31  ;;  %v1327_v28 = vld [vmem:[#allocation2 + $0x60] sm:$0xff]  ;;  %v7064_v31 = vand.u32 4294901760, %v5163_v12 }
 0x1fe   :  { %v1148_v19 = vadd.f32 %v1147_v2, %v1107_v29  ;;  %7203 = vst [vmem:[#allocation54_spill] sm:$0xff] %v5158_v35  ;;  %v1205_v5 = vand.u32 4294901760, %v1204_v30  ;;  %v1326_v2 = vld [vmem:[#allocation2 + $0x58] sm:$0xff] }
 0x1ff   :  { %v5180_v23 = vand.u32 4294901760, %v1326_v2 }
 0x200   :  { %v1151_v47 = vmul.f32 %v1148_v19, %v760_v59  ;;  %v1206_v29 = vsub.f32 %v1204_v30, %v1205_v5  ;;  %v5171_v19 = vand.u32 4294901760, %v1327_v28 }
 0x202   :  { %v1170_v51 = vand.u32 4294901760, %v1151_v47 }
 0x204   :  { %1171 = vmatpush.msra.mxu0 %v1170_v51  ;;  %1307 = vmatpush.msra.mxu3 %v1170_v51  ;;  %v1198_v25 = vsub.f32 %v1151_v47, %v1170_v51  ;;  %v1325_v47 = vld [vmem:[#allocation2 + $0x50] sm:$0xff] }
 0x206   :  { %1173 = vmatpush.msra.mxu0 %v5143_v50  ;;  %1309 = vmatpush.msra.mxu3 %v5143_v50  ;;  %v1199_v44 = vand.u32 4294901760, %v1198_v25 }
 0x207   :  { %1179 = vmatmul.f32.vlgmr.msra.gmra.mxu0 %v5158_v35  ;;  %v5203_v35 = vand.u32 4294901760, %v1324_v56  ;;  %1311 = vmatmul.f32.vlgmr.msra.gmra.mxu3 %v5132_v16 }
 0x208   :  { %1230 = vmatpush.msrb.mxu0 %v1198_v25  ;;  %1528 = vmatpush.msrb.mxu3 %v5151_v62  ;;  %v1200_v42 = vsub.f32 %v1198_v25, %v1199_v44  ;;  %v1375_v25 = vsub.f32 %v5154_v52, %v7062_v34 }
 0x209   :  { %1282 = vmatpush.msra.mxu2 %v1199_v44  ;;  %v5191_v44 = vand.u32 4294901760, %v1325_v47  ;;  %v5218_v49 = vsub.f32 %v1324_v56, %v5203_v35 }
 0x20a   :  { %1233 = vmatpush.msrb.mxu0 %v1204_v30  ;;  %1530 = vmatpush.msrb.mxu3 %v5156_v45  ;;  %v1201_v59 = vand.u32 4294901760, %v1200_v42  ;;  %v5183_v30 = vsub.f32 %v1327_v28, %v5171_v19  ;;  %v5194_v42 = vsub.f32 %v1326_v2, %v5180_v23  ;;  %v1376_v34 = vand.u32 4294901760, %v1375_v25  ;;  %v1319_v28 = vld [vmem:[#allocation2 + $0x20] sm:$0xff] }
 0x20b   :  { %1286 = vmatpush.msra.mxu2 %v1205_v5  ;;  %v1207_v5 = vand.u32 4294901760, %v1206_v29  ;;  %v1323_v29 = vld [vmem:[#allocation2 + $0x40] sm:$0xff]  ;;  %v5206_v2 = vsub.f32 %v1325_v47, %v5191_v44  ;;  %v1387_v25 = vsub.f32 %v5174_v32, %v7204_v3  ;;  %v1321_v47 = vld [vmem:[#allocation2 + $0x30] sm:$0xff]  ;;  %v7210_v48 = vand.u32 4294901760, %v5218_v49 }
 0x20c   :  { %1332 = vmatpush.msra.mxu0 %v5151_v62  ;;  %1532 = vmatpush.msrb.mxu3 %v5166_v22  ;;  %v7205_v8 = vand.u32 4294901760, %v5183_v30 }
 0x20d   :  { %1475 = vmatpush.msrb.mxu2 %v5154_v52  ;;  %1202 = vmatpush.msra.mxu1 %v1201_v59  ;;  %v1381_v59 = vsub.f32 %v5163_v12, %v7064_v31  ;;  %v5212_v31 = vand.u32 4294901760, %v1323_v29 }
 0x20e   :  { %1334 = vmatpush.msra.mxu0 %v5156_v45  ;;  %1534 = vmatpush.msrb.mxu3 %v5171_v19  ;;  %v1393_v3 = vsub.f32 %v5183_v30, %v7205_v8  ;;  %v7207_v8 = vand.u32 4294901760, %v5194_v42 }
 0x20f   :  { %1478 = vmatpush.msrb.mxu2 %v5163_v12  ;;  %1208 = vmatpush.msra.mxu1 %v1207_v5  ;;  %v1322_v5 = vld [vmem:[#allocation2 + $0x38] sm:$0xff]  ;;  %v5230_v56 = vsub.f32 %v1323_v29, %v5212_v31 }
 0x210   :  { %1336 = vmatpush.msra.mxu0 %v5166_v22  ;;  %1210 = vmatmul.f32.vlgmr.msra.gmra.mxu1 %v5132_v16  ;;  %v5224_v13 = vand.u32 4294901760, %v1322_v5 }
 0x211   :  { %1481 = vmatpush.msrb.mxu2 %v5174_v32  ;;  %1255 = vmatpush.msrb.mxu1 %v1170_v51  ;;  %v1382_v51 = vand.u32 4294901760, %v1381_v59  ;;  %v1399_v59 = vsub.f32 %v5194_v42, %v7207_v8 }
 0x212   :  { %1536 = vmatpush.msrb.mxu3 %v5180_v23  ;;  %1338 = vmatpush.msra.mxu0 %v5171_v19  ;;  %v5243_v29 = vsub.f32 %v1322_v5, %v5224_v13  ;;  %v7209_v5 = vand.u32 4294901760, %v5206_v2 }
 0x213   :  { %1484 = vmatpush.msrb.mxu2 %v5183_v30  ;;  %1257 = vmatpush.msrb.mxu1 %v5143_v50  ;;  %v5235_v50 = vand.u32 4294901760, %v1321_v47 }
 0x214   :  { %1538 = vmatpush.msrb.mxu3 %v5191_v44  ;;  %1236 = vmatmul.f32.vlgmr.msrb.gmra.mxu0 %v5139_v38  ;;  %v1692_v38 = vld [vmem:[#allocation7 + $0x70] sm:$0xff]  ;;  %v1405_v8 = vsub.f32 %v5206_v2, %v7209_v5  ;;  %v1411_v5 = vsub.f32 %v5218_v49, %v7210_v48  ;;  %v7213_v48 = vand.u32 4294901760, %v5230_v56  ;;  %v7216_v58 = vand.u32 4294901760, %v5243_v29 }
 0x215   :  { %1377 = vmatpush.msra.mxu1 %v1376_v34  ;;  %1340 = vmatpush.msra.mxu0 %v5180_v23  ;;  %7206 = vst [vmem:[#allocation55_spill] sm:$0xff] %v5235_v50  ;;  %v1388_v34 = vand.u32 4294901760, %v1387_v25  ;;  %v5250_v61 = vsub.f32 %v1321_v47, %v5235_v50  ;;  %v1394_v25 = vand.u32 4294901760, %v1393_v3  ;;  %v5263_v47 = vsub.f32 %v1320_v55, %v5247_v7 }
 0x216   :  { %1288 = vmatmul.f32.vlgmr.msra.gmra.mxu2 %v5132_v16  ;;  %1540 = vmatpush.msrb.mxu3 %v5203_v35  ;;  %v1691_v16 = vld [vmem:[#allocation7 + $0x68] sm:$0xff]  ;;  %v1400_v3 = vand.u32 4294901760, %v1399_v59  ;;  %v5274_v55 = vand.u32 4294901760, %v1319_v28  ;;  %v1406_v59 = vand.u32 4294901760, %v1405_v8  ;;  %v1417_v60 = vsub.f32 %v5230_v56, %v7213_v48  ;;  %v1689_v8 = vld [vmem:[#allocation7 + $0x58] sm:$0xff] }
 0x217   :  { %1487 = vmatpush.msrb.mxu2 %v5194_v42  ;;  %1342 = vmatpush.msra.mxu0 %v5191_v44  ;;  %v1412_v48 = vand.u32 4294901760, %v1411_v5  ;;  %v1423_v57 = vsub.f32 %v5243_v29, %v7216_v58  ;;  %v7218_v0 = vand.u32 4294901760, %v5250_v61  ;;  %v5318_v36 = vand.u32 4294901760, %v1689_v8 }
 0x218   :  { %1383 = vmatpush.msra.mxu1 %v1382_v51  ;;  %1542 = vmatpush.msrb.mxu3 %v5212_v31  ;;  %v5265_v51 = vand.u32 4294901760, %v1692_v38  ;;  %7211 = vst [vmem:[#allocation57_spill] sm:$0xff] %v5274_v55  ;;  %v1418_v58 = vand.u32 4294901760, %v1417_v60 }
 0x219   :  { %1490 = vmatpush.msrb.mxu2 %v5206_v2  ;;  %1344 = vmatpush.msra.mxu0 %v5203_v35  ;;  %v5352_v43 = vsub.f32 %v1689_v8, %v5318_v36 }
 0x21a   :  { %1389 = vmatpush.msra.mxu1 %v1388_v34  ;;  %1544 = vmatpush.msrb.mxu3 %v5224_v13  ;;  %v5278_v34 = vsub.f32 %v1693_v37, %v5252_v41  ;;  %v5291_v37 = vsub.f32 %v1319_v28, %v5274_v55  ;;  %v5305_v28 = vand.u32 4294901760, %v1317_v18 }
 0x21b   :  { %1493 = vmatpush.msrb.mxu2 %v5218_v49  ;;  %1261 = vmatmul.f32.vlgmr.msrb.gmra.mxu1 %v5146_v14  ;;  %v5284_v14 = vand.u32 4294901760, %v1691_v16  ;;  %7225 = vst [vmem:[#allocation66_spill] sm:$0xff] %v5352_v43 }
 0x21c   :  { %7212 = vst [vmem:[#allocation58_spill] sm:$0xff] %v5278_v34  ;;  %1346 = vmatpush.msra.mxu0 %v5212_v31  ;;  %1395 = vmatpush.msra.mxu1 %v1394_v25  ;;  %v5295_v25 = vsub.f32 %v1692_v38, %v5265_v51  ;;  %v5308_v38 = vsub.f32 %v1318_v53, %v5288_v9  ;;  %v7224_v60 = vand.u32 4294901760, %v5278_v34 }
 0x21d   :  { %1496 = vmatpush.msrb.mxu2 %v5230_v56  ;;  %1546 = vmatpush.msrb.mxu3 %v5235_v50  ;;  %7217 = vst [vmem:[#allocation61_spill] sm:$0xff] %v5305_v28  ;;  %v5316_v46 = vsub.f32 %v1691_v16, %v5284_v14  ;;  %v5323_v53 = vsub.f32 %v1317_v18, %v5305_v28  ;;  %v1424_v16 = vand.u32 4294901760, %v1423_v57  ;;  %v5336_v18 = vand.u32 4294901760, %v1688_v24 }
 0x21e   :  { %7215 = vst [vmem:[#allocation60_spill] sm:$0xff] %v5295_v25  ;;  %1348 = vmatpush.msra.mxu0 %v5224_v13  ;;  %1401 = vmatpush.msra.mxu1 %v1400_v3  ;;  %v1429_v3 = vsub.f32 %v5250_v61, %v7218_v0  ;;  %v7220_v0 = vand.u32 4294901760, %v5263_v47  ;;  %v1782_v6 = vsub.f32 %v5278_v34, %v7224_v60  ;;  %v7226_v57 = vand.u32 4294901760, %v5291_v37 }
 0x21f   :  { %1499 = vmatpush.msrb.mxu2 %v5243_v29  ;;  %1548 = vmatpush.msrb.mxu3 %v5247_v7  ;;  %7219 = vst [vmem:[#allocation62_spill] sm:$0xff] %v5316_v46  ;;  %v7228_v39 = vand.u32 4294901760, %v5308_v38  ;;  %v7233_v34 = vand.u32 4294901760, %v5352_v43 }
 0x220   :  { %1350 = vmatpush.msra.mxu0 %v5235_v50  ;;  %1407 = vmatpush.msra.mxu1 %v1406_v59  ;;  %v1435_v5 = vsub.f32 %v5263_v47, %v7220_v0  ;;  %v1430_v0 = vand.u32 4294901760, %v1429_v3  ;;  %v5340_v59 = vand.u32 4294901760, %v1315_v15  ;;  %v5354_v3 = vand.u32 4294901760, %v1687_v20 }
 0x221   :  { %1502 = vmatpush.msrb.mxu2 %v5250_v61  ;;  %1550 = vmatpush.msrb.mxu3 %v5274_v55  ;;  %v1441_v26 = vsub.f32 %v5291_v37, %v7226_v57  ;;  %v1685_v57 = vld [vmem:[#allocation7 + $0x38] sm:$0xff] }
 0x222   :  { %1352 = vmatpush.msra.mxu0 %v5247_v7  ;;  %1413 = vmatpush.msra.mxu1 %v1412_v48  ;;  %7223 = vst [vmem:[#allocation65_spill] sm:$0xff] %v5340_v59  ;;  %v1686_v48 = vld [vmem:[#allocation7 + $0x40] sm:$0xff]  ;;  %v1436_v60 = vand.u32 4294901760, %v1435_v5  ;;  %v5367_v8 = vsub.f32 %v1315_v15, %v5340_v59  ;;  %v5371_v5 = vsub.f32 %v1688_v24, %v5336_v18  ;;  %v7229_v15 = vand.u32 4294901760, %v5316_v46  ;;  %v1684_v7 = vld [vmem:[#allocation7 + $0x30] sm:$0xff] }
 0x223   :  { %1505 = vmatpush.msrb.mxu2 %v5263_v47  ;;  %1552 = vmatpush.msrb.mxu3 %v5288_v9  ;;  %v5394_v50 = vand.u32 4294901760, %v1685_v57 }
 0x224   :  { %1354 = vmatpush.msra.mxu0 %v5274_v55  ;;  %1419 = vmatpush.msra.mxu1 %v1418_v58  ;;  %v7227_v58 = vand.u32 4294901760, %v5295_v25  ;;  %v5373_v55 = vand.u32 4294901760, %v1686_v48  ;;  %v1794_v24 = vsub.f32 %v5316_v46, %v7229_v15  ;;  %v7231_v15 = vand.u32 4294901760, %v5334_v11 }
 0x225   :  { %1508 = vmatpush.msrb.mxu2 %v5291_v37  ;;  %1554 = vmatpush.msrb.mxu3 %v5305_v28  ;;  %v5407_v46 = vand.u32 4294901760, %v1684_v7 }
 0x226   :  { %v1788_v40 = vsub.f32 %v5295_v25, %v7227_v58  ;;  %1356 = vmatpush.msra.mxu0 %v5288_v9  ;;  %1425 = vmatpush.msra.mxu1 %v1424_v16  ;;  %v1783_v58 = vand.u32 4294901760, %v1782_v6  ;;  %v1447_v16 = vsub.f32 %v5308_v38, %v7228_v39  ;;  %v5387_v9 = vsub.f32 %v1687_v20, %v5354_v3 }
 0x227   :  { %1511 = vmatpush.msrb.mxu2 %v5308_v38  ;;  %1556 = vmatpush.msrb.mxu3 %v5331_v27  ;;  %v1442_v6 = vand.u32 4294901760, %v1441_v26  ;;  %v1800_v20 = vsub.f32 %v5334_v11, %v7231_v15  ;;  %v5403_v26 = vsub.f32 %v1686_v48, %v5373_v55  ;;  %v7232_v15 = vand.u32 4294901760, %v5348_v21 }
 0x228   :  { %1358 = vmatpush.msra.mxu0 %v5305_v28  ;;  %1431 = vmatpush.msra.mxu1 %v1430_v0  ;;  %v1789_v39 = vand.u32 4294901760, %v1788_v40  ;;  %v7230_v0 = vand.u32 4294901760, %v5323_v53  ;;  %v1683_v40 = vld [vmem:[#allocation7 + $0x28] sm:$0xff]  ;;  %v1806_v48 = vsub.f32 %v5352_v43, %v7233_v34  ;;  %v7235_v11 = vand.u32 4294901760, %v5371_v5 }
 0x229   :  { %1514 = vmatpush.msrb.mxu2 %v5323_v53  ;;  %1558 = vmatpush.msrb.mxu3 %v5340_v59  ;;  %v1459_v25 = vsub.f32 %v5348_v21, %v7232_v15  ;;  %v7234_v15 = vand.u32 4294901760, %v5367_v8 }
 0x22a   :  { %v1453_v28 = vsub.f32 %v5323_v53, %v7230_v0  ;;  %1360 = vmatpush.msra.mxu0 %v5331_v27  ;;  %1437 = vmatpush.msra.mxu1 %v1436_v60  ;;  %v1448_v0 = vand.u32 4294901760, %v1447_v16  ;;  %v1795_v60 = vand.u32 4294901760, %v1794_v24  ;;  %v1801_v24 = vand.u32 4294901760, %v1800_v20 }
 0x22b   :  { %1562 = vmatmul.f32.vlgmr.msrb.gmra.mxu3 %v4741_v4  ;;  %1517 = vmatpush.msrb.mxu2 %v5348_v21  ;;  %v1682_v4 = vld [vmem:[#allocation7 + $0x20] sm:$0xff]  ;;  %v1465_v34 = vsub.f32 %v5367_v8, %v7234_v15  ;;  %v1460_v20 = vand.u32 4294901760, %v1459_v25  ;;  %v1807_v15 = vand.u32 4294901760, %v1806_v48  ;;  %v7237_v27 = vand.u32 4294901760, %v5387_v9  ;;  %v1679_v48 = vld [vmem:[#allocation7 + $0x8] sm:$0xff] }
 0x22c   :  { %1784 = vmatpush.msra.mxu3 %v1783_v58  ;;  %1362 = vmatpush.msra.mxu0 %v5340_v59  ;;  %v1454_v16 = vand.u32 4294901760, %v1453_v28  ;;  %v5419_v58 = vsub.f32 %v1685_v57, %v5394_v50  ;;  %v5421_v59 = vand.u32 4294901760, %v1683_v40  ;;  %v1681_v28 = vld [vmem:[#allocation7 + $0x18] sm:$0xff]  ;;  %v7236_v57 = vand.u32 4294901760, %v5154_v52 }
 0x22d   :  { %1443 = vmatpush.msra.mxu1 %v1442_v6  ;;  %1368 = vmatmul.f32.vlgmr.msra.gmra.mxu0 %v4755_v10  ;;  %v1812_v6 = vsub.f32 %v5371_v5, %v7235_v11  ;;  %v5436_v43 = vand.u32 4294901760, %v1682_v4  ;;  %v1818_v11 = vsub.f32 %v5387_v9, %v7237_v27  ;;  %v1680_v10 = vld [vmem:[#allocation7 + $0x10] sm:$0xff]  ;;  %v7238_v52 = vand.u32 4294901760, %v5163_v12 }
 0x22e   :  { %1790 = vmatpush.msra.mxu3 %v1789_v39  ;;  %1520 = vmatpush.msrb.mxu2 %v5367_v8  ;;  %v5434_v39 = vsub.f32 %v1684_v7, %v5407_v46  ;;  %v7240_v12 = vand.u32 4294901760, %v5174_v32  ;;  %v5461_v7 = vand.u32 4294901760, %v1680_v10 }
 0x22f   :  { %1569 = vmatpush.msrb.mxu0 %v7236_v57  ;;  %1449 = vmatpush.msra.mxu1 %v1448_v0  ;;  %v5447_v0 = vsub.f32 %v1683_v40, %v5421_v59  ;;  %v5449_v57 = vand.u32 4294901760, %v1681_v28  ;;  %v1813_v25 = vand.u32 4294901760, %v1812_v6  ;;  %v5459_v40 = vsub.f32 %v1682_v4, %v5436_v43 }
 0x230   :  { %1523 = vmatmul.f32.vlgmr.msrb.gmra.mxu2 %v4728_v1  ;;  %1796 = vmatpush.msra.mxu3 %v1795_v60  ;;  %v1466_v1 = vand.u32 4294901760, %v1465_v34  ;;  %v7239_v60 = vand.u32 4294901760, %v5403_v26  ;;  %v7241_v34 = vand.u32 4294901760, %v5183_v30  ;;  %v7242_v6 = vand.u32 4294901760, %v5419_v58 }
 0x231   :  { %1731 = vmatpush.msra.mxu2 %v5252_v41  ;;  %1573 = vmatpush.msrb.mxu0 %v7238_v52  ;;  %v1835_v52 = vand.u32 4294901760, %v5434_v39  ;;  %v5471_v4 = vsub.f32 %v1681_v28, %v5449_v57 }
 0x232   :  { %1455 = vmatpush.msra.mxu1 %v1454_v16  ;;  %1802 = vmatpush.msra.mxu3 %v1801_v24  ;;  %v1824_v27 = vsub.f32 %v5403_v26, %v7239_v60  ;;  %v1819_v16 = vand.u32 4294901760, %v1818_v11  ;;  %v1678_v24 = vld [vmem:[#allocation7] sm:$0xff]  ;;  %v1830_v32 = vsub.f32 %v5419_v58, %v7242_v6  ;;  %v1841_v60 = vand.u32 4294901760, %v5447_v0 }
 0x233   :  { %1733 = vmatpush.msra.mxu2 %v5265_v51  ;;  %1577 = vmatpush.msrb.mxu0 %v7240_v12  ;;  %v5473_v12 = vand.u32 4294901760, %v1679_v48  ;;  %v1836_v30 = vsub.f32 %v5434_v39, %v1835_v52  ;;  %v5482_v11 = vsub.f32 %v1680_v10, %v5461_v7  ;;  %v5484_v28 = vand.u32 4294901760, %v1678_v24 }
 0x234   :  { %1461 = vmatpush.msra.mxu1 %v1460_v20  ;;  %1808 = vmatpush.msra.mxu3 %v1807_v15  ;;  %v1825_v20 = vand.u32 4294901760, %v1824_v27  ;;  %v1847_v15 = vand.u32 4294901760, %v5459_v40  ;;  %v1853_v27 = vand.u32 4294901760, %v5471_v4  ;;  %v7244_v6 = vand.u32 4294901760, %v5206_v2 }
 0x235   :  { %1735 = vmatpush.msra.mxu2 %v5284_v14  ;;  %1581 = vmatpush.msrb.mxu0 %v7241_v34  ;;  %v7243_v34 = vand.u32 4294901760, %v5194_v42  ;;  %v5495_v10 = vsub.f32 %v1679_v48, %v5473_v12  ;;  %v7245_v48 = vand.u32 4294901760, %v5218_v49 }
 0x236   :  { %1467 = vmatpush.msra.mxu1 %v1466_v1  ;;  %1814 = vmatpush.msra.mxu3 %v1813_v25  ;;  %v1831_v1 = vand.u32 4294901760, %v1830_v32  ;;  %v1842_v25 = vsub.f32 %v5447_v0, %v1841_v60  ;;  %v1848_v42 = vsub.f32 %v5459_v40, %v1847_v15  ;;  %v5506_v32 = vsub.f32 %v1678_v24, %v5484_v28 }
 0x237   :  { %1737 = vmatpush.msra.mxu2 %v5301_v54  ;;  %1469 = vmatmul.f32.vlgmr.msra.gmra.mxu1 %v4722_v63  ;;  %v1854_v2 = vsub.f32 %v5471_v4, %v1853_v27 }
 0x238   :  { %1585 = vmatpush.msrb.mxu0 %v7243_v34  ;;  %1636 = vmatpush.msrb.mxu1 %v5151_v62  ;;  %v1837_v62 = vand.u32 4294901760, %v1836_v30  ;;  %v7246_v30 = vand.u32 4294901760, %v5230_v56  ;;  %v1849_v49 = vand.u32 4294901760, %v1848_v42  ;;  %v1871_v24 = vand.u32 4294901760, %v5506_v32 }
 0x239   :  { %1739 = vmatpush.msra.mxu2 %v5318_v36  ;;  %1820 = vmatpush.msra.mxu3 %v1819_v16  ;;  %v1859_v16 = vand.u32 4294901760, %v5482_v11  ;;  %v5525_v34 = vand.u32 4294901760, %v5100_v17 }
 0x23a   :  { %1589 = vmatpush.msrb.mxu0 %v7244_v6  ;;  %1638 = vmatpush.msrb.mxu1 %v5156_v45  ;;  %v1843_v45 = vand.u32 4294901760, %v1842_v25  ;;  %v7248_v25 = vand.u32 4294901760, %v5250_v61 }
 0x23b   :  { %1741 = vmatpush.msra.mxu2 %v5336_v18  ;;  %1826 = vmatpush.msra.mxu3 %v1825_v20  ;;  %v1865_v20 = vand.u32 4294901760, %v5495_v10  ;;  %v5543_v6 = vsub.f32 %v5100_v17, %v5525_v34  ;;  %v7251_v17 = vand.u32 4294901760, %v5308_v38  ;;  %v7254_v38 = vand.u32 4294901760, %v5348_v21  ;;  %v7257_v21 = vld [vmem:[#allocation57_spill] sm:$0xff] }
 0x23c   :  { %1593 = vmatpush.msrb.mxu0 %v7245_v48  ;;  %1640 = vmatpush.msrb.mxu1 %v5166_v22  ;;  %v1860_v22 = vsub.f32 %v5482_v11, %v1859_v16 }
 0x23d   :  { %1743 = vmatpush.msra.mxu2 %v5354_v3  ;;  %1832 = vmatpush.msra.mxu3 %v1831_v1  ;;  %v7247_v1 = vand.u32 4294901760, %v5243_v29  ;;  %v1866_v56 = vsub.f32 %v5495_v10, %v1865_v20 }
 0x23e   :  { %1597 = vmatpush.msrb.mxu0 %v7246_v30  ;;  %1642 = vmatpush.msrb.mxu1 %v5171_v19  ;;  %v1855_v19 = vand.u32 4294901760, %v1854_v2  ;;  %v1861_v29 = vand.u32 4294901760, %v1860_v22  ;;  %v7259_v30 = vld [vmem:[#allocation59_spill] sm:$0xff]  ;;  %v7261_v22 = vld [vmem:[#allocation60_spill] sm:$0xff] }
 0x23f   :  { %1745 = vmatpush.msra.mxu2 %v5373_v55  ;;  %1838 = vmatpush.msra.mxu3 %v1837_v62  ;;  %v7249_v62 = vand.u32 4294901760, %v5263_v47  ;;  %v1867_v61 = vand.u32 4294901760, %v1866_v56  ;;  %v5558_v47 = vand.u32 4294901760, %v5104_v33  ;;  %v7264_v56 = vld [vmem:[#allocation62_spill] sm:$0xff] }
 0x240   :  { %1601 = vmatpush.msrb.mxu0 %v7247_v1  ;;  %1644 = vmatpush.msrb.mxu1 %v5180_v23  ;;  %v1872_v23 = vsub.f32 %v5506_v32, %v1871_v24  ;;  %v7262_v1 = vld [vmem:[#allocation61_spill] sm:$0xff] }
 0x241   :  { %1747 = vmatpush.msra.mxu2 %v5394_v50  ;;  %1844 = vmatpush.msra.mxu3 %v1843_v45  ;;  %v5573_v45 = vsub.f32 %v5104_v33, %v5558_v47  ;;  %v7258_v33 = vld [vmem:[#allocation58_spill] sm:$0xff] }
 0x242   :  { %1605 = vmatpush.msrb.mxu0 %v7248_v25  ;;  %1646 = vmatpush.msrb.mxu1 %v5191_v44  ;;  %v7250_v44 = vand.u32 4294901760, %v5291_v37  ;;  %v1873_v42 = vand.u32 4294901760, %v1872_v23  ;;  %v7252_v37 = vand.u32 4294901760, %v5323_v53  ;;  %v7256_v53 = vand.u32 4294901760, %v5367_v8 }
 0x243   :  { %1749 = vmatpush.msra.mxu2 %v5407_v46  ;;  %1850 = vmatpush.msra.mxu3 %v1849_v49  ;;  %v1772_v49 = vand.u32 4294901760, %v5573_v45  ;;  %v7260_v8 = vand.u32 4294901760, %v7258_v33  ;;  %v7266_v23 = vand.u32 4294901760, %v7264_v56 }
 0x244   :  { %1609 = vmatpush.msrb.mxu0 %v7249_v62  ;;  %1648 = vmatpush.msrb.mxu1 %v5203_v35  ;;  %v1764_v35 = vand.u32 4294901760, %v5543_v6  ;;  %v7267_v62 = vld [vmem:[#allocation64_spill] sm:$0xff] }
 0x245   :  { %1751 = vmatpush.msra.mxu2 %v5421_v59  ;;  %1856 = vmatpush.msra.mxu3 %v1855_v19  ;;  %v7263_v19 = vand.u32 4294901760, %v7261_v22  ;;  %v1773_v25 = vsub.f32 %v5573_v45, %v1772_v49 }
 0x246   :  { %1613 = vmatpush.msrb.mxu0 %v7250_v44  ;;  %1650 = vmatpush.msrb.mxu1 %v5212_v31  ;;  %v7253_v31 = vld [vmem:[#allocation55_spill] sm:$0xff]  ;;  %v1765_v48 = vsub.f32 %v5543_v6, %v1764_v35  ;;  %v7269_v44 = vand.u32 4294901760, %v7267_v62 }
 0x247   :  { %1753 = vmatpush.msra.mxu2 %v5436_v43  ;;  %1862 = vmatpush.msra.mxu3 %v1861_v29  ;;  %v7265_v29 = vld [vmem:[#allocation63_spill] sm:$0xff] }
 0x248   :  { %1617 = vmatpush.msrb.mxu0 %v7251_v17  ;;  %1652 = vmatpush.msrb.mxu1 %v5224_v13  ;;  %v7255_v13 = vld [vmem:[#allocation56_spill] sm:$0xff]  ;;  %v1766_v2 = vand.u32 4294901760, %v1765_v48  ;;  %v7270_v17 = vld [vmem:[#allocation66_spill] sm:$0xff] }
 0x249   :  { %1755 = vmatpush.msra.mxu2 %v5449_v57  ;;  %1868 = vmatpush.msra.mxu3 %v1867_v61  ;;  %v7268_v61 = vld [vmem:[#allocation65_spill] sm:$0xff] }
 0x24a   :  { %1621 = vmatpush.msrb.mxu0 %v7252_v37  ;;  %1654 = vmatpush.msrb.mxu1 %v7253_v31  ;;  %v7271_v37 = vand.u32 4294901760, %v7270_v17  ;;  %v7272_v31 = vand.u32 4294901760, %v5371_v5 }
 0x24b   :  { %1757 = vmatpush.msra.mxu2 %v5461_v7  ;;  %1874 = vmatpush.msra.mxu3 %v1873_v42  ;;  %v1774_v42 = vand.u32 4294901760, %v1773_v25 }
 0x24c   :  { %1625 = vmatpush.msrb.mxu0 %v7254_v38  ;;  %1656 = vmatpush.msrb.mxu1 %v7255_v13  ;;  %v1700_v38 = vld [vmem:[#allocation7 + $0xb0] sm:$0xff] }
 0x24d   :  { %1876 = vmatmul.f32.vlgmr.msra.gmra.mxu3 %v5525_v34  ;;  %1759 = vmatpush.msra.mxu2 %v5473_v12 }
 0x24e   :  { %2062 = vmatpush.msrb.mxu3 %v5252_v41  ;;  %1629 = vmatpush.msrb.mxu0 %v7256_v53 }
 0x24f   :  { %1658 = vmatpush.msrb.mxu1 %v7257_v21  ;;  %1631 = vmatmul.f32.vlgmr.msrb.gmra.mxu0 %v4722_v63 }
 0x250   :  { %2064 = vmatpush.msrb.mxu3 %v5265_v51  ;;  %1761 = vmatpush.msra.mxu2 %v5484_v28 }
 0x251   :  { %1886 = vmatpush.msra.mxu0 %v7258_v33  ;;  %1660 = vmatpush.msrb.mxu1 %v7259_v30  ;;  %v5754_v33 = vand.u32 4294901760, %v1700_v38  ;;  %v1699_v30 = vld [vmem:[#allocation7 + $0xa8] sm:$0xff] }
 0x252   :  { %1767 = vmatmul.f32.vlgmr.msra.gmra.mxu2 %v1766_v2  ;;  %2066 = vmatpush.msrb.mxu3 %v5284_v14  ;;  %v5771_v25 = vand.u32 4294901760, %v1699_v30 }
 0x253   :  { %1991 = vmatpush.msrb.mxu2 %v7260_v8  ;;  %1889 = vmatpush.msra.mxu0 %v7261_v22  ;;  %v1725_v8 = vld [vmem:[#allocation7 + $0x178] sm:$0xff] }
 0x254   :  { %1662 = vmatpush.msrb.mxu1 %v7262_v1  ;;  %2068 = vmatpush.msrb.mxu3 %v5301_v54 }
 0x255   :  { %1995 = vmatpush.msrb.mxu2 %v7263_v19  ;;  %1892 = vmatpush.msra.mxu0 %v7264_v56  ;;  %v1724_v19 = vld [vmem:[#allocation7 + $0x170] sm:$0xff] }
 0x256   :  { %1664 = vmatpush.msrb.mxu1 %v7265_v29  ;;  %1880 = vmatmul.f32.gmra.mxu3 %v5558_v47 }
 0x257   :  { %1999 = vmatpush.msrb.mxu2 %v7266_v23  ;;  %2070 = vmatpush.msrb.mxu3 %v5318_v36  ;;  %v1698_v23 = vld [vmem:[#allocation7 + $0xa0] sm:$0xff] }
 0x258   :  { %1895 = vmatpush.msra.mxu0 %v7267_v62  ;;  %1666 = vmatpush.msrb.mxu1 %v7268_v61  ;;  %v5777_v61 = vand.u32 4294901760, %v1725_v8 }
 0x259   :  { %2003 = vmatpush.msrb.mxu2 %v7269_v44  ;;  %2072 = vmatpush.msrb.mxu3 %v5336_v18  ;;  %v5781_v44 = vand.u32 4294901760, %v1724_v19 }
 0x25a   :  { %1668 = vmatmul.f32.vlgmr.msrb.gmra.mxu1 %v4722_v63  ;;  %1898 = vmatpush.msra.mxu0 %v7270_v17  ;;  %v7274_v63 = vand.u32 4294901760, %v5403_v26 }
 0x25b   :  { %1944 = vmatpush.msra.mxu1 %v5252_v41  ;;  %1775 = vmatmul.f32.gmra.mxu2 %v1774_v42  ;;  %v7273_v41 = vand.u32 4294901760, %v5387_v9  ;;  %v1723_v42 = vld [vmem:[#allocation7 + $0x168] sm:$0xff] }
 0x25c   :  { %2007 = vmatpush.msrb.mxu2 %v7271_v37  ;;  %2074 = vmatpush.msrb.mxu3 %v5354_v3 }
 0x25d   :  { %1901 = vmatpush.msra.mxu0 %v5371_v5  ;;  %1946 = vmatpush.msra.mxu1 %v5265_v51  ;;  %v1705_v5 = vld [vmem:[#allocation7 + $0xd8] sm:$0xff] }
 0x25e   :  { %2011 = vmatpush.msrb.mxu2 %v7272_v31  ;;  %2076 = vmatpush.msrb.mxu3 %v5373_v55  ;;  %v5788_v31 = vsub.f32 %v1699_v30, %v5771_v25 }
 0x25f   :  { %1904 = vmatpush.msra.mxu0 %v5387_v9  ;;  %1948 = vmatpush.msra.mxu1 %v5284_v14  ;;  %v7275_v14 = vand.u32 4294901760, %v5419_v58  ;;  %v1708_v9 = vld [vmem:[#allocation7 + $0xf0] sm:$0xff] }
 0x260   :  { %2015 = vmatpush.msrb.mxu2 %v7273_v41  ;;  %2078 = vmatpush.msrb.mxu3 %v5394_v50  ;;  %v1697_v41 = vld [vmem:[#allocation7 + $0x98] sm:$0xff] }
 0x261   :  { %1907 = vmatpush.msra.mxu0 %v5403_v26  ;;  %1950 = vmatpush.msra.mxu1 %v5301_v54  ;;  %v1709_v54 = vld [vmem:[#allocation7 + $0xf8] sm:$0xff] }
 0x262   :  { %2019 = vmatpush.msrb.mxu2 %v7274_v63  ;;  %2080 = vmatpush.msrb.mxu3 %v5407_v46 }
 0x263   :  { %1910 = vmatpush.msra.mxu0 %v5419_v58  ;;  %1952 = vmatpush.msra.mxu1 %v5318_v36  ;;  %v5655_v36 = vand.u32 4294901760, %v1709_v54 }
 0x264   :  { %2023 = vmatpush.msrb.mxu2 %v7275_v14  ;;  %2082 = vmatpush.msrb.mxu3 %v5421_v59  ;;  %v5793_v14 = vand.u32 4294901760, %v1698_v23 }
 0x265   :  { %1913 = vmatpush.msra.mxu0 %v5434_v39  ;;  %1954 = vmatpush.msra.mxu1 %v5336_v18  ;;  %v5663_v51 = vsub.f32 %v1709_v54, %v5655_v36  ;;  %v1706_v18 = vld [vmem:[#allocation7 + $0xe0] sm:$0xff]  ;;  %v1704_v39 = vld [vmem:[#allocation7 + $0xd0] sm:$0xff] }
 0x266   :  { %2027 = vmatpush.msrb.mxu2 %v1835_v52  ;;  %2084 = vmatpush.msrb.mxu3 %v5436_v43 }
 0x267   :  { %1916 = vmatpush.msra.mxu0 %v5447_v0  ;;  %1956 = vmatpush.msra.mxu1 %v5354_v3  ;;  %v7123_v26 = vand.u32 4294901760, %v5663_v51  ;;  %v5697_v0 = vand.u32 4294901760, %v1705_v5 }
 0x268   :  { %2031 = vmatpush.msrb.mxu2 %v1841_v60  ;;  %2086 = vmatpush.msrb.mxu3 %v5449_v57  ;;  %v5707_v60 = vand.u32 4294901760, %v1704_v39 }
 0x269   :  { %1919 = vmatpush.msra.mxu0 %v5459_v40  ;;  %1958 = vmatpush.msra.mxu1 %v5373_v55  ;;  %v5667_v55 = vand.u32 4294901760, %v1708_v9  ;;  %v1703_v40 = vld [vmem:[#allocation7 + $0xc8] sm:$0xff] }
 0x26a   :  { %2035 = vmatpush.msrb.mxu2 %v1847_v15  ;;  %2088 = vmatpush.msrb.mxu3 %v5461_v7 }
 0x26b   :  { %1922 = vmatpush.msra.mxu0 %v5471_v4  ;;  %1960 = vmatpush.msra.mxu1 %v5394_v50  ;;  %v1707_v50 = vld [vmem:[#allocation7 + $0xe8] sm:$0xff]  ;;  %v5677_v3 = vsub.f32 %v1708_v9, %v5667_v55  ;;  %v5710_v4 = vsub.f32 %v1705_v5, %v5697_v0  ;;  %v1722_v9 = vld [vmem:[#allocation7 + $0x160] sm:$0xff]  ;;  %v1696_v5 = vld [vmem:[#allocation7 + $0x90] sm:$0xff] }
 0x26c   :  { %2039 = vmatpush.msrb.mxu2 %v1853_v27  ;;  %2090 = vmatpush.msrb.mxu3 %v5473_v12 }
 0x26d   :  { %1925 = vmatpush.msra.mxu0 %v5482_v11  ;;  %1962 = vmatpush.msra.mxu1 %v5407_v46  ;;  %v5674_v46 = vand.u32 4294901760, %v1707_v50  ;;  %v7121_v52 = vand.u32 4294901760, %v5677_v3  ;;  %v1702_v11 = vld [vmem:[#allocation7 + $0xc0] sm:$0xff]  ;;  %v7116_v13 = vand.u32 4294901760, %v5710_v4 }
 0x26e   :  { %2043 = vmatpush.msrb.mxu2 %v1859_v16  ;;  %2092 = vmatpush.msrb.mxu3 %v5484_v28  ;;  %v5724_v16 = vsub.f32 %v1704_v39, %v5707_v60  ;;  %v5801_v39 = vsub.f32 %v1725_v8, %v5777_v61 }
 0x26f   :  { %1928 = vmatpush.msra.mxu0 %v5495_v10  ;;  %1964 = vmatpush.msra.mxu1 %v5421_v59  ;;  %v5681_v59 = vand.u32 4294901760, %v1706_v18  ;;  %v5688_v58 = vsub.f32 %v1707_v50, %v5674_v46  ;;  %v2160_v10 = vsub.f32 %v5677_v3, %v7121_v52 }
 0x270   :  { %2094 = vmatmul.f32.vlgmr.msrb.gmra.mxu3 %v5525_v34  ;;  %2047 = vmatpush.msrb.mxu2 %v1865_v20  ;;  %v1701_v20 = vld [vmem:[#allocation7 + $0xb8] sm:$0xff]  ;;  %v7115_v2 = vand.u32 4294901760, %v5724_v16 }
 0x271   :  { %2316 = vmatpush.msra.mxu3 %v5655_v36  ;;  %1931 = vmatpush.msra.mxu0 %v5506_v32  ;;  %v7120_v15 = vand.u32 4294901760, %v5688_v58  ;;  %v2161_v48 = vand.u32 4294901760, %v2160_v10  ;;  %v5747_v53 = vand.u32 4294901760, %v1701_v20  ;;  %v5814_v10 = vsub.f32 %v1724_v19, %v5781_v44  ;;  %v1720_v19 = vld [vmem:[#allocation7 + $0x150] sm:$0xff] }
 0x272   :  { %1966 = vmatpush.msra.mxu1 %v5436_v43  ;;  %1934 = vmatmul.f32.vlgmr.msra.gmra.mxu0 %v5543_v6  ;;  %v5693_v43 = vsub.f32 %v1706_v18, %v5681_v59  ;;  %v2184_v29 = vsub.f32 %v5724_v16, %v7115_v2 }
 0x273   :  { %2318 = vmatpush.msra.mxu3 %v5667_v55  ;;  %2051 = vmatpush.msrb.mxu2 %v1871_v24  ;;  %v2166_v24 = vsub.f32 %v5688_v58, %v7120_v15  ;;  %v5762_v22 = vsub.f32 %v1701_v20, %v5747_v53  ;;  %7276 = vst [vmem:[#allocation55_spill] sm:$0xff] %v5814_v10 }
 0x274   :  { %2103 = vmatpush.msrb.mxu0 %v5655_v36  ;;  %1968 = vmatpush.msra.mxu1 %v5449_v57  ;;  %v2154_v57 = vsub.f32 %v5663_v51, %v7123_v26  ;;  %v7117_v27 = vand.u32 4294901760, %v5693_v43  ;;  %v2185_v50 = vand.u32 4294901760, %v2184_v29  ;;  %v1694_v29 = vld [vmem:[#allocation7 + $0x80] sm:$0xff] }
 0x275   :  { %2053 = vmatmul.f32.vlgmr.msrb.gmra.mxu2 %v5525_v34  ;;  %2320 = vmatpush.msra.mxu3 %v5674_v46  ;;  %v2167_v6 = vand.u32 4294901760, %v2166_v24  ;;  %v7110_v63 = vand.u32 4294901760, %v5762_v22  ;;  %v7111_v24 = vand.u32 4294901760, %v5788_v31 }
 0x276   :  { %2258 = vmatpush.msra.mxu2 %v5663_v51  ;;  %2105 = vmatpush.msrb.mxu0 %v5667_v55  ;;  %v2155_v32 = vand.u32 4294901760, %v2154_v57  ;;  %v5803_v57 = vand.u32 4294901760, %v1723_v42 }
 0x277   :  { %1970 = vmatpush.msra.mxu1 %v5461_v7  ;;  %2322 = vmatpush.msra.mxu3 %v5681_v59  ;;  %v5718_v7 = vand.u32 4294901760, %v1703_v40  ;;  %v2202_v20 = vsub.f32 %v5762_v22, %v7110_v63  ;;  %v5859_v63 = vand.u32 4294901760, %v1720_v19 }
 0x278   :  { %2261 = vmatpush.msra.mxu2 %v5677_v3  ;;  %2107 = vmatpush.msrb.mxu0 %v5674_v46 }
 0x279   :  { %1972 = vmatpush.msra.mxu1 %v5473_v12  ;;  %2098 = vmatmul.f32.gmra.mxu3 %v5558_v47  ;;  %v5730_v12 = vand.u32 4294901760, %v1702_v11  ;;  %v5736_v34 = vsub.f32 %v1703_v40, %v5718_v7  ;;  %v5808_v40 = vand.u32 4294901760, %v1697_v41 }
 0x27a   :  { %2264 = vmatpush.msra.mxu2 %v5688_v58  ;;  %2324 = vmatpush.msra.mxu3 %v5697_v0 }
 0x27b   :  { %2109 = vmatpush.msrb.mxu0 %v5681_v59  ;;  %1974 = vmatpush.msra.mxu1 %v5484_v28  ;;  %v2172_v28 = vsub.f32 %v5693_v43, %v7117_v27  ;;  %v5750_v21 = vsub.f32 %v1702_v11, %v5730_v12  ;;  %v7113_v1 = vand.u32 4294901760, %v5736_v34  ;;  %v5811_v11 = vsub.f32 %v1698_v23, %v5793_v14 }
 0x27c   :  { %2267 = vmatpush.msra.mxu2 %v5693_v43  ;;  %2326 = vmatpush.msra.mxu3 %v5707_v60 }
 0x27d   :  { %1939 = vmatmul.f32.gmra.mxu0 %v5573_v45  ;;  %1978 = vmatmul.f32.vlgmr.msra.gmra.mxu1 %v1764_v35  ;;  %v2178_v35 = vsub.f32 %v5710_v4, %v7116_v13  ;;  %v2173_v56 = vand.u32 4294901760, %v2172_v28  ;;  %v7112_v62 = vand.u32 4294901760, %v5750_v21  ;;  %v2190_v37 = vsub.f32 %v5736_v34, %v7113_v1 }
 0x27e   :  { %2111 = vmatpush.msrb.mxu0 %v5697_v0  ;;  %2156 = vmatpush.msrb.mxu1 %v2155_v32  ;;  %v5821_v45 = vand.u32 4294901760, %v1722_v9  ;;  %v5828_v28 = vsub.f32 %v1697_v41, %v5808_v40  ;;  %v7118_v23 = vand.u32 4294901760, %v5811_v11 }
 0x27f   :  { %2057 = vmatmul.f32.gmra.mxu2 %v5558_v47  ;;  %2328 = vmatpush.msra.mxu3 %v5718_v7  ;;  %v5768_v47 = vsub.f32 %v1700_v38, %v5754_v33  ;;  %v2179_v17 = vand.u32 4294901760, %v2178_v35  ;;  %v2196_v18 = vsub.f32 %v5750_v21, %v7112_v62  ;;  %v2191_v32 = vand.u32 4294901760, %v2190_v37 }
 0x280   :  { %2270 = vmatpush.msra.mxu2 %v5710_v4  ;;  %2113 = vmatpush.msrb.mxu0 %v5707_v60  ;;  %v5825_v38 = vand.u32 4294901760, %v1696_v5  ;;  %v5836_v35 = vsub.f32 %v1723_v42, %v5803_v57  ;;  %v2203_v42 = vand.u32 4294901760, %v2202_v20  ;;  %v5862_v20 = vand.u32 4294901760, %v1694_v29 }
 0x281   :  { %2162 = vmatpush.msrb.mxu1 %v2161_v48  ;;  %2330 = vmatpush.msra.mxu3 %v5730_v12  ;;  %v7109_v54 = vand.u32 4294901760, %v5768_v47  ;;  %v1695_v48 = vld [vmem:[#allocation7 + $0x88] sm:$0xff]  ;;  %v2197_v8 = vand.u32 4294901760, %v2196_v18  ;;  %v5854_v18 = vsub.f32 %v1722_v9, %v5821_v45 }
 0x282   :  { %2273 = vmatpush.msra.mxu2 %v5724_v16  ;;  %2115 = vmatpush.msrb.mxu0 %v5718_v7  ;;  %7277 = vst [vmem:[#allocation56_spill] sm:$0xff] %v5825_v38  ;;  %v5848_v41 = vand.u32 4294901760, %v1695_v48  ;;  %v7124_v62 = vand.u32 4294901760, %v5836_v35  ;;  %v5885_v13 = vsub.f32 %v1694_v29, %v5862_v20 }
 0x283   :  { %2168 = vmatpush.msrb.mxu1 %v2167_v6  ;;  %2332 = vmatpush.msra.mxu3 %v5747_v53  ;;  %v2208_v30 = vsub.f32 %v5768_v47, %v7109_v54  ;;  %v7114_v6 = vand.u32 4294901760, %v5801_v39  ;;  %7278 = vst [vmem:[#allocation57_spill] sm:$0xff] %v5836_v35  ;;  %v7122_v54 = vand.u32 4294901760, %v5828_v28  ;;  %v7128_v27 = vand.u32 4294901760, %v5854_v18 }
 0x284   :  { %2276 = vmatpush.msra.mxu2 %v5736_v34  ;;  %2117 = vmatpush.msrb.mxu0 %v5730_v12  ;;  %7279 = vst [vmem:[#allocation58_spill] sm:$0xff] %v5848_v41 }
 0x285   :  { %2174 = vmatpush.msrb.mxu1 %v2173_v56  ;;  %2334 = vmatpush.msra.mxu3 %v5754_v33  ;;  %v5841_v56 = vsub.f32 %v1696_v5, %v5825_v38  ;;  %7280 = vst [vmem:[#allocation59_spill] sm:$0xff] %v5854_v18  ;;  %v2209_v5 = vand.u32 4294901760, %v2208_v30  ;;  %v2526_v9 = vsub.f32 %v5801_v39, %v7114_v6 }
 0x286   :  { %2279 = vmatpush.msra.mxu2 %v5750_v21  ;;  %1984 = vmatmul.f32.gmra.mxu1 %v1772_v49  ;;  %v1721_v49 = vld [vmem:[#allocation7 + $0x158] sm:$0xff]  ;;  %7281 = vst [vmem:[#allocation60_spill] sm:$0xff] %v5862_v20  ;;  %v2220_v30 = vsub.f32 %v5811_v11, %v7118_v23 }
 0x287   :  { %2119 = vmatpush.msrb.mxu0 %v5747_v53  ;;  %2180 = vmatpush.msrb.mxu1 %v2179_v17  ;;  %v7119_v17 = vand.u32 4294901760, %v5814_v10  ;;  %v5845_v37 = vand.u32 4294901760, %v1721_v49  ;;  %v7127_v1 = vand.u32 4294901760, %v5841_v56  ;;  %v2527_v29 = vand.u32 4294901760, %v2526_v9  ;;  %v1716_v9 = vld [vmem:[#allocation7 + $0x130] sm:$0xff] }
 0x288   :  { %2282 = vmatpush.msra.mxu2 %v5762_v22  ;;  %2336 = vmatpush.msra.mxu3 %v5771_v25 }
 0x289   :  { %2121 = vmatpush.msrb.mxu0 %v5754_v33  ;;  %2186 = vmatpush.msrb.mxu1 %v2185_v50  ;;  %v2214_v50 = vsub.f32 %v5788_v31, %v7111_v24  ;;  %v5868_v24 = vsub.f32 %v1695_v48, %v5848_v41  ;;  %v5881_v6 = vsub.f32 %v1721_v49, %v5845_v37  ;;  %v1718_v48 = vld [vmem:[#allocation7 + $0x140] sm:$0xff] }
 0x28a   :  { %2285 = vmatpush.msra.mxu2 %v5768_v47  ;;  %2338 = vmatpush.msra.mxu3 %v5793_v14  ;;  %v2226_v49 = vsub.f32 %v5828_v28, %v7122_v54  ;;  %v5903_v52 = vand.u32 4294901760, %v1718_v48  ;;  %v2221_v54 = vand.u32 4294901760, %v2220_v30  ;;  %v2232_v26 = vsub.f32 %v5841_v56, %v7127_v1 }
 0x28b   :  { %2123 = vmatpush.msrb.mxu0 %v5771_v25  ;;  %2192 = vmatpush.msrb.mxu1 %v2191_v32  ;;  %v1719_v32 = vld [vmem:[#allocation7 + $0x148] sm:$0xff]  ;;  %7282 = vst [vmem:[#allocation61_spill] sm:$0xff] %v5881_v6  ;;  %v2215_v2 = vand.u32 4294901760, %v2214_v50  ;;  %v2538_v50 = vsub.f32 %v5836_v35, %v7124_v62  ;;  %v2544_v62 = vsub.f32 %v5854_v18, %v7128_v27  ;;  %v7285_v27 = vand.u32 4294901760, %v5868_v24 }
 0x28c   :  { %2288 = vmatpush.msra.mxu2 %v5788_v31  ;;  %2340 = vmatpush.msra.mxu3 %v5808_v40  ;;  %v5888_v23 = vand.u32 4294901760, %v1719_v32  ;;  %v2227_v1 = vand.u32 4294901760, %v2226_v49  ;;  %v5931_v18 = vand.u32 4294901760, %v1716_v9  ;;  %v2233_v49 = vand.u32 4294901760, %v2232_v26 }
 0x28d   :  { %2125 = vmatpush.msrb.mxu0 %v5793_v14  ;;  %2198 = vmatpush.msrb.mxu1 %v2197_v8  ;;  %v2532_v8 = vsub.f32 %v5814_v10, %v7119_v17  ;;  %v5896_v17 = vsub.f32 %v1720_v19, %v5859_v63  ;;  %v2238_v15 = vsub.f32 %v5868_v24, %v7285_v27  ;;  %v7289_v27 = vand.u32 4294901760, %v5885_v13 }
 0x28e   :  { %2291 = vmatpush.msra.mxu2 %v5811_v11  ;;  %2342 = vmatpush.msra.mxu3 %v5825_v38  ;;  %v5917_v35 = vsub.f32 %v1719_v32, %v5888_v23  ;;  %v5929_v32 = vsub.f32 %v1718_v48, %v5903_v52  ;;  %v7291_v26 = vand.u32 4294901760, %v5663_v51  ;;  %v7294_v51 = vand.u32 4294901760, %v5677_v3 }
 0x28f   :  { %2127 = vmatpush.msrb.mxu0 %v5808_v40  ;;  %2204 = vmatpush.msrb.mxu1 %v2203_v42  ;;  %7283 = vst [vmem:[#allocation62_spill] sm:$0xff] %v5896_v17  ;;  %v1717_v42 = vld [vmem:[#allocation7 + $0x138] sm:$0xff]  ;;  %v2533_v19 = vand.u32 4294901760, %v2532_v8  ;;  %v2244_v48 = vsub.f32 %v5885_v13, %v7289_v27  ;;  %v2239_v27 = vand.u32 4294901760, %v2238_v15  ;;  %v7298_v3 = vand.u32 4294901760, %v5688_v58 }
 0x290   :  { %2294 = vmatpush.msra.mxu2 %v5828_v28  ;;  %2344 = vmatpush.msra.mxu3 %v5848_v41  ;;  %v5919_v30 = vand.u32 4294901760, %v1717_v42  ;;  %v7284_v8 = vld [vmem:[#allocation37_spill] sm:$0xff]  ;;  %7286 = vst [vmem:[#allocation63_spill] sm:$0xff] %v5929_v32 }
 0x291   :  { %2129 = vmatpush.msrb.mxu0 %v5825_v38  ;;  %2210 = vmatpush.msrb.mxu1 %v2209_v5  ;;  %v7288_v5 = vand.u32 4294901760, %v5881_v6  ;;  %v2245_v15 = vand.u32 4294901760, %v2244_v48 }
 0x292   :  { %2297 = vmatpush.msra.mxu2 %v5841_v56  ;;  %2346 = vmatpush.msra.mxu3 %v5862_v20  ;;  %v5943_v38 = vsub.f32 %v1717_v42, %v5919_v30  ;;  %v5955_v42 = vsub.f32 %v1716_v9, %v5931_v18 }
 0x293   :  { %2131 = vmatpush.msrb.mxu0 %v5848_v41  ;;  %2216 = vmatpush.msrb.mxu1 %v2215_v2  ;;  %v2539_v2 = vand.u32 4294901760, %v2538_v50  ;;  %v1715_v41 = vld [vmem:[#allocation7 + $0x128] sm:$0xff]  ;;  %v2545_v50 = vand.u32 4294901760, %v2544_v62  ;;  %v7293_v62 = vld [vmem:[#allocation36_spill] sm:$0xff] }
 0x294   :  { %2350 = vmatmul.f32.vlgmr.msra.gmra.mxu3 %v7284_v8  ;;  %2300 = vmatpush.msra.mxu2 %v5868_v24  ;;  %v7287_v8 = vld [vmem:[#allocation39_spill] sm:$0xff]  ;;  %7290 = vst [vmem:[#allocation64_spill] sm:$0xff] %v5943_v38 }
 0x295   :  { %2528 = vmatpush.msrb.mxu3 %v2527_v29  ;;  %2133 = vmatpush.msrb.mxu0 %v5862_v20  ;;  %v2550_v29 = vsub.f32 %v5881_v6, %v7288_v5  ;;  %v7292_v5 = vand.u32 4294901760, %v5896_v17  ;;  %v1713_v6 = vld [vmem:[#allocation7 + $0x118] sm:$0xff]  ;;  %v1712_v20 = vld [vmem:[#allocation7 + $0x110] sm:$0xff] }
 0x296   :  { %2222 = vmatpush.msrb.mxu1 %v2221_v54  ;;  %2139 = vmatmul.f32.vlgmr.msrb.gmra.mxu0 %v7287_v8  ;;  %v1714_v54 = vld [vmem:[#allocation7 + $0x120] sm:$0xff]  ;;  %v5950_v8 = vand.u32 4294901760, %v1715_v41 }
 0x297   :  { %2534 = vmatpush.msrb.mxu3 %v2533_v19  ;;  %2303 = vmatpush.msra.mxu2 %v5885_v13  ;;  %v2556_v19 = vsub.f32 %v5896_v17, %v7292_v5  ;;  %v7295_v5 = vld [vmem:[#allocation31_spill] sm:$0xff]  ;;  %v7296_v17 = vld [vmem:[#allocation33_spill] sm:$0xff] }
 0x298   :  { %2363 = vmatpush.msra.mxu0 %v7291_v26  ;;  %2228 = vmatpush.msrb.mxu1 %v2227_v1  ;;  %v2551_v1 = vand.u32 4294901760, %v2550_v29  ;;  %v5960_v26 = vand.u32 4294901760, %v1714_v54  ;;  %v567_v10 = vadd.f32 %v7296_v17, %v7295_v5  ;;  %v5974_v17 = vand.u32 4294901760, %v1713_v6  ;;  %v1710_v5 = vld [vmem:[#allocation7 + $0x100] sm:$0xff] }
 0x299   :  { %2306 = vmatmul.f32.vlgmr.msra.gmra.mxu2 %v7293_v62  ;;  %2540 = vmatpush.msrb.mxu3 %v2539_v2  ;;  %v7297_v2 = vand.u32 4294901760, %v5917_v35  ;;  %v7142_v62 = vand.u32 4294901760, %v5943_v38  ;;  %v2557_v29 = vand.u32 4294901760, %v2556_v19  ;;  %v7301_v19 = vld [vmem:[#allocation44_spill] sm:$0xff] }
 0x29a   :  { %2475 = vmatpush.msrb.mxu2 %v5777_v61  ;;  %2367 = vmatpush.msra.mxu0 %v7294_v51  ;;  %v5972_v51 = vsub.f32 %v1715_v41, %v5950_v8  ;;  %v5983_v58 = vsub.f32 %v1714_v54, %v5960_v26  ;;  %v5985_v41 = vand.u32 4294901760, %v1712_v20 }
 0x29b   :  { %2234 = vmatpush.msrb.mxu1 %v2233_v49  ;;  %2546 = vmatpush.msrb.mxu3 %v2545_v50  ;;  %v2562_v9 = vsub.f32 %v5917_v35, %v7297_v2  ;;  %v7299_v49 = vld [vmem:[#allocation41_spill] sm:$0xff]  ;;  %v7300_v50 = vand.u32 4294901760, %v5929_v32  ;;  %v1711_v2 = vld [vmem:[#allocation7 + $0x108] sm:$0xff] }
 0x29c   :  { %2477 = vmatpush.msrb.mxu2 %v5781_v44  ;;  %2371 = vmatpush.msra.mxu0 %v7298_v3  ;;  %v605_v3 = vadd.f32 %v7301_v19, %v567_v10  ;;  %v7303_v10 = vld [vmem:[#allocation42_spill] sm:$0xff] }
 0x29d   :  { %2240 = vmatpush.msrb.mxu1 %v2239_v27  ;;  %2356 = vmatmul.f32.gmra.mxu3 %v7299_v49  ;;  %v2568_v48 = vsub.f32 %v5929_v32, %v7300_v50  ;;  %v7302_v27 = vand.u32 4294901760, %v5693_v43  ;;  %v2563_v49 = vand.u32 4294901760, %v2562_v9  ;;  %v2574_v50 = vsub.f32 %v5943_v38, %v7142_v62  ;;  %v7304_v43 = vld [vmem:[#allocation35_spill] sm:$0xff]  ;;  %v7308_v38 = vld [vmem:[#allocation40_spill] sm:$0xff] }
 0x29e   :  { %2479 = vmatpush.msrb.mxu2 %v5803_v57  ;;  %2552 = vmatpush.msrb.mxu3 %v2551_v1  ;;  %v5996_v1 = vsub.f32 %v1713_v6, %v5974_v17  ;;  %v5998_v32 = vand.u32 4294901760, %v1711_v2  ;;  %v7305_v9 = vand.u32 4294901760, %v5955_v42  ;;  %v6010_v6 = vsub.f32 %v1712_v20, %v5985_v41 }
 0x29f   :  { %2375 = vmatpush.msra.mxu0 %v7302_v27  ;;  %2246 = vmatpush.msrb.mxu1 %v2245_v15  ;;  %v2569_v15 = vand.u32 4294901760, %v2568_v48  ;;  %v7306_v27 = vand.u32 4294901760, %v5710_v4  ;;  %v6012_v62 = vand.u32 4294901760, %v1710_v5  ;;  %v2575_v48 = vand.u32 4294901760, %v2574_v50 }
 0x2a0   :  { %2481 = vmatpush.msrb.mxu2 %v5821_v45  ;;  %2558 = vmatpush.msrb.mxu3 %v2557_v29  ;;  %v2580_v19 = vsub.f32 %v5955_v42, %v7305_v9  ;;  %v7309_v4 = vand.u32 4294901760, %v5724_v16  ;;  %v7311_v29 = vld [vmem:[#allocation32_spill] sm:$0xff]  ;;  %v7314_v16 = vand.u32 4294901760, %v5736_v34 }
 0x2a1   :  { %2147 = vmatmul.f32.gmra.mxu0 %v7303_v10  ;;  %2248 = vmatmul.f32.vlgmr.msrb.gmra.mxu1 %v7304_v43  ;;  %v7307_v10 = vld [vmem:[#allocation43_spill] sm:$0xff]  ;;  %v6038_v20 = vsub.f32 %v1710_v5, %v6012_v62 }
 0x2a2   :  { %2379 = vmatpush.msra.mxu0 %v7306_v27  ;;  %2434 = vmatpush.msra.mxu1 %v5655_v36  ;;  %v646_v54 = vadd.f32 %v7307_v10, %v605_v3  ;;  %v7310_v36 = vand.u32 4294901760, %v5972_v51  ;;  %v6024_v27 = vsub.f32 %v1711_v2, %v5998_v32  ;;  %v7312_v3 = vld [vmem:[#allocation34_spill] sm:$0xff]  ;;  %v2581_v50 = vand.u32 4294901760, %v2580_v19 }
 0x2a3   :  { %2311 = vmatmul.f32.gmra.mxu2 %v7308_v38  ;;  %2564 = vmatpush.msrb.mxu3 %v2563_v49  ;;  %v571_v10 = vadd.f32 %v7312_v3, %v7311_v29  ;;  %v7313_v38 = vld [vmem:[#allocation46_spill] sm:$0xff]  ;;  %v2603_v2 = vand.u32 4294901760, %v6010_v6  ;;  %v7316_v29 = vld [vmem:[#allocation48_spill] sm:$0xff] }
 0x2a4   :  { %2483 = vmatpush.msrb.mxu2 %v5845_v37  ;;  %2383 = vmatpush.msra.mxu0 %v7309_v4  ;;  %v2586_v9 = vsub.f32 %v5972_v51, %v7310_v36  ;;  %v684_v49 = vadd.f32 %v7313_v38, %v646_v54  ;;  %v7315_v4 = vand.u32 4294901760, %v5983_v58  ;;  %v2609_v3 = vand.u32 4294901760, %v6024_v27  ;;  %v7319_v38 = vld [vmem:[#allocation47_spill] sm:$0xff] }
 0x2a5   :  { %2436 = vmatpush.msra.mxu1 %v5667_v55  ;;  %2570 = vmatpush.msrb.mxu3 %v2569_v15  ;;  %v7317_v55 = vand.u32 4294901760, %v5750_v21  ;;  %v7318_v15 = vand.u32 4294901760, %v5996_v1  ;;  %v610_v5 = vadd.f32 %v7319_v38, %v571_v10  ;;  %v2604_v21 = vsub.f32 %v6010_v6, %v2603_v2  ;;  %v1180_v38 = vpop.f32.mrf.mxu0 }
 0x2a6   :  { %2485 = vmatpush.msrb.mxu2 %v5859_v63  ;;  %2387 = vmatpush.msra.mxu0 %v7314_v16  ;;  %v2592_v36 = vsub.f32 %v5983_v58, %v7315_v4  ;;  %v718_v54 = vadd.f32 %v7316_v29, %v684_v49  ;;  %v2587_v34 = vand.u32 4294901760, %v2586_v9  ;;  %v2615_v9 = vand.u32 4294901760, %v6038_v20  ;;  %v7324_v29 = vld [vmem:[#allocation49_spill] sm:$0xff] }
 0x2a7   :  { %2438 = vmatpush.msra.mxu1 %v5674_v46  ;;  %2576 = vmatpush.msrb.mxu3 %v2575_v48  ;;  %v2598_v19 = vsub.f32 %v5996_v1, %v7318_v15  ;;  %v7320_v46 = vld [vmem:[#allocation38_spill] sm:$0xff]  ;;  %v7321_v16 = vand.u32 4294901760, %v5762_v22  ;;  %v2610_v10 = vsub.f32 %v6024_v27, %v2609_v3  ;;  %v2605_v22 = vand.u32 4294901760, %v2604_v21 }
 0x2a8   :  { %2487 = vmatpush.msrb.mxu2 %v5888_v23  ;;  %2391 = vmatpush.msra.mxu0 %v7317_v55  ;;  %v2593_v48 = vand.u32 4294901760, %v2592_v36  ;;  %v6057_v49 = vand.u32 4294901760, %v718_v54  ;;  %v7323_v36 = vand.u32 4294901760, %v5768_v47  ;;  %v7325_v15 = vand.u32 4294901760, %v5788_v31  ;;  %v7326_v47 = vld [vmem:[#allocation50_spill] sm:$0xff] }
 0x2a9   :  { %2440 = vmatpush.msra.mxu1 %v5681_v59  ;;  %2582 = vmatpush.msrb.mxu3 %v2581_v50  ;;  %v2599_v59 = vand.u32 4294901760, %v2598_v19  ;;  %v7322_v50 = vld [vmem:[#allocation45_spill] sm:$0xff] }
 0x2aa   :  { %2489 = vmatpush.msrb.mxu2 %v5903_v52  ;;  %2252 = vmatmul.f32.gmra.mxu1 %v7320_v46  ;;  %v652_v4 = vadd.f32 %v7322_v50, %v610_v5  ;;  %v7327_v5 = vand.u32 4294901760, %v5811_v11  ;;  %v7329_v11 = vand.u32 4294901760, %v5841_v56  ;;  %v7334_v50 = vld [vmem:[#allocation56_spill] sm:$0xff] }
 0x2ab   :  { %2395 = vmatpush.msra.mxu0 %v7321_v16  ;;  %2442 = vmatpush.msra.mxu1 %v5697_v0  ;;  %v2616_v0 = vsub.f32 %v6038_v20, %v2615_v9 }
 0x2ac   :  { %2491 = vmatpush.msrb.mxu2 %v5919_v30  ;;  %2588 = vmatpush.msrb.mxu3 %v2587_v34  ;;  %v688_v55 = vadd.f32 %v7324_v29, %v652_v4  ;;  %v6076_v34 = vsub.f32 %v718_v54, %v6057_v49 }
 0x2ad   :  { %2399 = vmatpush.msra.mxu0 %v7323_v36  ;;  %2444 = vmatpush.msra.mxu1 %v5707_v60  ;;  %v2611_v60 = vand.u32 4294901760, %v2610_v10  ;;  %v2617_v54 = vand.u32 4294901760, %v2616_v0  ;;  %v7333_v10 = vld [vmem:[#allocation55_spill] sm:$0xff]  ;;  %v7337_v0 = vld [vmem:[#allocation58_spill] sm:$0xff] }
 0x2ae   :  { %2493 = vmatpush.msrb.mxu2 %v5931_v18  ;;  %2594 = vmatpush.msrb.mxu3 %v2593_v48  ;;  %v722_v19 = vadd.f32 %v7326_v47, %v688_v55  ;;  %v2508_v31 = vand.u32 4294901760, %v6076_v34  ;;  %v1211_v48 = vpop.f32.mrf.mxu1  ;;  %v7335_v36 = vand.u32 4294901760, %v7333_v10  ;;  %v7339_v55 = vld [vmem:[#allocation59_spill] sm:$0xff] }
 0x2af   :  { %2403 = vmatpush.msra.mxu0 %v7325_v15  ;;  %2446 = vmatpush.msra.mxu1 %v5718_v7  ;;  %v7328_v7 = vand.u32 4294901760, %v5828_v28  ;;  %v7340_v15 = vld [vmem:[#allocation60_spill] sm:$0xff]  ;;  %v7341_v47 = vand.u32 4294901760, %v7339_v55 }
 0x2b0   :  { %2495 = vmatpush.msrb.mxu2 %v5950_v8  ;;  %2600 = vmatpush.msrb.mxu3 %v2599_v59  ;;  %v6092_v21 = vand.u32 4294901760, %v722_v19 }
 0x2b1   :  { %2407 = vmatpush.msra.mxu0 %v7327_v5  ;;  %2448 = vmatpush.msra.mxu1 %v5730_v12  ;;  %v7330_v12 = vand.u32 4294901760, %v5868_v24  ;;  %v1212_v24 = vadd.f32 %v1211_v48, %v1180_v38  ;;  %v7342_v5 = vld [vmem:[#allocation61_spill] sm:$0xff] }
 0x2b2   :  { %2497 = vmatpush.msrb.mxu2 %v5960_v26  ;;  %2606 = vmatpush.msrb.mxu3 %v2605_v22  ;;  %v6107_v28 = vsub.f32 %v722_v19, %v6092_v21  ;;  %v1289_v22 = vpop.f32.mrf.mxu2  ;;  %v1312_v19 = vpop.f32.mrf.mxu3 }
 0x2b3   :  { %2411 = vmatpush.msra.mxu0 %v7328_v7  ;;  %2450 = vmatpush.msra.mxu1 %v5747_v53  ;;  %v2509_v53 = vsub.f32 %v6076_v34, %v2508_v31  ;;  %v7343_v7 = vand.u32 4294901760, %v7342_v5 }
 0x2b4   :  { %2499 = vmatpush.msrb.mxu2 %v5974_v17  ;;  %2612 = vmatpush.msrb.mxu3 %v2611_v60 }
 0x2b5   :  { %2415 = vmatpush.msra.mxu0 %v7329_v11  ;;  %2452 = vmatpush.msra.mxu1 %v5754_v33  ;;  %v7331_v33 = vand.u32 4294901760, %v5885_v13  ;;  %v2510_v56 = vand.u32 4294901760, %v2509_v53  ;;  %v2516_v13 = vand.u32 4294901760, %v6107_v28  ;;  %v7344_v11 = vld [vmem:[#allocation62_spill] sm:$0xff] }
 0x2b6   :  { %2501 = vmatpush.msrb.mxu2 %v5985_v41  ;;  %2618 = vmatpush.msrb.mxu3 %v2617_v54  ;;  %v1262_v16 = vpop.f32.mrf.mxu1  ;;  %v7345_v53 = vand.u32 4294901760, %v7344_v11 }
 0x2b7   :  { %2419 = vmatpush.msra.mxu0 %v7330_v12  ;;  %2454 = vmatpush.msra.mxu1 %v5771_v25  ;;  %v1237_v25 = vpop.f32.mrf.mxu0 }
 0x2b8   :  { %2620 = vmatmul.f32.vlgmr.msrb.gmra.mxu3 %v6057_v49  ;;  %2503 = vmatpush.msrb.mxu2 %v5998_v32  ;;  %v1238_v59 = vadd.f32 %v1237_v25, %v1212_v24  ;;  %v7347_v24 = vld [vmem:[#allocation63_spill] sm:$0xff] }
 0x2b9   :  { %2806 = vmatpush.msra.mxu3 %v5777_v61  ;;  %2423 = vmatpush.msra.mxu0 %v7331_v33  ;;  %v7346_v33 = vand.u32 4294901760, %v5917_v35 }
 0x2ba   :  { %2456 = vmatpush.msra.mxu1 %v5793_v14  ;;  %2425 = vmatmul.f32.vlgmr.msra.gmra.mxu0 %v7304_v43  ;;  %v7332_v14 = vand.u32 4294901760, %v5801_v39  ;;  %v1263_v4 = vadd.f32 %v1262_v16, %v1238_v59  ;;  %v1524_v25 = vpop.f32.mrf.mxu2  ;;  %v7352_v59 = vand.u32 4294901760, %v5972_v51 }
 0x2bb   :  { %2808 = vmatpush.msra.mxu3 %v5781_v44  ;;  %2505 = vmatpush.msrb.mxu2 %v6012_v62 }
 0x2bc   :  { %2630 = vmatpush.msrb.mxu0 %v5801_v39  ;;  %2458 = vmatpush.msra.mxu1 %v5808_v40  ;;  %v7336_v40 = vld [vmem:[#allocation57_spill] sm:$0xff]  ;;  %v2517_v39 = vsub.f32 %v6107_v28, %v2516_v13  ;;  %v1290_v60 = vadd.f32 %v1289_v22, %v1263_v4 }
 0x2bd   :  { %2511 = vmatmul.f32.vlgmr.msrb.gmra.mxu2 %v2510_v56  ;;  %2810 = vmatpush.msra.mxu3 %v5803_v57  ;;  %v7338_v29 = vand.u32 4294901760, %v7336_v40  ;;  %v7348_v56 = vand.u32 4294901760, %v7347_v24 }
 0x2be   :  { %2735 = vmatpush.msra.mxu2 %v7332_v14  ;;  %2633 = vmatpush.msrb.mxu0 %v7333_v10  ;;  %v2518_v38 = vand.u32 4294901760, %v2517_v39  ;;  %v1313_v48 = vadd.f32 %v1312_v19, %v1290_v60  ;;  %v1470_v12 = vpop.f32.mrf.mxu1  ;;  %v7353_v14 = vand.u32 4294901760, %v5983_v58  ;;  %v7363_v60 = vld [vmem:[#allocation28_spill] sm:$0xff] }
 0x2bf   :  { %2460 = vmatpush.msra.mxu1 %v7334_v50  ;;  %2812 = vmatpush.msra.mxu3 %v5821_v45  ;;  %v1369_v54 = vpop.f32.mrf.mxu0 }
 0x2c0   :  { %2739 = vmatpush.msra.mxu2 %v7335_v36  ;;  %2636 = vmatpush.msrb.mxu0 %v7336_v40 }
 0x2c1   :  { %2462 = vmatpush.msra.mxu1 %v7337_v0  ;;  %2624 = vmatmul.f32.gmra.mxu3 %v6092_v21 }
 0x2c2   :  { %2743 = vmatpush.msra.mxu2 %v7338_v29  ;;  %2814 = vmatpush.msra.mxu3 %v5845_v37 }
 0x2c3   :  { %2639 = vmatpush.msrb.mxu0 %v7339_v55  ;;  %2464 = vmatpush.msra.mxu1 %v7340_v15 }
 0x2c4   :  { %2747 = vmatpush.msra.mxu2 %v7341_v47  ;;  %2816 = vmatpush.msra.mxu3 %v5859_v63  ;;  %v7364_v47 = vld [vmem:[#allocation18_spill] sm:$0xff] }
 0x2c5   :  { %2429 = vmatmul.f32.gmra.mxu0 %v7320_v46  ;;  %2466 = vmatmul.f32.vlgmr.msra.gmra.mxu1 %v7304_v43  ;;  %v1370_v43 = vadd.f32 %v1369_v54, %v1313_v48  ;;  %v7366_v48 = vld [vmem:[#allocation29_spill] sm:$0xff] }
 0x2c6   :  { %2642 = vmatpush.msrb.mxu0 %v7342_v5  ;;  %2688 = vmatpush.msrb.mxu1 %v5777_v61 }
 0x2c7   :  { %2519 = vmatmul.f32.gmra.mxu2 %v2518_v38  ;;  %2818 = vmatpush.msra.mxu3 %v5888_v23  ;;  %v1471_v61 = vadd.f32 %v1470_v12, %v1370_v43  ;;  %v7365_v38 = vld [vmem:[#allocation23_spill] sm:$0xff]  ;;  %v7368_v12 = vld [vmem:[#allocation22_spill] sm:$0xff] }
 0x2c8   :  { %2751 = vmatpush.msra.mxu2 %v7343_v7  ;;  %2645 = vmatpush.msrb.mxu0 %v7344_v11  ;;  %v7367_v11 = vld [vmem:[#allocation30_spill] sm:$0xff] }
 0x2c9   :  { %2690 = vmatpush.msrb.mxu1 %v5781_v44  ;;  %2820 = vmatpush.msra.mxu3 %v5903_v52  ;;  %v1563_v44 = vpop.f32.mrf.mxu3  ;;  %v1525_v16 = vadd.f32 %v1524_v25, %v1471_v61  ;;  %v7369_v61 = vld [vmem:[#allocation27_spill] sm:$0xff] }
 0x2ca   :  { %2755 = vmatpush.msra.mxu2 %v7345_v53  ;;  %2648 = vmatpush.msrb.mxu0 %v5917_v35 }
 0x2cb   :  { %2692 = vmatpush.msrb.mxu1 %v5803_v57  ;;  %2822 = vmatpush.msra.mxu3 %v5919_v30  ;;  %v7349_v57 = vld [vmem:[#allocation64_spill] sm:$0xff] }
 0x2cc   :  { %2759 = vmatpush.msra.mxu2 %v7346_v33  ;;  %2651 = vmatpush.msrb.mxu0 %v7347_v24  ;;  %v7350_v35 = vand.u32 4294901760, %v7349_v57  ;;  %v7370_v24 = vld [vmem:[#allocation26_spill] sm:$0xff] }
 0x2cd   :  { %2694 = vmatpush.msrb.mxu1 %v5821_v45  ;;  %2824 = vmatpush.msra.mxu3 %v5931_v18  ;;  %v7351_v45 = vand.u32 4294901760, %v5955_v42 }
 0x2ce   :  { %2763 = vmatpush.msra.mxu2 %v7348_v56  ;;  %2470 = vmatmul.f32.gmra.mxu1 %v7320_v46  ;;  %v4423_v46 = vld [vmem:[%s7037_s12] ss:$0 sm:$0xff] }
 0x2cf   :  { %2654 = vmatpush.msrb.mxu0 %v7349_v57  ;;  %2696 = vmatpush.msrb.mxu1 %v5845_v37  ;;  %v1632_v37 = vpop.f32.mrf.mxu0 }
 0x2d0   :  { %2767 = vmatpush.msra.mxu2 %v7350_v35  ;;  %2826 = vmatpush.msra.mxu3 %v5950_v8 }
 0x2d1   :  { %2657 = vmatpush.msrb.mxu0 %v5955_v42  ;;  %2698 = vmatpush.msrb.mxu1 %v5859_v63  ;;  %v1564_v63 = vadd.f32 %v1563_v44, %v1525_v16  ;;  %v1877_v50 = vpop.f32.mrf.mxu3 }
 0x2d2   :  { %2771 = vmatpush.msra.mxu2 %v7351_v45  ;;  %2828 = vmatpush.msra.mxu3 %v5960_v26 }
 0x2d3   :  { %2660 = vmatpush.msrb.mxu0 %v5972_v51  ;;  %2700 = vmatpush.msrb.mxu1 %v5888_v23  ;;  %v1633_v10 = vadd.f32 %v1632_v37, %v1564_v63  ;;  %v4424_v51 = vld [vmem:[%s7035_s10] ss:$0 sm:$0xff] }
 0x2d4   :  { %2775 = vmatpush.msra.mxu2 %v7352_v59  ;;  %2830 = vmatpush.msra.mxu3 %v5974_v17 }
 0x2d5   :  { %2663 = vmatpush.msrb.mxu0 %v5983_v58  ;;  %2702 = vmatpush.msrb.mxu1 %v5903_v52  ;;  %v1768_v42 = vpop.f32.mrf.mxu2  ;;  %v7354_v52 = vand.u32 4294901760, %v5996_v1 }
 0x2d6   :  { %2779 = vmatpush.msra.mxu2 %v7353_v14  ;;  %2832 = vmatpush.msra.mxu3 %v5985_v41  ;;  %v1769_v23 = vadd.f32 %v4423_v46, %v1768_v42 }
 0x2d7   :  { %2666 = vmatpush.msrb.mxu0 %v5996_v1  ;;  %2704 = vmatpush.msrb.mxu1 %v5919_v30  ;;  %v1669_v4 = vpop.f32.mrf.mxu1 }
 0x2d8   :  { %2783 = vmatpush.msra.mxu2 %v7354_v52  ;;  %2834 = vmatpush.msra.mxu3 %v5998_v32  ;;  %v1670_v58 = vadd.f32 %v1669_v4, %v1633_v10  ;;  %v1878_v36 = vadd.f32 %v1877_v50, %v1769_v23 }
 0x2d9   :  { %2669 = vmatpush.msrb.mxu0 %v6010_v6  ;;  %2706 = vmatpush.msrb.mxu1 %v5931_v18 }
 0x2da   :  { %2787 = vmatpush.msra.mxu2 %v2603_v2  ;;  %2836 = vmatpush.msra.mxu3 %v6012_v62  ;;  %v1676_v40 = vadd.f32 %v4424_v51, %v1670_v58  ;;  %v7356_v2 = vld [vmem:[#allocation20_spill] sm:$0xff] }
 0x2db   :  { %2672 = vmatpush.msrb.mxu0 %v6024_v27  ;;  %2708 = vmatpush.msrb.mxu1 %v5950_v8  ;;  %v1881_v27 = vpop.f32.mrf.mxu3 }
 0x2dc   :  { %2838 = vmatmul.f32.vlgmr.msra.gmra.mxu3 %v6057_v49  ;;  %2791 = vmatpush.msra.mxu2 %v2609_v3  ;;  %v1677_v30 = vmax.f32 %v1676_v40, 0.0 }
 0x2dd   :  { %2675 = vmatpush.msrb.mxu0 %v6038_v20  ;;  %2710 = vmatpush.msrb.mxu1 %v5960_v26 }
 0x2de   :  { %2678 = vmatmul.f32.vlgmr.msrb.gmra.mxu0 %v6076_v34  ;;  %2795 = vmatpush.msra.mxu2 %v2615_v9  ;;  %v6210_v18 = vand.u32 4294901760, %v1677_v30  ;;  %v1776_v1 = vpop.f32.mrf.mxu2  ;;  %v7359_v34 = vld [vmem:[#allocation24_spill] sm:$0xff] }
 0x2df   :  { %2712 = vmatpush.msrb.mxu1 %v5974_v17  ;;  %2797 = vmatmul.f32.vlgmr.msra.gmra.mxu2 %v6057_v49  ;;  %v1777_v8 = vadd.f32 %v4423_v46, %v1776_v1  ;;  %v7358_v49 = vld [vmem:[#allocation21_spill] sm:$0xff] }
 0x2e0   :  { %v6215_v6 = vsub.f32 %v1677_v30, %v6210_v18  ;;  %2864 = vmatpush.msra.mxu0 %v6210_v18  ;;  %2985 = vmatpush.msrb.mxu3 %v6210_v18  ;;  %v3129_v1 = vld [vmem:[#allocation5 + $0xf8] sm:$0xff] }
 0x2e1   :  { %2714 = vmatpush.msrb.mxu1 %v5985_v41  ;;  %v1882_v26 = vadd.f32 %v1881_v27, %v1777_v8  ;;  %v6264_v8 = vand.u32 4294901760, %v3129_v1 }
 0x2e2   :  { %2949 = vmatpush.msrb.mxu2 %v6215_v6  ;;  %v6222_v20 = vand.u32 4294901760, %v6215_v6 }
 0x2e3   :  { %2716 = vmatpush.msrb.mxu1 %v5998_v32  ;;  %v7355_v32 = vld [vmem:[#allocation17_spill] sm:$0xff] }
 0x2e4   :  { %2842 = vmatmul.f32.gmra.mxu3 %v6092_v21  ;;  %3027 = vmatpush.msrb.mxu0 %v6222_v20  ;;  %v2914_v17 = vsub.f32 %v6215_v6, %v6222_v20 }
 0x2e5   :  { %2718 = vmatpush.msrb.mxu1 %v6012_v62  ;;  %v7357_v62 = vld [vmem:[#allocation16_spill] sm:$0xff]  ;;  %3131 = vmatpush.msra.mxu2 %v6264_v8 }
 0x2e6   :  { %2683 = vmatmul.f32.gmra.mxu0 %v6107_v28  ;;  %2722 = vmatmul.f32.vlgmr.msrb.gmra.mxu1 %v2508_v31  ;;  %v6233_v41 = vand.u32 4294901760, %v2914_v17  ;;  %v7360_v31 = vld [vmem:[#allocation15_spill] sm:$0xff]  ;;  %v3128_v17 = vld [vmem:[#allocation5 + $0xf0] sm:$0xff] }
 0x2e7   :  { %2801 = vmatmul.f32.gmra.mxu2 %v6092_v21  ;;  %v7361_v21 = vld [vmem:[#allocation19_spill] sm:$0xff] }
 0x2e8   :  { %2916 = vmatpush.msra.mxu1 %v6233_v41 }
 0x2ea   :  { %3059 = vmatpush.msrb.mxu1 %v6210_v18 }
 0x2ec   :  { %2989 = vmatmul.f32.vlgmr.msrb.gmra.mxu3 %v7355_v32  ;;  %v6267_v32 = vsub.f32 %v3129_v1, %v6264_v8 }
 0x2ee   :  { %2728 = vmatmul.f32.gmra.mxu1 %v2516_v13  ;;  %2870 = vmatmul.f32.vlgmr.msra.gmra.mxu0 %v7356_v2  ;;  %v7362_v13 = vld [vmem:[#allocation25_spill] sm:$0xff]  ;;  %v6269_v2 = vand.u32 4294901760, %v3128_v17 }
 0x2ef   :  { %2952 = vmatmul.f32.vlgmr.msrb.gmra.mxu2 %v7357_v62  ;;  %v1935_v3 = vpop.f32.mrf.mxu0  ;;  %3286 = vmatpush.msra.mxu0 %v6267_v32 }
 0x2f0   :  { %v1936_v9 = vadd.f32 %v1935_v3, %v1878_v36  ;;  %v3127_v3 = vld [vmem:[#allocation5 + $0xe8] sm:$0xff]  ;;  %3133 = vmatpush.msra.mxu2 %v6269_v2 }
 0x2f3   :  { %v2095_v55 = vpop.f32.mrf.mxu3 }
 0x2f4   :  { %2995 = vmatmul.f32.gmra.mxu3 %v7358_v49  ;;  %v6277_v49 = vsub.f32 %v3128_v17, %v6269_v2 }
 0x2f6   :  { %2878 = vmatmul.f32.gmra.mxu0 %v7359_v34  ;;  %2918 = vmatmul.f32.vlgmr.msra.gmra.mxu1 %v7360_v31  ;;  %v6279_v34 = vand.u32 4294901760, %v3127_v3 }
 0x2f7   :  { %2957 = vmatmul.f32.gmra.mxu2 %v7361_v21  ;;  %3344 = vmatpush.msra.mxu1 %v6264_v8 }
 0x2f8   :  { %v2054_v39 = vpop.f32.mrf.mxu2  ;;  %3135 = vmatpush.msra.mxu2 %v6279_v34  ;;  %3289 = vmatpush.msra.mxu0 %v6277_v49 }
 0x2f9   :  { %3346 = vmatpush.msra.mxu1 %v6269_v2 }
 0x2fa   :  { %v1940_v22 = vpop.f32.mrf.mxu0  ;;  %v1979_v0 = vpop.f32.mrf.mxu1 }
 0x2fb   :  { %v1941_v29 = vadd.f32 %v1940_v22, %v1882_v26  ;;  %v1980_v28 = vadd.f32 %v1979_v0, %v1936_v9  ;;  %v3181_v9 = vand.u32 4294901760, %v6267_v32  ;;  %v3187_v22 = vand.u32 4294901760, %v6277_v49  ;;  %3348 = vmatpush.msra.mxu1 %v6279_v34 }
 0x2fc   :  { %3001 = vmatmul.f32.gmra.mxu3 %v7362_v13  ;;  %v2099_v53 = vpop.f32.mrf.mxu3  ;;  %v6289_v0 = vsub.f32 %v3127_v3, %v6279_v34 }
 0x2fd   :  { %v2055_v15 = vadd.f32 %v2054_v39, %v1980_v28  ;;  %v3182_v21 = vsub.f32 %v6267_v32, %v3181_v9  ;;  %v3125_v28 = vld [vmem:[#allocation5 + $0xd8] sm:$0xff] }
 0x2fe   :  { %2886 = vmatmul.f32.gmra.mxu0 %v7363_v60  ;;  %2922 = vmatmul.f32.gmra.mxu1 %v7364_v47  ;;  %v3193_v60 = vand.u32 4294901760, %v6289_v0 }
 0x2ff   :  { %v2096_v19 = vadd.f32 %v2095_v55, %v2055_v15  ;;  %2962 = vmatmul.f32.gmra.mxu2 %v7365_v38  ;;  %v3183_v55 = vand.u32 4294901760, %v3182_v21  ;;  %v3188_v15 = vsub.f32 %v6277_v49, %v3187_v22  ;;  %3292 = vmatpush.msra.mxu0 %v6289_v0  ;;  %v6305_v38 = vand.u32 4294901760, %v3125_v28 }
 0x301   :  { %3184 = vmatpush.msra.mxu3 %v3183_v55 }
 0x302   :  { %v2058_v7 = vpop.f32.mrf.mxu2 }
 0x303   :  { %v1985_v5 = vpop.f32.mrf.mxu1 }
 0x304   :  { %v1986_v54 = vadd.f32 %v1985_v5, %v1941_v29  ;;  %3006 = vmatmul.f32.gmra.mxu3 %v7366_v48  ;;  %v3124_v5 = vld [vmem:[#allocation5 + $0xd0] sm:$0xff]  ;;  %v3189_v48 = vand.u32 4294901760, %v3188_v15 }
 0x306   :  { %2893 = vmatmul.f32.gmra.mxu0 %v7367_v11  ;;  %2926 = vmatmul.f32.gmra.mxu1 %v7368_v12  ;;  %v2059_v43 = vadd.f32 %v2058_v7, %v1986_v54  ;;  %v3194_v7 = vsub.f32 %v6289_v0, %v3193_v60  ;;  %v6311_v11 = vand.u32 4294901760, %v3124_v5 }
 0x307   :  { %2966 = vmatmul.f32.gmra.mxu2 %v7369_v61  ;;  %v3123_v61 = vld [vmem:[#allocation5 + $0xc8] sm:$0xff]  ;;  %3190 = vmatpush.msra.mxu3 %v3189_v48 }
 0x308   :  { %v2100_v33 = vadd.f32 %v2099_v53, %v2059_v43  ;;  %v6315_v53 = vsub.f32 %v3125_v28, %v6305_v38 }
 0x30e   :  { %2929 = vmatmul.f32.gmra.mxu1 %v7370_v24  ;;  %3029 = vmatmul.f32.vlgmr.msrb.gmra.mxu0 %v7360_v31 }
 0x313   :  { %v2140_v25 = vpop.f32.mrf.mxu0 }
 0x314   :  { %v2141_v44 = vadd.f32 %v2140_v25, %v2096_v19  ;;  %v6322_v25 = vsub.f32 %v3124_v5, %v6311_v11 }
 0x316   :  { %3033 = vmatmul.f32.gmra.mxu0 %v7364_v47  ;;  %3061 = vmatmul.f32.vlgmr.msrb.gmra.mxu1 %v7360_v31  ;;  %v3126_v31 = vld [vmem:[#allocation5 + $0xe0] sm:$0xff] }
 0x317   :  { %v2351_v46 = vpop.f32.mrf.mxu3  ;;  %v6291_v39 = vand.u32 4294901760, %v3126_v31 }
 0x319   :  { %3137 = vmatpush.msra.mxu2 %v6291_v39  ;;  %v6303_v19 = vsub.f32 %v3126_v31, %v6291_v39  ;;  %3350 = vmatpush.msra.mxu1 %v6291_v39  ;;  %v3118_v31 = vld [vmem:[#allocation5 + $0xa0] sm:$0xff] }
 0x31b   :  { %v3199_v43 = vand.u32 4294901760, %v6303_v19  ;;  %3139 = vmatpush.msra.mxu2 %v6305_v38  ;;  %3295 = vmatpush.msra.mxu0 %v6303_v19 }
 0x31c   :  { %v2307_v16 = vpop.f32.mrf.mxu2  ;;  %3352 = vmatpush.msra.mxu1 %v6305_v38 }
 0x31d   :  { %3141 = vmatpush.msra.mxu2 %v6311_v11  ;;  %3298 = vmatpush.msra.mxu0 %v6315_v53 }
 0x31e   :  { %3065 = vmatmul.f32.gmra.mxu1 %v7364_v47  ;;  %v2148_v56 = vpop.f32.mrf.mxu0  ;;  %v2249_v57 = vpop.f32.mrf.mxu1  ;;  %3037 = vmatmul.f32.gmra.mxu0 %v7368_v12 }
 0x31f   :  { %v2149_v35 = vadd.f32 %v2148_v56, %v2100_v33  ;;  %v2250_v45 = vadd.f32 %v2249_v57, %v2141_v44  ;;  %v6324_v44 = vand.u32 4294901760, %v3123_v61  ;;  %v3200_v56 = vsub.f32 %v6303_v19, %v3199_v43  ;;  %3354 = vmatpush.msra.mxu1 %v6311_v11  ;;  %3301 = vmatpush.msra.mxu0 %v6322_v25 }
 0x320   :  { %v2357_v50 = vpop.f32.mrf.mxu3  ;;  %v3205_v57 = vand.u32 4294901760, %v6315_v53 }
 0x321   :  { %v2308_v37 = vadd.f32 %v2307_v16, %v2250_v45  ;;  %v3122_v16 = vld [vmem:[#allocation5 + $0xc0] sm:$0xff]  ;;  %v6335_v45 = vsub.f32 %v3123_v61, %v6324_v44  ;;  %3143 = vmatpush.msra.mxu2 %v6324_v44  ;;  %3356 = vmatpush.msra.mxu1 %v6324_v44 }
 0x323   :  { %v2352_v59 = vadd.f32 %v2351_v46, %v2308_v37  ;;  %v6337_v46 = vand.u32 4294901760, %v3122_v16  ;;  %v3201_v37 = vand.u32 4294901760, %v3200_v56  ;;  %3304 = vmatpush.msra.mxu0 %v6335_v45 }
 0x325   :  { %3145 = vmatpush.msra.mxu2 %v6337_v46  ;;  %3358 = vmatpush.msra.mxu1 %v6337_v46 }
 0x326   :  { %3069 = vmatmul.f32.gmra.mxu1 %v7368_v12  ;;  %3040 = vmatmul.f32.gmra.mxu0 %v7370_v24  ;;  %v2312_v14 = vpop.f32.mrf.mxu2 }
 0x327   :  { %v2253_v63 = vpop.f32.mrf.mxu1 }
 0x328   :  { %v2254_v42 = vadd.f32 %v2253_v63, %v2149_v35  ;;  %v3211_v35 = vand.u32 4294901760, %v6322_v25  ;;  %v3121_v63 = vld [vmem:[#allocation5 + $0xb8] sm:$0xff] }
 0x32a   :  { %v2313_v10 = vadd.f32 %v2312_v14, %v2254_v42  ;;  %v3212_v42 = vsub.f32 %v6322_v25, %v3211_v35  ;;  %v3217_v14 = vand.u32 4294901760, %v6335_v45 }
 0x32c   :  { %v2358_v23 = vadd.f32 %v2357_v50, %v2313_v10  ;;  %v6350_v10 = vsub.f32 %v3122_v16, %v6337_v46  ;;  %v6352_v50 = vand.u32 4294901760, %v3121_v63 }
 0x32e   :  { %3072 = vmatmul.f32.gmra.mxu1 %v7370_v24  ;;  %v3195_v24 = vand.u32 4294901760, %v3194_v7  ;;  %3147 = vmatpush.msra.mxu2 %v6352_v50 }
 0x32f   :  { %3307 = vmatpush.msra.mxu0 %v6350_v10  ;;  %3360 = vmatpush.msra.mxu1 %v6352_v50 }
 0x330   :  { %3196 = vmatpush.msra.mxu3 %v3195_v24  ;;  %v3116_v24 = vld [vmem:[#allocation5 + $0x90] sm:$0xff] }
 0x331   :  { %v6409_v16 = vand.u32 4294901760, %v3116_v24 }
 0x332   :  { %3202 = vmatpush.msra.mxu3 %v3201_v37 }
 0x337   :  { %v2426_v51 = vpop.f32.mrf.mxu0 }
 0x338   :  { %v2427_v4 = vadd.f32 %v2426_v51, %v2352_v59  ;;  %v3206_v59 = vsub.f32 %v6315_v53, %v3205_v57  ;;  %v3120_v51 = vld [vmem:[#allocation5 + $0xb0] sm:$0xff] }
 0x33b   :  { %v2621_v27 = vpop.f32.mrf.mxu3 }
 0x340   :  { %v2512_v36 = vpop.f32.mrf.mxu2 }
 0x342   :  { %v2430_v52 = vpop.f32.mrf.mxu0  ;;  %v2467_v58 = vpop.f32.mrf.mxu1 }
 0x343   :  { %v2431_v40 = vadd.f32 %v2430_v52, %v2358_v23  ;;  %v2468_v30 = vadd.f32 %v2467_v58, %v2427_v4  ;;  %v3207_v23 = vand.u32 4294901760, %v3206_v59  ;;  %v3213_v4 = vand.u32 4294901760, %v3212_v42  ;;  %v3115_v42 = vld [vmem:[#allocation5 + $0x88] sm:$0xff] }
 0x344   :  { %v2625_v12 = vpop.f32.mrf.mxu3  ;;  %v3218_v52 = vsub.f32 %v6335_v45, %v3217_v14  ;;  %v3223_v58 = vand.u32 4294901760, %v6350_v10 }
 0x345   :  { %v2513_v26 = vadd.f32 %v2512_v36, %v2468_v30  ;;  %v6361_v36 = vsub.f32 %v3121_v63, %v6352_v50  ;;  %3208 = vmatpush.msra.mxu3 %v3207_v23  ;;  %v3119_v30 = vld [vmem:[#allocation5 + $0xa8] sm:$0xff] }
 0x346   :  { %v3219_v1 = vand.u32 4294901760, %v3218_v52  ;;  %v6372_v17 = vand.u32 4294901760, %v3119_v30  ;;  %v6423_v52 = vand.u32 4294901760, %v3115_v42 }
 0x347   :  { %v6273_v62 = vadd.f32 %v2621_v27, %v2513_v26  ;;  %v3224_v27 = vsub.f32 %v6350_v10, %v3223_v58  ;;  %v3229_v26 = vand.u32 4294901760, %v6361_v36  ;;  %3214 = vmatpush.msra.mxu3 %v3213_v4  ;;  %3310 = vmatpush.msra.mxu0 %v6361_v36  ;;  %v6421_v4 = vsub.f32 %v3116_v24, %v6409_v16 }
 0x348   :  { %v6384_v28 = vsub.f32 %v3119_v30, %v6372_v17 }
 0x349   :  { %v3225_v21 = vand.u32 4294901760, %v3224_v27  ;;  %3220 = vmatpush.msra.mxu3 %v3219_v1  ;;  %v3114_v1 = vld [vmem:[#allocation5 + $0x80] sm:$0xff] }
 0x34a   :  { %v2520_v47 = vpop.f32.mrf.mxu2  ;;  %v3241_v48 = vand.u32 4294901760, %v6384_v28 }
 0x34b   :  { %v2471_v29 = vpop.f32.mrf.mxu1  ;;  %3226 = vmatpush.msra.mxu3 %v3225_v21  ;;  %v3259_v21 = vand.u32 4294901760, %v6421_v4 }
 0x34c   :  { %v2472_v13 = vadd.f32 %v2471_v29, %v2431_v40  ;;  %v6365_v40 = vand.u32 4294901760, %v3120_v51  ;;  %v3230_v29 = vsub.f32 %v6361_v36, %v3229_v26 }
 0x34e   :  { %v2521_v54 = vadd.f32 %v2520_v47, %v2472_v13  ;;  %v6377_v3 = vsub.f32 %v3120_v51, %v6365_v40  ;;  %3149 = vmatpush.msra.mxu2 %v6365_v40  ;;  %v6386_v13 = vand.u32 4294901760, %v3118_v31  ;;  %3362 = vmatpush.msra.mxu1 %v6365_v40  ;;  %v3117_v47 = vld [vmem:[#allocation5 + $0x98] sm:$0xff] }
 0x34f   :  { %v6402_v61 = vand.u32 4294901760, %v3117_v47 }
 0x350   :  { %v6319_v33 = vadd.f32 %v2625_v12, %v2521_v54  ;;  %v3235_v15 = vand.u32 4294901760, %v6377_v3  ;;  %3151 = vmatpush.msra.mxu2 %v6372_v17  ;;  %v3231_v54 = vand.u32 4294901760, %v3230_v29  ;;  %v6395_v7 = vsub.f32 %v3118_v31, %v6386_v13  ;;  %3313 = vmatpush.msra.mxu0 %v6377_v3 }
 0x351   :  { %3364 = vmatpush.msra.mxu1 %v6372_v17  ;;  %v6414_v63 = vsub.f32 %v3117_v47, %v6402_v61  ;;  %v6431_v29 = vsub.f32 %v3115_v42, %v6423_v52 }
 0x352   :  { %v3236_v12 = vsub.f32 %v6377_v3, %v3235_v15  ;;  %3153 = vmatpush.msra.mxu2 %v6386_v13  ;;  %v3247_v56 = vand.u32 4294901760, %v6395_v7  ;;  %3316 = vmatpush.msra.mxu0 %v6384_v28 }
 0x353   :  { %3366 = vmatpush.msra.mxu1 %v6386_v13  ;;  %3232 = vmatpush.msra.mxu3 %v3231_v54  ;;  %v7145_v30 = vand.u32 4294901760, %v6414_v63  ;;  %v3265_v42 = vand.u32 4294901760, %v6431_v29 }
 0x354   :  { %v3237_v59 = vand.u32 4294901760, %v3236_v12  ;;  %3155 = vmatpush.msra.mxu2 %v6402_v61  ;;  %v3248_v51 = vsub.f32 %v6395_v7, %v3247_v56  ;;  %3319 = vmatpush.msra.mxu0 %v6395_v7 }
 0x355   :  { %3368 = vmatpush.msra.mxu1 %v6402_v61  ;;  %v3254_v12 = vsub.f32 %v6414_v63, %v7145_v30 }
 0x356   :  { %3238 = vmatpush.msra.mxu3 %v3237_v59  ;;  %3157 = vmatpush.msra.mxu2 %v6409_v16  ;;  %v3249_v31 = vand.u32 4294901760, %v3248_v51  ;;  %v3260_v59 = vsub.f32 %v6421_v4, %v3259_v21 }
 0x357   :  { %3322 = vmatpush.msra.mxu0 %v6414_v63  ;;  %3370 = vmatpush.msra.mxu1 %v6409_v16 }
 0x358   :  { %3159 = vmatpush.msra.mxu2 %v6423_v52 }
 0x359   :  { %3325 = vmatpush.msra.mxu0 %v6421_v4  ;;  %3372 = vmatpush.msra.mxu1 %v6423_v52 }
 0x35b   :  { %v2679_v55 = vpop.f32.mrf.mxu0  ;;  %3328 = vmatpush.msra.mxu0 %v6431_v29 }
 0x35c   :  { %v2680_v5 = vadd.f32 %v2679_v55, %v6273_v62  ;;  %v3242_v62 = vsub.f32 %v6384_v28, %v3241_v48  ;;  %v6433_v55 = vand.u32 4294901760, %v3114_v1 }
 0x35e   :  { %v3243_v23 = vand.u32 4294901760, %v3242_v62  ;;  %v6449_v51 = vsub.f32 %v3114_v1, %v6433_v55  ;;  %3161 = vmatpush.msra.mxu2 %v6433_v55  ;;  %3374 = vmatpush.msra.mxu1 %v6433_v55 }
 0x35f   :  { %v2839_v37 = vpop.f32.mrf.mxu3 }
 0x360   :  { %3244 = vmatpush.msra.mxu3 %v3243_v23  ;;  %v3255_v23 = vand.u32 4294901760, %v3254_v12  ;;  %3391 = vmatpush.msrb.mxu2 %v3181_v9 }
 0x361   :  { %3331 = vmatpush.msra.mxu0 %v6449_v51 }
 0x362   :  { %v2798_v27 = vpop.f32.mrf.mxu2  ;;  %3250 = vmatpush.msra.mxu3 %v3249_v31  ;;  %3395 = vmatpush.msrb.mxu2 %v3187_v22 }
 0x363   :  { %v2684_v47 = vpop.f32.mrf.mxu0  ;;  %v2723_v54 = vpop.f32.mrf.mxu1 }
 0x364   :  { %v2685_v24 = vadd.f32 %v2684_v47, %v6319_v33  ;;  %v2724_v62 = vadd.f32 %v2723_v54, %v2680_v5  ;;  %v3261_v33 = vand.u32 4294901760, %v3260_v59  ;;  %v3266_v5 = vsub.f32 %v6431_v29, %v3265_v42  ;;  %3256 = vmatpush.msra.mxu3 %v3255_v23  ;;  %3399 = vmatpush.msrb.mxu2 %v3193_v60 }
 0x365   :  { %v3271_v54 = vand.u32 4294901760, %v6449_v51 }
 0x366   :  { %v2799_v30 = vadd.f32 %v2798_v27, %v2724_v62  ;;  %v3267_v1 = vand.u32 4294901760, %v3266_v5  ;;  %3262 = vmatpush.msra.mxu3 %v3261_v33  ;;  %3403 = vmatpush.msrb.mxu2 %v3199_v43 }
 0x367   :  { %v2843_v47 = vpop.f32.mrf.mxu3  ;;  %v3272_v32 = vsub.f32 %v6449_v51, %v3271_v54 }
 0x368   :  { %v6458_v31 = vadd.f32 %v2839_v37, %v2799_v30  ;;  %3268 = vmatpush.msra.mxu3 %v3267_v1  ;;  %3407 = vmatpush.msrb.mxu2 %v3205_v57 }
 0x369   :  { %v3273_v12 = vand.u32 4294901760, %v3272_v32 }
 0x36a   :  { %v2802_v9 = vpop.f32.mrf.mxu2  ;;  %3411 = vmatpush.msrb.mxu2 %v3211_v35  ;;  %v2846_v23 = vmax.f32 %v6458_v31, 0.0 }
 0x36b   :  { %v2729_v27 = vpop.f32.mrf.mxu1  ;;  %v2871_v29 = vpop.f32.mrf.mxu0  ;;  %3274 = vmatpush.msra.mxu3 %v3273_v12 }
 0x36c   :  { %v2730_v62 = vadd.f32 %v2729_v27, %v2685_v24  ;;  %3415 = vmatpush.msrb.mxu2 %v3217_v14  ;;  %v4411_v51 = vmul.f32 -1.442695, %v2846_v23 }
 0x36d   :  { %3462 = vmatpush.msrb.mxu3 %v6264_v8 }
 0x36e   :  { %v2803_v49 = vadd.f32 %v2802_v9, %v2730_v62  ;;  %3419 = vmatpush.msrb.mxu2 %v3223_v58  ;;  %4435 = vpow2.f32 %v4411_v51 }
 0x36f   :  { %v2990_v22 = vpop.f32.mrf.mxu3  ;;  %3464 = vmatpush.msrb.mxu3 %v6269_v2 }
 0x370   :  { %v6471_v37 = vadd.f32 %v2843_v47, %v2803_v49  ;;  %3423 = vmatpush.msrb.mxu2 %v3229_v26 }
 0x371   :  { %3466 = vmatpush.msrb.mxu3 %v6279_v34 }
 0x372   :  { %v2953_v0 = vpop.f32.mrf.mxu2  ;;  %3427 = vmatpush.msrb.mxu2 %v3235_v15  ;;  %v2847_v33 = vmax.f32 %v6471_v37, 0.0 }
 0x373   :  { %v2879_v60 = vpop.f32.mrf.mxu0  ;;  %v2919_v19 = vpop.f32.mrf.mxu1  ;;  %3468 = vmatpush.msrb.mxu3 %v6291_v39 }
 0x374   :  { %3431 = vmatpush.msrb.mxu2 %v3241_v48  ;;  %v2920_v57 = vadd.f32 %v2919_v19, %v2871_v29  ;;  %v4412_v5 = vmul.f32 -1.442695, %v2847_v33  ;;  %v4436_v47 = vpop.eup %4435 }
 0x375   :  { %3470 = vmatpush.msrb.mxu3 %v6305_v38  ;;  %v7371_v38 = vand.u32 4294901760, %v6414_v63 }
 0x376   :  { %3435 = vmatpush.msrb.mxu2 %v3247_v56  ;;  %v2954_v14 = vadd.f32 %v2953_v0, %v2920_v57  ;;  %4437 = vpow2.f32 %v4412_v5 }
 0x377   :  { %v2996_v8 = vpop.f32.mrf.mxu3  ;;  %3472 = vmatpush.msrb.mxu3 %v6311_v11 }
 0x378   :  { %3439 = vmatpush.msrb.mxu2 %v7371_v38  ;;  %v2991_v10 = vadd.f32 %v2990_v22, %v2954_v14 }
 0x379   :  { %3474 = vmatpush.msrb.mxu3 %v6324_v44 }
 0x37a   :  { %v2958_v2 = vpop.f32.mrf.mxu2  ;;  %3443 = vmatpush.msrb.mxu2 %v3259_v21 }
 0x37b   :  { %v2887_v34 = vpop.f32.mrf.mxu0  ;;  %v2923_v39 = vpop.f32.mrf.mxu1  ;;  %3476 = vmatpush.msrb.mxu3 %v6337_v46 }
 0x37c   :  { %3447 = vmatpush.msrb.mxu2 %v3265_v42  ;;  %v4438_v1 = vpop.eup %4437 }
 0x37d   :  { %3478 = vmatpush.msrb.mxu3 %v6352_v50  ;;  %v2924_v50 = vadd.f32 %v2923_v39, %v2879_v60  ;;  %v6508_v32 = vadd.f32 1.0, %v4438_v1  ;;  %v3679_v39 = vld [vmem:[#allocation2 + $0xf8] sm:$0xff]  ;;  %v3673_v1 = vld [vmem:[#allocation2 + $0xc8] sm:$0xff] }
 0x37e   :  { %3451 = vmatpush.msrb.mxu2 %v3271_v54  ;;  %v3081_v54 = vadd.f32 1.0, %v4436_v47 }
 0x37f   :  { %v3002_v11 = vpop.f32.mrf.mxu3  ;;  %3480 = vmatpush.msrb.mxu3 %v6365_v40  ;;  %v2959_v26 = vadd.f32 %v2958_v2, %v2924_v50  ;;  %vm3103_vm1 = vweird.f32 %v6508_v32 }
 0x380   :  { %4439 = vrcp.f32 %v3081_v54  ;;  %vm3088_vm13 = vweird.f32 %v3081_v54 }
 0x381   :  { %3482 = vmatpush.msrb.mxu3 %v6372_v17  ;;  %v2997_v28 = vadd.f32 %v2996_v8, %v2959_v26  ;;  %4441 = vrcp.f32 %v6508_v32 }
 0x382   :  { %v2963_v43 = vpop.f32.mrf.mxu2 }
 0x383   :  { %v2894_v53 = vpop.f32.mrf.mxu0  ;;  %v2927_v25 = vpop.f32.mrf.mxu1  ;;  %3484 = vmatpush.msrb.mxu3 %v6386_v13  ;;  %v3094_v43 = vand.u32 2147483648, %v3081_v54 }
 0x385   :  { %3486 = vmatpush.msrb.mxu3 %v6402_v61 }
 0x386   :  { %v4440_v27 = vpop.eup %4439 }
 0x387   :  { %v3007_v44 = vpop.f32.mrf.mxu3  ;;  %3488 = vmatpush.msrb.mxu3 %v6409_v16  ;;  %v3084_v12 = vmul.f32 %v4440_v27, %v3081_v54  ;;  %v6511_v62 = vpop.eup %4441  ;;  %vm3089_vm12 = vweird.f32 %v4440_v27 }
 0x388   :  { %v3099_v60 = vmul.f32 %v6511_v62, %v6508_v32  ;;  %v3092_v44 = vand.u32 2147483647, %v3081_v54  ;;  %vm3090_vm14 = vmor %vm3088_vm13, %vm3089_vm12  ;;  %vm3104_vm0 = vweird.f32 %v6511_v62 }
 0x389   :  { %3490 = vmatpush.msrb.mxu3 %v6423_v52  ;;  %v3085_v49 = vsub.f32 1.0, %v3084_v12  ;;  %vm6535_vm2 = vmor %vm3103_vm1, %vm3104_vm0 }
 0x38a   :  { %v2967_v35 = vpop.f32.mrf.mxu2  ;;  %v3100_v34 = vsub.f32 1.0, %v3099_v60  ;;  %vm3093_vm15 = vcmp.eq.f32.partialorder %v3092_v44, 8.507059e+37 }
 0x38b   :  { %v2930_v45 = vpop.f32.mrf.mxu1  ;;  %v3030_v46 = vpop.f32.mrf.mxu0  ;;  %3492 = vmatpush.msrb.mxu3 %v6433_v55  ;;  %v3086_v19 = vmul.f32 %v4440_v27, %v3085_v49  ;;  %v6515_v35 = vand.u32 4294901760, %v3679_v39 }
 0x38c   :  { %v3031_v58 = vadd.f32 %v3030_v46, %v2991_v10  ;;  %v3678_v45 = vld [vmem:[#allocation2 + $0xf0] sm:$0xff]  ;;  %v3101_v14 = vmul.f32 %v6511_v62, %v3100_v34 }
 0x38d   :  { %v3087_v38 = vadd.f32 %v4440_v27, %v3086_v19 }
 0x38f   :  { %v3091_v50 = vsel %vm3090_vm14, %v4440_v27, %v3087_v38 }
 0x393   :  { %v3034_v36 = vpop.f32.mrf.mxu0  ;;  %v3062_v40 = vpop.f32.mrf.mxu1 }
 0x394   :  { %v3063_v17 = vadd.f32 %v3062_v40, %v3031_v58  ;;  %v3035_v15 = vadd.f32 %v3034_v36, %v2997_v28  ;;  %v3677_v58 = vld [vmem:[#allocation2 + $0xe8] sm:$0xff]  ;;  %v3095_v40 = vor.u32 1.1754944e-38, %v3094_v43  ;;  %v3676_v28 = vld [vmem:[#allocation2 + $0xe0] sm:$0xff] }
 0x396   :  { %v3162_v3 = vand.u32 4294901760, %v3063_v17 }
 0x398   :  { %v3163_v13 = vsub.f32 %v3063_v17, %v3162_v3  ;;  %3276 = vmatmul.f32.vlgmr.msra.gmra.mxu3 %v3162_v3  ;;  %v6518_v17 = vand.u32 4294901760, %v3678_v45 }
 0x39a   :  { %v3164_v48 = vand.u32 4294901760, %v3163_v13  ;;  %3334 = vmatmul.f32.vlgmr.msra.gmra.mxu0 %v3163_v13 }
 0x39b   :  { %v3066_v7 = vpop.f32.mrf.mxu1  ;;  %v3038_v61 = vpop.f32.mrf.mxu0 }
 0x39c   :  { %v3165_v56 = vsub.f32 %v3163_v13, %v3164_v48  ;;  %v3067_v16 = vadd.f32 %v3066_v7, %v3035_v15  ;;  %3378 = vmatmul.f32.vlgmr.msra.gmra.mxu1 %v3164_v48  ;;  %v3096_v13 = vsel %vm3093_vm15, %v3095_v40, %v3091_v50  ;;  %v3102_v15 = vadd.f32 %v6511_v62, %v3101_v14  ;;  %v7374_v40 = vld [vmem:[#allocation54_spill] sm:$0xff] }
 0x39d   :  { %v6525_v48 = vand.u32 4294901760, %v3677_v58 }
 0x39e   :  { %v3166_v63 = vand.u32 4294901760, %v3165_v56  ;;  %v3170_v4 = vand.u32 4294901760, %v3067_v16  ;;  %v3107_v56 = vand.u32 2147483647, %v6508_v32 }
 0x39f   :  { %v6544_v51 = vsub.f32 %v3677_v58, %v6525_v48 }
 0x3a0   :  { %v3171_v52 = vsub.f32 %v3067_v16, %v3170_v4  ;;  %3167 = vmatmul.f32.vlgmr.msra.gmra.mxu2 %v3166_v63  ;;  %3280 = vmatmul.f32.gmra.mxu3 %v3170_v4  ;;  %v3109_v16 = vand.u32 2147483648, %v6508_v32  ;;  %v3675_v63 = vld [vmem:[#allocation2 + $0xd8] sm:$0xff]  ;;  %vm3108_vm3 = vcmp.eq.f32.partialorder %v3107_v56, 8.507059e+37  ;;  %v3668_v56 = vld [vmem:[#allocation2 + $0xa0] sm:$0xff] }
 0x3a1   :  { %v6546_v33 = vand.u32 4294901760, %v3675_v63  ;;  %v3735_v49 = vand.u32 4294901760, %v6544_v51 }
 0x3a2   :  { %3339 = vmatmul.f32.gmra.mxu0 %v3171_v52  ;;  %v3172_v30 = vand.u32 4294901760, %v3171_v52  ;;  %v3110_v54 = vor.u32 1.1754944e-38, %v3109_v16 }
 0x3a3   :  { %v3070_v21 = vpop.f32.mrf.mxu1  ;;  %v3041_v55 = vpop.f32.mrf.mxu0 }
 0x3a4   :  { %3384 = vmatmul.f32.gmra.mxu1 %v3172_v30  ;;  %v3173_v24 = vsub.f32 %v3171_v52, %v3172_v30  ;;  %v6531_v52 = vsub.f32 %v3678_v45, %v6518_v17  ;;  %v6533_v30 = vand.u32 4294901760, %v3676_v28 }
 0x3a6   :  { %v3174_v59 = vand.u32 4294901760, %v3173_v24  ;;  %v6552_v27 = vsub.f32 %v3676_v28, %v6533_v30 }
 0x3a8   :  { %3175 = vmatmul.f32.gmra.mxu2 %v3174_v59  ;;  %3494 = vmatmul.f32.vlgmr.msrb.gmra.mxu3 %v3162_v3  ;;  %v3674_v59 = vld [vmem:[#allocation2 + $0xd0] sm:$0xff] }
 0x3ab   :  { %v3073_v42 = vpop.f32.mrf.mxu1 }
 0x3ac   :  { %v3106_v42 = vsel %vm6535_vm2, %v6511_v62, %v3102_v15 }
 0x3ad   :  { %v3111_v12 = vsel %vm3108_vm3, %v3110_v54, %v3106_v42  ;;  %v3667_v42 = vld [vmem:[#allocation2 + $0x98] sm:$0xff] }
 0x3b0   :  { %3453 = vmatmul.f32.vlgmr.msrb.gmra.mxu2 %v3162_v3  ;;  %3498 = vmatmul.f32.gmra.mxu3 %v3170_v4  ;;  %v6521_v3 = vsub.f32 %v3679_v39, %v6515_v35  ;;  %v3671_v39 = vld [vmem:[#allocation2 + $0xb8] sm:$0xff] }
 0x3b2   :  { %v3723_v24 = vand.u32 4294901760, %v6521_v3 }
 0x3b4   :  { %v3724_v62 = vsub.f32 %v6521_v3, %v3723_v24 }
 0x3b6   :  { %v3725_v38 = vand.u32 4294901760, %v3724_v62  ;;  %v3666_v62 = vld [vmem:[#allocation2 + $0x90] sm:$0xff] }
 0x3b8   :  { %3457 = vmatmul.f32.gmra.mxu2 %v3170_v4 }
 0x417   :  { %v3335_v37 = vpop.f32.mrf.mxu0 }
 0x419   :  { %v3379_v2 = vpop.f32.mrf.mxu1 }
 0x41b   :  { %v3277_v9 = vpop.f32.mrf.mxu3 }
 0x41f   :  { %v3340_v10 = vpop.f32.mrf.mxu0 }
 0x421   :  { %v3385_v7 = vpop.f32.mrf.mxu1 }
 0x423   :  { %v3168_v29 = vpop.f32.mrf.mxu2  ;;  %v3281_v31 = vpop.f32.mrf.mxu3 }
 0x424   :  { %v3278_v22 = vadd.f32 %v3277_v9, %v3168_v29  ;;  %v3729_v9 = vand.u32 4294901760, %v6531_v52  ;;  %v6554_v29 = vand.u32 4294901760, %v3674_v59 }
 0x426   :  { %v3336_v8 = vadd.f32 %v3335_v37, %v3278_v22  ;;  %v6561_v22 = vsub.f32 %v3675_v63, %v6546_v33  ;;  %v6563_v37 = vand.u32 4294901760, %v3673_v1  ;;  %v6573_v34 = vsub.f32 %v3674_v59, %v6554_v29 }
 0x428   :  { %v3380_v53 = vadd.f32 %v3379_v2, %v3336_v8  ;;  %v3730_v8 = vsub.f32 %v6531_v52, %v3729_v9  ;;  %v3741_v2 = vand.u32 4294901760, %v6552_v27  ;;  %v6585_v44 = vsub.f32 %v3673_v1, %v6563_v37 }
 0x429   :  { %v3753_v58 = vand.u32 4294901760, %v6573_v34  ;;  %v6620_v1 = vand.u32 4294901760, %v3668_v56 }
 0x42a   :  { %v3742_v50 = vsub.f32 %v6552_v27, %v3741_v2 }
 0x42b   :  { %v3176_v0 = vpop.f32.mrf.mxu2  ;;  %v3495_v25 = vpop.f32.mrf.mxu3  ;;  %v3754_v59 = vsub.f32 %v6573_v34, %v3753_v58 }
 0x42c   :  { %v3282_v11 = vadd.f32 %v3281_v31, %v3176_v0  ;;  %v3672_v0 = vld [vmem:[#allocation2 + $0xc0] sm:$0xff] }
 0x42e   :  { %v3341_v36 = vadd.f32 %v3340_v10, %v3282_v11  ;;  %v6575_v11 = vand.u32 4294901760, %v3672_v0  ;;  %v3731_v10 = vand.u32 4294901760, %v3730_v8  ;;  %v6631_v8 = vand.u32 4294901760, %v3667_v42 }
 0x430   :  { %v3386_v4 = vadd.f32 %v3385_v7, %v3341_v36  ;;  %v3669_v36 = vld [vmem:[#allocation2 + $0xa8] sm:$0xff] }
 0x433   :  { %v3454_v57 = vpop.f32.mrf.mxu2  ;;  %v3499_v47 = vpop.f32.mrf.mxu3 }
 0x434   :  { %v3455_v46 = vadd.f32 %v3454_v57, %v3380_v53  ;;  %v3736_v53 = vsub.f32 %v6544_v51, %v3735_v49  ;;  %v3670_v57 = vld [vmem:[#allocation2 + $0xb0] sm:$0xff] }
 0x435   :  { %v6599_v28 = vand.u32 4294901760, %v3670_v57 }
 0x436   :  { %v3496_v26 = vadd.f32 %v3495_v25, %v3455_v46  ;;  %v3747_v25 = vand.u32 4294901760, %v6561_v22  ;;  %v6587_v46 = vand.u32 4294901760, %v3671_v39 }
 0x437   :  { %v6618_v54 = vsub.f32 %v3670_v57, %v6599_v28  ;;  %v6642_v57 = vand.u32 4294901760, %v3666_v62 }
 0x438   :  { %v3502_v61 = vmul.f32 %v3496_v26, %v3096_v13  ;;  %v6597_v26 = vsub.f32 %v3672_v0, %v6575_v11  ;;  %v3737_v13 = vand.u32 4294901760, %v3736_v53  ;;  %v3748_v7 = vsub.f32 %v6561_v22, %v3747_v25 }
 0x439   :  { %v6607_v63 = vsub.f32 %v3671_v39, %v6587_v46  ;;  %v3755_v39 = vand.u32 4294901760, %v3754_v59  ;;  %v6640_v53 = vsub.f32 %v3668_v56, %v6620_v1 }
 0x43a   :  { %v6548_v5 = vand.u32 4294901760, %v3502_v61 }
 0x43b   :  { %v3458_v55 = vpop.f32.mrf.mxu2  ;;  %v3771_v0 = vand.u32 4294901760, %v6607_v63  ;;  %v3789_v56 = vand.u32 4294901760, %v6640_v53 }
 0x43c   :  { %v3459_v23 = vadd.f32 %v3458_v55, %v3386_v4  ;;  %v3552_v60 = vsub.f32 %v3502_v61, %v6548_v5  ;;  %v3759_v61 = vand.u32 4294901760, %v6585_v44  ;;  %v6609_v4 = vand.u32 4294901760, %v3669_v36 }
 0x43d   :  { %v3743_v55 = vand.u32 4294901760, %v3742_v50 }
 0x43e   :  { %v3500_v32 = vadd.f32 %v3499_v47, %v3459_v23  ;;  %v3553_v45 = vand.u32 4294901760, %v3552_v60  ;;  %v7375_v23 = vld [vmem:[#allocation52_spill] sm:$0xff]  ;;  %v3765_v47 = vand.u32 4294901760, %v6597_v26 }
 0x440   :  { %v3503_v31 = vmul.f32 %v3500_v32, %v3111_v12  ;;  %v3554_v16 = vsub.f32 %v3552_v60, %v3553_v45  ;;  %v3749_v32 = vand.u32 4294901760, %v3748_v7  ;;  %v3760_v12 = vsub.f32 %v6585_v44, %v3759_v61 }
 0x442   :  { %v6566_v19 = vand.u32 4294901760, %v3503_v31 }
 0x444   :  { %v3546_v43 = vsub.f32 %v3503_v31, %v6566_v19  ;;  %3519 = vmatpush.msrb.mxu0 %v6566_v19  ;;  %3603 = vmatpush.msra.mxu3 %v6566_v19  ;;  %v3555_v31 = vand.u32 4294901760, %v3554_v16  ;;  %v6664_v16 = vsub.f32 %v3666_v62, %v6642_v57 }
 0x446   :  { %3521 = vmatpush.msrb.mxu0 %v6548_v5  ;;  %3578 = vmatpush.msra.mxu2 %v3546_v43  ;;  %v3547_v14 = vand.u32 4294901760, %v3546_v43 }
 0x447   :  { %3605 = vmatpush.msra.mxu3 %v6548_v5  ;;  %3527 = vmatmul.f32.vlgmr.msrb.gmra.mxu0 %v7374_v40  ;;  %v3664_v40 = vld [vmem:[#allocation2 + $0x80] sm:$0xff] }
 0x448   :  { %3581 = vmatpush.msra.mxu2 %v3552_v60  ;;  %v3548_v15 = vsub.f32 %v3546_v43, %v3547_v14  ;;  %3630 = vmatpush.msra.mxu0 %v3547_v14  ;;  %v6629_v60 = vsub.f32 %v3669_v36, %v6609_v4  ;;  %v3777_v43 = vand.u32 4294901760, %v6618_v54  ;;  %v3761_v14 = vand.u32 4294901760, %v3760_v12 }
 0x449   :  { %3726 = vmatpush.msrb.mxu3 %v3725_v38  ;;  %3584 = vmatmul.f32.vlgmr.msra.gmra.mxu2 %v7375_v23  ;;  %v3766_v38 = vsub.f32 %v6597_v26, %v3765_v47  ;;  %v6652_v36 = vsub.f32 %v3667_v42, %v6631_v8  ;;  %v3801_v12 = vand.u32 4294901760, %v6664_v16 }
 0x44a   :  { %3681 = vmatpush.msrb.mxu2 %v6515_v35  ;;  %v3549_v21 = vand.u32 4294901760, %v3548_v15  ;;  %3634 = vmatpush.msra.mxu0 %v3553_v45  ;;  %v3665_v45 = vld [vmem:[#allocation2 + $0x88] sm:$0xff]  ;;  %v3783_v50 = vand.u32 4294901760, %v6629_v60  ;;  %v3778_v7 = vsub.f32 %v6618_v54, %v3777_v43 }
 0x44b   :  { %3732 = vmatpush.msrb.mxu3 %v3731_v10  ;;  %v3772_v10 = vsub.f32 %v6607_v63, %v3771_v0  ;;  %v3767_v15 = vand.u32 4294901760, %v3766_v38  ;;  %v3795_v59 = vand.u32 4294901760, %v6652_v36 }
 0x44c   :  { %3683 = vmatpush.msrb.mxu2 %v6518_v17  ;;  %3824 = vmatpush.msrb.mxu0 %v6521_v3  ;;  %v3779_v23 = vand.u32 4294901760, %v3778_v7  ;;  %v4041_v3 = vld [vmem:[#allocation8 + $0x68] sm:$0xff] }
 0x44d   :  { %3738 = vmatpush.msrb.mxu3 %v3737_v13  ;;  %3550 = vmatpush.msrb.mxu1 %v3549_v21  ;;  %v7376_v13 = vld [vmem:[#allocation51_spill] sm:$0xff]  ;;  %v3773_v21 = vand.u32 4294901760, %v3772_v10 }
 0x44e   :  { %3685 = vmatpush.msrb.mxu2 %v6525_v48  ;;  %3827 = vmatpush.msrb.mxu0 %v6531_v52 }
 0x44f   :  { %3744 = vmatpush.msrb.mxu3 %v3743_v55  ;;  %3556 = vmatpush.msrb.mxu1 %v3555_v31  ;;  %v3784_v55 = vsub.f32 %v6629_v60, %v3783_v50 }
 0x450   :  { %3687 = vmatpush.msrb.mxu2 %v6533_v30  ;;  %3830 = vmatpush.msrb.mxu0 %v6544_v51 }
 0x451   :  { %3655 = vmatpush.msra.mxu1 %v6566_v19  ;;  %3750 = vmatpush.msrb.mxu3 %v3749_v32  ;;  %v6655_v19 = vand.u32 4294901760, %v3665_v45  ;;  %v3790_v32 = vsub.f32 %v6640_v53, %v3789_v56  ;;  %v3785_v31 = vand.u32 4294901760, %v3784_v55 }
 0x452   :  { %3689 = vmatpush.msrb.mxu2 %v6546_v33  ;;  %3833 = vmatpush.msrb.mxu0 %v6552_v27  ;;  %v4039_v27 = vld [vmem:[#allocation8 + $0x58] sm:$0xff] }
 0x453   :  { %3657 = vmatpush.msra.mxu1 %v6548_v5  ;;  %3756 = vmatpush.msrb.mxu3 %v3755_v39  ;;  %v6668_v5 = vand.u32 4294901760, %v3664_v40  ;;  %v6678_v42 = vsub.f32 %v3665_v45, %v6655_v19  ;;  %v3796_v39 = vsub.f32 %v6652_v36, %v3795_v59  ;;  %v3791_v45 = vand.u32 4294901760, %v3790_v32 }
 0x454   :  { %3558 = vmatmul.f32.vlgmr.msrb.gmra.mxu1 %v7376_v13  ;;  %3691 = vmatpush.msrb.mxu2 %v6554_v29 }
 0x455   :  { %3877 = vmatpush.msrb.mxu1 %v6515_v35  ;;  %3762 = vmatpush.msrb.mxu3 %v3761_v14  ;;  %v6688_v62 = vsub.f32 %v3664_v40, %v6668_v5  ;;  %v3807_v38 = vand.u32 4294901760, %v6678_v42  ;;  %v3802_v14 = vsub.f32 %v6664_v16, %v3801_v12  ;;  %v3797_v40 = vand.u32 4294901760, %v3796_v39 }
 0x456   :  { %3836 = vmatpush.msrb.mxu0 %v6561_v22  ;;  %3693 = vmatpush.msrb.mxu2 %v6563_v37 }
 0x457   :  { %3879 = vmatpush.msrb.mxu1 %v6518_v17  ;;  %3768 = vmatpush.msrb.mxu3 %v3767_v15  ;;  %v3813_v10 = vand.u32 4294901760, %v6688_v62  ;;  %v3808_v15 = vsub.f32 %v6678_v42, %v3807_v38  ;;  %v3803_v7 = vand.u32 4294901760, %v3802_v14 }
 0x458   :  { %3839 = vmatpush.msrb.mxu0 %v6573_v34  ;;  %3695 = vmatpush.msrb.mxu2 %v6575_v11  ;;  %v4038_v34 = vld [vmem:[#allocation8 + $0x50] sm:$0xff] }
 0x459   :  { %3881 = vmatpush.msrb.mxu1 %v6525_v48  ;;  %3774 = vmatpush.msrb.mxu3 %v3773_v21  ;;  %v7377_v21 = vld [vmem:[#allocation53_spill] sm:$0xff]  ;;  %v3814_v55 = vsub.f32 %v6688_v62, %v3813_v10 }
 0x45a   :  { %3842 = vmatpush.msrb.mxu0 %v6585_v44  ;;  %3697 = vmatpush.msrb.mxu2 %v6587_v46 }
 0x45b   :  { %3883 = vmatpush.msrb.mxu1 %v6533_v30  ;;  %3780 = vmatpush.msrb.mxu3 %v3779_v23  ;;  %v3809_v23 = vand.u32 4294901760, %v3808_v15  ;;  %v3815_v32 = vand.u32 4294901760, %v3814_v55 }
 0x45c   :  { %3845 = vmatpush.msrb.mxu0 %v6597_v26  ;;  %3699 = vmatpush.msrb.mxu2 %v6599_v28  ;;  %v4037_v26 = vld [vmem:[#allocation8 + $0x48] sm:$0xff] }
 0x45d   :  { %3885 = vmatpush.msrb.mxu1 %v6546_v33  ;;  %3786 = vmatpush.msrb.mxu3 %v3785_v31 }
 0x45e   :  { %3848 = vmatpush.msrb.mxu0 %v6607_v63  ;;  %3701 = vmatpush.msrb.mxu2 %v6609_v4 }
 0x45f   :  { %3887 = vmatpush.msrb.mxu1 %v6554_v29  ;;  %3792 = vmatpush.msrb.mxu3 %v3791_v45 }
 0x460   :  { %3851 = vmatpush.msrb.mxu0 %v6618_v54  ;;  %3609 = vmatmul.f32.vlgmr.msra.gmra.mxu3 %v7377_v21  ;;  %v4036_v54 = vld [vmem:[#allocation8 + $0x40] sm:$0xff] }
 0x461   :  { %3889 = vmatpush.msrb.mxu1 %v6563_v37  ;;  %3703 = vmatpush.msrb.mxu2 %v6620_v1 }
 0x462   :  { %3798 = vmatpush.msrb.mxu3 %v3797_v40  ;;  %3854 = vmatpush.msrb.mxu0 %v6629_v60 }
 0x463   :  { %3891 = vmatpush.msrb.mxu1 %v6575_v11  ;;  %3705 = vmatpush.msrb.mxu2 %v6631_v8 }
 0x464   :  { %3804 = vmatpush.msrb.mxu3 %v3803_v7  ;;  %3857 = vmatpush.msrb.mxu0 %v6640_v53  ;;  %v4035_v53 = vld [vmem:[#allocation8 + $0x38] sm:$0xff] }
 0x465   :  { %3893 = vmatpush.msrb.mxu1 %v6587_v46  ;;  %3636 = vmatmul.f32.vlgmr.msra.gmra.mxu0 %v7376_v13 }
 0x466   :  { %3707 = vmatpush.msrb.mxu2 %v6642_v57  ;;  %3810 = vmatpush.msrb.mxu3 %v3809_v23  ;;  %v4031_v23 = vld [vmem:[#allocation8 + $0x18] sm:$0xff] }
 0x467   :  { %3860 = vmatpush.msrb.mxu0 %v6652_v36  ;;  %3895 = vmatpush.msrb.mxu1 %v6599_v28 }
 0x468   :  { %3709 = vmatpush.msrb.mxu2 %v6655_v19  ;;  %3816 = vmatpush.msrb.mxu3 %v3815_v32 }
 0x469   :  { %3863 = vmatpush.msrb.mxu0 %v6664_v16  ;;  %3818 = vmatmul.f32.vlgmr.msrb.gmra.mxu3 %v6210_v18 }
 0x46a   :  { %3897 = vmatpush.msrb.mxu1 %v6609_v4  ;;  %3985 = vmatpush.msra.mxu3 %v6515_v35 }
 0x46b   :  { %3711 = vmatpush.msrb.mxu2 %v6668_v5  ;;  %3866 = vmatpush.msrb.mxu0 %v6678_v42 }
 0x46c   :  { %3717 = vmatmul.f32.vlgmr.msrb.gmra.mxu2 %v6233_v41  ;;  %3899 = vmatpush.msrb.mxu1 %v6620_v1  ;;  %v4042_v41 = vld [vmem:[#allocation8 + $0x70] sm:$0xff] }
 0x46d   :  { %3918 = vmatpush.msra.mxu2 %v3723_v24  ;;  %3987 = vmatpush.msra.mxu3 %v6518_v17  ;;  %v6797_v17 = vand.u32 4294901760, %v4042_v41 }
 0x46e   :  { %3659 = vmatmul.f32.vlgmr.msra.gmra.mxu1 %v7376_v13  ;;  %3869 = vmatpush.msrb.mxu0 %v6688_v62  ;;  %v4033_v62 = vld [vmem:[#allocation8 + $0x28] sm:$0xff] }
 0x46f   :  { %3901 = vmatpush.msrb.mxu1 %v6631_v8  ;;  %3872 = vmatmul.f32.vlgmr.msrb.gmra.mxu0 %v6215_v6  ;;  %v4043_v6 = vld [vmem:[#allocation8 + $0x78] sm:$0xff]  ;;  %v6803_v52 = vsub.f32 %v4042_v41, %v6797_v17  ;;  %v6896_v45 = vand.u32 4294901760, %v4033_v62  ;;  %v6917_v41 = vand.u32 4294901760, %v4031_v23 }
 0x470   :  { %3922 = vmatpush.msra.mxu2 %v3729_v9  ;;  %3989 = vmatpush.msra.mxu3 %v6525_v48 }
 0x471   :  { %3903 = vmatpush.msrb.mxu1 %v6642_v57  ;;  %v4097_v51 = vand.u32 4294901760, %v6803_v52  ;;  %v6908_v7 = vsub.f32 %v4033_v62, %v6896_v45 }
 0x472   :  { %3926 = vmatpush.msra.mxu2 %v3735_v49  ;;  %3991 = vmatpush.msra.mxu3 %v6533_v30  ;;  %v4040_v30 = vld [vmem:[#allocation8 + $0x60] sm:$0xff] }
 0x473   :  { %3905 = vmatpush.msrb.mxu1 %v6655_v19  ;;  %v6817_v9 = vand.u32 4294901760, %v4040_v30  ;;  %v4098_v49 = vsub.f32 %v6803_v52, %v4097_v51 }
 0x474   :  { %3930 = vmatpush.msra.mxu2 %v3741_v2  ;;  %3993 = vmatpush.msra.mxu3 %v6546_v33  ;;  %v6831_v2 = vand.u32 4294901760, %v4039_v27 }
 0x475   :  { %3907 = vmatpush.msrb.mxu1 %v6668_v5 }
 0x476   :  { %3934 = vmatpush.msra.mxu2 %v3747_v25  ;;  %3911 = vmatmul.f32.vlgmr.msrb.gmra.mxu1 %v6222_v20  ;;  %v6792_v20 = vand.u32 4294901760, %v4043_v6 }
 0x477   :  { %3995 = vmatpush.msra.mxu3 %v6554_v29 }
 0x478   :  { %3938 = vmatpush.msra.mxu2 %v3753_v58  ;;  %v6795_v35 = vsub.f32 %v4043_v6, %v6792_v20  ;;  %4049 = vmatpush.msra.mxu0 %v6792_v20  ;;  %v6842_v58 = vsub.f32 %v4039_v27, %v6831_v2  ;;  %v4151_v6 = vand.u32 4294901760, %v6908_v7 }
 0x479   :  { %3997 = vmatpush.msra.mxu3 %v6563_v37  ;;  %v6827_v37 = vsub.f32 %v4040_v30, %v6817_v9 }
 0x47a   :  { %3942 = vmatpush.msra.mxu2 %v3759_v61  ;;  %v4091_v48 = vand.u32 4294901760, %v6795_v35  ;;  %4051 = vmatpush.msra.mxu0 %v6797_v17  ;;  %v4152_v27 = vsub.f32 %v6908_v7, %v4151_v6 }
 0x47b   :  { %3999 = vmatpush.msra.mxu3 %v6575_v11  ;;  %v4099_v11 = vand.u32 4294901760, %v4098_v49  ;;  %v4109_v44 = vand.u32 4294901760, %v6827_v37 }
 0x47c   :  { %3946 = vmatpush.msra.mxu2 %v3765_v47  ;;  %v4092_v24 = vsub.f32 %v6795_v35, %v4091_v48  ;;  %v4115_v47 = vand.u32 4294901760, %v6842_v58 }
 0x47d   :  { %4001 = vmatpush.msra.mxu3 %v6587_v46  ;;  %v6838_v46 = vand.u32 4294901760, %v4038_v34  ;;  %v4110_v61 = vsub.f32 %v6827_v37, %v4109_v44 }
 0x47e   :  { %3950 = vmatpush.msra.mxu2 %v3771_v0  ;;  %v4093_v29 = vand.u32 4294901760, %v4092_v24  ;;  %v4030_v24 = vld [vmem:[#allocation8 + $0x10] sm:$0xff] }
 0x47f   :  { %4003 = vmatpush.msra.mxu3 %v6599_v28  ;;  %v6850_v63 = vsub.f32 %v4038_v34, %v6838_v46  ;;  %v6934_v49 = vand.u32 4294901760, %v4030_v24  ;;  %v4029_v34 = vld [vmem:[#allocation8 + $0x8] sm:$0xff] }
 0x480   :  { %3954 = vmatpush.msra.mxu2 %v3777_v43  ;;  %4094 = vmatpush.msra.mxu1 %v4093_v29  ;;  %v4116_v43 = vsub.f32 %v6842_v58, %v4115_v47  ;;  %v6932_v29 = vsub.f32 %v4031_v23, %v6917_v41 }
 0x481   :  { %4005 = vmatpush.msra.mxu3 %v6609_v4  ;;  %v6852_v4 = vand.u32 4294901760, %v4037_v26  ;;  %v4121_v0 = vand.u32 4294901760, %v6850_v63 }
 0x482   :  { %3958 = vmatpush.msra.mxu2 %v3783_v50  ;;  %4100 = vmatpush.msra.mxu1 %v4099_v11  ;;  %v4117_v13 = vand.u32 4294901760, %v4116_v43  ;;  %v4028_v11 = vld [vmem:[#allocation8] sm:$0xff]  ;;  %v6946_v43 = vsub.f32 %v4030_v24, %v6934_v49 }
 0x483   :  { %4007 = vmatpush.msra.mxu3 %v6620_v1  ;;  %v4111_v1 = vand.u32 4294901760, %v4110_v61  ;;  %v6859_v60 = vsub.f32 %v4037_v26, %v6852_v4  ;;  %v6941_v61 = vand.u32 4294901760, %v4028_v11 }
 0x484   :  { %3962 = vmatpush.msra.mxu2 %v3789_v56  ;;  %v4034_v56 = vld [vmem:[#allocation8 + $0x30] sm:$0xff] }
 0x485   :  { %4009 = vmatpush.msra.mxu3 %v6631_v8  ;;  %v6861_v8 = vand.u32 4294901760, %v4036_v54  ;;  %v4127_v50 = vand.u32 4294901760, %v6859_v60 }
 0x486   :  { %3966 = vmatpush.msra.mxu2 %v3795_v59 }
 0x487   :  { %4011 = vmatpush.msra.mxu3 %v6642_v57  ;;  %v4122_v57 = vsub.f32 %v6850_v63, %v4121_v0  ;;  %v6874_v36 = vsub.f32 %v4036_v54, %v6861_v8  ;;  %v4153_v54 = vand.u32 4294901760, %v4152_v27 }
 0x488   :  { %3970 = vmatpush.msra.mxu2 %v3801_v12  ;;  %v6889_v12 = vand.u32 4294901760, %v4034_v56 }
 0x489   :  { %4013 = vmatpush.msra.mxu3 %v6655_v19  ;;  %v6876_v19 = vand.u32 4294901760, %v4035_v53  ;;  %v4123_v16 = vand.u32 4294901760, %v4122_v57  ;;  %v4133_v59 = vand.u32 4294901760, %v6874_v36 }
 0x48a   :  { %3974 = vmatpush.msra.mxu2 %v3807_v38  ;;  %v6901_v14 = vsub.f32 %v4034_v56, %v6889_v12 }
 0x48b   :  { %4015 = vmatpush.msra.mxu3 %v6668_v5  ;;  %v4128_v5 = vsub.f32 %v6859_v60, %v4127_v50  ;;  %v6886_v42 = vsub.f32 %v4035_v53, %v6876_v19  ;;  %v4134_v39 = vsub.f32 %v6874_v36, %v4133_v59 }
 0x48c   :  { %4017 = vmatmul.f32.vlgmr.msra.gmra.mxu3 %v6210_v18  ;;  %3978 = vmatpush.msra.mxu2 %v3813_v10  ;;  %v4032_v10 = vld [vmem:[#allocation8 + $0x20] sm:$0xff]  ;;  %v4145_v21 = vand.u32 4294901760, %v6901_v14 }
 0x48d   :  { %3980 = vmatmul.f32.vlgmr.msra.gmra.mxu2 %v6210_v18  ;;  %4245 = vmatpush.msrb.mxu3 %v6792_v20  ;;  %v6805_v18 = vand.u32 4294901760, %v4041_v3  ;;  %v4129_v31 = vand.u32 4294901760, %v4128_v5  ;;  %v4139_v38 = vand.u32 4294901760, %v6886_v42  ;;  %v4135_v40 = vand.u32 4294901760, %v4134_v39 }
 0x48e   :  { %4192 = vmatpush.msrb.mxu2 %v6795_v35  ;;  %v6913_v55 = vand.u32 4294901760, %v4032_v10 }
 0x48f   :  { %4247 = vmatpush.msrb.mxu3 %v6797_v17  ;;  %v6815_v33 = vsub.f32 %v4041_v3, %v6805_v18  ;;  %4053 = vmatpush.msra.mxu0 %v6805_v18  ;;  %v4140_v15 = vsub.f32 %v6886_v42, %v4139_v38  ;;  %v4146_v3 = vsub.f32 %v6901_v14, %v4145_v21 }
 0x490   :  { %4195 = vmatpush.msrb.mxu2 %v6803_v52  ;;  %v6925_v30 = vsub.f32 %v4032_v10, %v6913_v55 }
 0x491   :  { %4249 = vmatpush.msrb.mxu3 %v6805_v18  ;;  %v4103_v22 = vand.u32 4294901760, %v6815_v33  ;;  %4055 = vmatpush.msra.mxu0 %v6817_v9  ;;  %v4141_v32 = vand.u32 4294901760, %v4140_v15 }
 0x492   :  { %4198 = vmatpush.msrb.mxu2 %v6815_v33  ;;  %v4157_v26 = vand.u32 4294901760, %v6925_v30 }
 0x493   :  { %4251 = vmatpush.msrb.mxu3 %v6817_v9  ;;  %v4104_v25 = vsub.f32 %v6815_v33, %v4103_v22  ;;  %4057 = vmatpush.msra.mxu0 %v6831_v2 }
 0x494   :  { %4201 = vmatpush.msrb.mxu2 %v6827_v37  ;;  %v4158_v53 = vsub.f32 %v6925_v30, %v4157_v26 }
 0x495   :  { %4253 = vmatpush.msrb.mxu3 %v6831_v2  ;;  %v4105_v28 = vand.u32 4294901760, %v4104_v25  ;;  %4059 = vmatpush.msra.mxu0 %v6838_v46  ;;  %v4147_v25 = vand.u32 4294901760, %v4146_v3 }
 0x496   :  { %4204 = vmatpush.msrb.mxu2 %v6842_v58  ;;  %v4159_v5 = vand.u32 4294901760, %v4158_v53 }
 0x497   :  { %4106 = vmatpush.msra.mxu1 %v4105_v28  ;;  %4255 = vmatpush.msrb.mxu3 %v6838_v46  ;;  %v6939_v28 = vand.u32 4294901760, %v4029_v34 }
 0x498   :  { %4061 = vmatpush.msra.mxu0 %v6852_v4  ;;  %4207 = vmatpush.msrb.mxu2 %v6850_v63 }
 0x499   :  { %4112 = vmatpush.msra.mxu1 %v4111_v1  ;;  %4257 = vmatpush.msrb.mxu3 %v6852_v4  ;;  %v4163_v1 = vand.u32 4294901760, %v6932_v29  ;;  %v6954_v57 = vsub.f32 %v4029_v34, %v6939_v28 }
 0x49a   :  { %4063 = vmatpush.msra.mxu0 %v6861_v8  ;;  %4210 = vmatpush.msrb.mxu2 %v6859_v60 }
 0x49b   :  { %4259 = vmatpush.msrb.mxu3 %v6861_v8  ;;  %4118 = vmatpush.msra.mxu1 %v4117_v13  ;;  %v6957_v13 = vsub.f32 %v4028_v11, %v6941_v61  ;;  %v4164_v56 = vsub.f32 %v6932_v29, %v4163_v1  ;;  %v4175_v62 = vand.u32 4294901760, %v6954_v57 }
 0x49c   :  { %4065 = vmatpush.msra.mxu0 %v6876_v19  ;;  %4213 = vmatpush.msrb.mxu2 %v6874_v36 }
 0x49d   :  { %4261 = vmatpush.msrb.mxu3 %v6876_v19  ;;  %4124 = vmatpush.msra.mxu1 %v4123_v16  ;;  %v4169_v16 = vand.u32 4294901760, %v6946_v43  ;;  %v4165_v39 = vand.u32 4294901760, %v4164_v56 }
 0x49e   :  { %4067 = vmatpush.msra.mxu0 %v6889_v12  ;;  %4216 = vmatpush.msrb.mxu2 %v6886_v42 }
 0x49f   :  { %4263 = vmatpush.msrb.mxu3 %v6889_v12  ;;  %4130 = vmatpush.msra.mxu1 %v4129_v31  ;;  %v4181_v31 = vand.u32 4294901760, %v6957_v13  ;;  %v4170_v10 = vsub.f32 %v6946_v43, %v4169_v16 }
 0x4a0   :  { %4069 = vmatpush.msra.mxu0 %v6896_v45  ;;  %4219 = vmatpush.msrb.mxu2 %v6901_v14 }
 0x4a1   :  { %4265 = vmatpush.msrb.mxu3 %v6896_v45  ;;  %4136 = vmatpush.msra.mxu1 %v4135_v40  ;;  %v4176_v40 = vsub.f32 %v6954_v57, %v4175_v62  ;;  %v4182_v15 = vsub.f32 %v6957_v13, %v4181_v31  ;;  %v4171_v23 = vand.u32 4294901760, %v4170_v10 }
 0x4a2   :  { %4071 = vmatpush.msra.mxu0 %v6913_v55  ;;  %4222 = vmatpush.msrb.mxu2 %v6908_v7 }
 0x4a3   :  { %4267 = vmatpush.msrb.mxu3 %v6913_v55  ;;  %4142 = vmatpush.msra.mxu1 %v4141_v32  ;;  %v4177_v32 = vand.u32 4294901760, %v4176_v40  ;;  %v4183_v3 = vand.u32 4294901760, %v4182_v15 }
 0x4a4   :  { %4073 = vmatpush.msra.mxu0 %v6917_v41  ;;  %4225 = vmatpush.msrb.mxu2 %v6925_v30 }
 0x4a5   :  { %4269 = vmatpush.msrb.mxu3 %v6917_v41  ;;  %4148 = vmatpush.msra.mxu1 %v4147_v25 }
 0x4a6   :  { %4075 = vmatpush.msra.mxu0 %v6934_v49  ;;  %4228 = vmatpush.msrb.mxu2 %v6932_v29 }
 0x4a7   :  { %4271 = vmatpush.msrb.mxu3 %v6934_v49  ;;  %4154 = vmatpush.msra.mxu1 %v4153_v54 }
 0x4a8   :  { %4077 = vmatpush.msra.mxu0 %v6939_v28  ;;  %4231 = vmatpush.msrb.mxu2 %v6946_v43 }
 0x4a9   :  { %4273 = vmatpush.msrb.mxu3 %v6939_v28  ;;  %4160 = vmatpush.msra.mxu1 %v4159_v5 }
 0x4aa   :  { %4079 = vmatpush.msra.mxu0 %v6941_v61  ;;  %4234 = vmatpush.msrb.mxu2 %v6954_v57 }
 0x4ab   :  { %4166 = vmatpush.msra.mxu1 %v4165_v39  ;;  %4275 = vmatpush.msrb.mxu3 %v6941_v61 }
 0x4ac   :  { %4286 = vmatpush.msrb.mxu0 %v4091_v48  ;;  %4237 = vmatpush.msrb.mxu2 %v6957_v13 }
 0x4ad   :  { %4172 = vmatpush.msra.mxu1 %v4171_v23 }
 0x4ae   :  { %4290 = vmatpush.msrb.mxu0 %v4097_v51 }
 0x4af   :  { %4178 = vmatpush.msra.mxu1 %v4177_v32 }
 0x4b0   :  { %4294 = vmatpush.msrb.mxu0 %v4103_v22 }
 0x4b1   :  { %4184 = vmatpush.msra.mxu1 %v4183_v3 }
 0x4b2   :  { %4298 = vmatpush.msrb.mxu0 %v4109_v44 }
 0x4b3   :  { %4353 = vmatpush.msrb.mxu1 %v6792_v20 }
 0x4b4   :  { %4302 = vmatpush.msrb.mxu0 %v4115_v47 }
 0x4b5   :  { %4355 = vmatpush.msrb.mxu1 %v6797_v17 }
 0x4b6   :  { %4306 = vmatpush.msrb.mxu0 %v4121_v0 }
 0x4b7   :  { %4357 = vmatpush.msrb.mxu1 %v6805_v18 }
 0x4b8   :  { %4310 = vmatpush.msrb.mxu0 %v4127_v50  ;;  %v4425_v50 = vld [vmem:[%s7035_s10 + $0x1] ss:$0 sm:$0xff]  ;;  %s4577_s10 = smov [#allocation10]  }
 0x4b9   :  { %4359 = vmatpush.msrb.mxu1 %v6817_v9  ;;  %s4395_s25 = sshll.u32 %s4577_s10, 4  ;;  %s4396_s25 = int_to_ptr.vmem [resolvable:$true] %s4395_s25 }
 0x4ba   :  { %4314 = vmatpush.msrb.mxu0 %v4133_v59 }
 0x4bb   :  { %4361 = vmatpush.msrb.mxu1 %v6831_v2 }
 0x4bc   :  { %4318 = vmatpush.msrb.mxu0 %v4139_v38 }
 0x4bd   :  { %4363 = vmatpush.msrb.mxu1 %v6838_v46 }
 0x4be   :  { %4322 = vmatpush.msrb.mxu0 %v4145_v21  ;;  %v4426_v21 = vld [vmem:[%s7039_s14] ss:$0 sm:$0xff] }
 0x4bf   :  { %4365 = vmatpush.msrb.mxu1 %v6852_v4 }
 0x4c0   :  { %4326 = vmatpush.msrb.mxu0 %v4151_v6 }
 0x4c1   :  { %4367 = vmatpush.msrb.mxu1 %v6861_v8 }
 0x4c2   :  { %4330 = vmatpush.msrb.mxu0 %v4157_v26 }
 0x4c3   :  { %4369 = vmatpush.msrb.mxu1 %v6876_v19 }
 0x4c4   :  { %v3528_v35 = vpop.f32.mrf.mxu0  ;;  %4334 = vmatpush.msrb.mxu0 %v4163_v1 }
 0x4c5   :  { %4371 = vmatpush.msrb.mxu1 %v6889_v12 }
 0x4c6   :  { %4338 = vmatpush.msrb.mxu0 %v4169_v16 }
 0x4c7   :  { %4373 = vmatpush.msrb.mxu1 %v6896_v45 }
 0x4c8   :  { %4342 = vmatpush.msrb.mxu0 %v4175_v62 }
 0x4c9   :  { %4375 = vmatpush.msrb.mxu1 %v6913_v55 }
 0x4ca   :  { %4346 = vmatpush.msrb.mxu0 %v4181_v31 }
 0x4cb   :  { %4377 = vmatpush.msrb.mxu1 %v6917_v41 }
 0x4cc   :  { %v3585_v48 = vpop.f32.mrf.mxu2 }
 0x4cd   :  { %4379 = vmatpush.msrb.mxu1 %v6934_v49 }
 0x4cf   :  { %4381 = vmatpush.msrb.mxu1 %v6939_v28 }
 0x4d1   :  { %v3559_v20 = vpop.f32.mrf.mxu1  ;;  %4383 = vmatpush.msrb.mxu1 %v6941_v61 }
 0x4d2   :  { %v3560_v17 = vadd.f32 %v3559_v20, %v3528_v35 }
 0x4d4   :  { %v3586_v52 = vadd.f32 %v3585_v48, %v3560_v17 }
 0x4e2   :  { %v3637_v33 = vpop.f32.mrf.mxu0 }
 0x4e3   :  { %v3610_v18 = vpop.f32.mrf.mxu3 }
 0x4e4   :  { %v3611_v51 = vadd.f32 %v3610_v18, %v3586_v52 }
 0x4e6   :  { %v3638_v9 = vadd.f32 %v3637_v33, %v3611_v51 }
 0x4eb   :  { %v3660_v22 = vpop.f32.mrf.mxu1 }
 0x4ec   :  { %v3661_v37 = vadd.f32 %v3660_v22, %v3638_v9  ;;  %v3819_v46 = vpop.f32.mrf.mxu3  ;;  %v3873_v63 = vpop.f32.mrf.mxu0 }
 0x4ef   :  { %v3718_v2 = vpop.f32.mrf.mxu2 }
 0x4f0   :  { %v3719_v44 = vadd.f32 %v3718_v2, %v3661_v37 }
 0x4f2   :  { %v3820_v58 = vadd.f32 %v3819_v46, %v3719_v44 }
 0x4f3   :  { %v3912_v47 = vpop.f32.mrf.mxu1 }
 0x4f4   :  { %v3874_v4 = vadd.f32 %v3873_v63, %v3820_v58 }
 0x4f6   :  { %v3913_v0 = vadd.f32 %v3912_v47, %v3874_v4 }
 0x50f   :  { %v4018_v36 = vpop.f32.mrf.mxu3 }
 0x510   :  { %v3981_v60 = vpop.f32.mrf.mxu2 }
 0x511   :  { %v3982_v8 = vadd.f32 %v3981_v60, %v3913_v0 }
 0x513   :  { %v4019_v19 = vadd.f32 %v4018_v36, %v3982_v8 }
 0x515   :  { %v4026_v59 = vadd.f32 %v4425_v50, %v4019_v19 }
 0x517   :  { %v4027_v42 = vmax.f32 %v4026_v59, 0.0 }
 0x519   :  { %v4080_v12 = vand.u32 4294901760, %v4027_v42 }
 0x51b   :  { %v4081_v38 = vsub.f32 %v4027_v42, %v4080_v12  ;;  %4186 = vmatmul.f32.vlgmr.msra.gmra.mxu1 %v4080_v12 }
 0x51d   :  { %v4082_v45 = vand.u32 4294901760, %v4081_v38  ;;  %4240 = vmatmul.f32.vlgmr.msrb.gmra.mxu2 %v4081_v38 }
 0x51f   :  { %v4083_v14 = vsub.f32 %v4081_v38, %v4082_v45  ;;  %4279 = vmatmul.f32.vlgmr.msrb.gmra.mxu3 %v4082_v45 }
 0x521   :  { %v4084_v7 = vand.u32 4294901760, %v4083_v14 }
 0x523   :  { %4085 = vmatmul.f32.vlgmr.msra.gmra.mxu0 %v4084_v7  ;;  %4385 = vmatmul.f32.vlgmr.msrb.gmra.mxu1 %v4080_v12 }
 0x52b   :  { %4348 = vmatmul.f32.vlgmr.msrb.gmra.mxu0 %v4080_v12 }
 0x598   :  { %v4187_v55 = vpop.f32.mrf.mxu1 }
 0x5a0   :  { %v4086_v6 = vpop.f32.mrf.mxu0  ;;  %v4241_v24 = vpop.f32.mrf.mxu2 }
 0x5a1   :  { %v4087_v41 = vadd.f32 %v4426_v21, %v4086_v6  ;;  %v4386_v25 = vpop.f32.mrf.mxu1 }
 0x5a2   :  { %v4280_v29 = vpop.f32.mrf.mxu3 }
 0x5a3   :  { %v4188_v30 = vadd.f32 %v4187_v55, %v4087_v41 }
 0x5a5   :  { %v4242_v27 = vadd.f32 %v4241_v24, %v4188_v30 }
 0x5a7   :  { %v4281_v49 = vadd.f32 %v4280_v29, %v4242_v27 }
 0x5a8   :  { %v4349_v34 = vpop.f32.mrf.mxu0 }
 0x5a9   :  { %v4350_v11 = vadd.f32 %v4349_v34, %v4281_v49 }
 0x5ab   :  { %v4387_v26 = vadd.f32 %v4386_v25, %v4350_v11 }
 0x5ad   :  { %4389 = vst [vmem:[#allocation10] sm:$0xff] %v4387_v26 }
 0x5ae   :  { %4400 = dma.vmem_to_hbm [thread:$0]  %s4396_s25, 128, %s4398_s27, [#allocation4]  }
 0x5af   :  { %4569 = dma.done.wait [#allocation4], 128  }
 0x5b0   :  { %4570 = vsyncadd [#allocation4], 4294967168 }
 0x5b1   :  { %4405 = vsyncpa [#allocation3], 1 }
 0x5b2   :  { %4406 = vsyncpa [#allocation6], 1 }
 0x5b3   :  { %4407 = vsyncpa [#allocation9], 1 }
 0x5b4   :  { %4408 = vsyncpa [#allocation4], 1 }

</bundles_post_ra>
